<compile_context>
chip_gen: v7x
topology: tpu7x:2x2x1
jax: 0.10.0
libtpu: 0.0.40
codegen_flags: <defaults>
</compile_context>

<pallas_src>
import jax
import jax.numpy as jnp
from jax.experimental import pallas as pl
from jax.experimental.pallas import tpu as pltpu

H = 64          # conv out channels == LSTM hidden size
KCONV = 3       # conv1d kernel size
POOL = 15       # max-pool kernel size (== conv output width for L = 17)
OUT_PAD = 128   # lane-dense padded head width; true logits are columns 0:2


def lstm0_kernel(x_ref,        # (T, Bb, L)      f32
                 conv_w_ref,   # (KCONV, H)      f32
                 conv_b_ref,   # (1, H)          f32
                 w_ih_t_ref,   # (H, 4H)         bf16  (g-gate cols pre-scaled x2)
                 w_hh_t_ref,   # (H, 4H)         bf16  (g-gate cols pre-scaled x2)
                 b_lstm_ref,   # (1, 4H)         f32   (b_ih + b_hh, g cols x2)
                 w1_t_ref,     # (H, 256)        bf16
                 b1_ref,       # (1, 256)        f32
                 w2_t_ref,     # (256, 32)       bf16
                 b2_ref,       # (1, 32)         f32
                 w3_t_ref,     # (32, OUT_PAD)   bf16  (zero-padded)
                 b3_ref,       # (1, OUT_PAD)    f32   (zero-padded)
                 out_ref,      # (Bb, OUT_PAD)   f32
                 xg_scr):      # (T*Bb, 4H)      f32 scratch
    T, Bb, L = x_ref.shape
    W_out = L - KCONV + 1
    N = T * Bb

    # ---- Conv1d(1->64, k=3) + MaxPool1d(15) as a running elementwise max ----
    x2d = x_ref[...].reshape(N, L)          # row = (t, b):  t*Bb + b
    conv_w = conv_w_ref[...]                # (KCONV, H)

    def conv_tap(w):
        v = x2d[:, w:w + 1] * conv_w[0:1, :]
        for k in range(1, KCONV):
            v = v + x2d[:, w + k:w + k + 1] * conv_w[k:k + 1, :]
        return v                            # (N, H)

    pooled = conv_tap(0)
    for w in range(1, W_out):               # static unrolled; VPU only
        pooled = jnp.maximum(pooled, conv_tap(w))
    pooled = pooled + conv_b_ref[...]       # bias after max (monotone shift)

    # ---- Input contribution to all LSTM gates, all time steps, one MXU pass ----
    xg = jnp.dot(pooled.astype(jnp.bfloat16), w_ih_t_ref[...],
                 preferred_element_type=jnp.float32) + b_lstm_ref[...]  # (N, 4H)
    xg_scr[...] = xg

    w_hh_t = w_hh_t_ref[...]                # (H, 4H) bf16, hoisted

    # ---- LSTM recurrence (PyTorch gate order i,f,g,o), fully unrolled ----
    h = jnp.zeros((Bb, H), jnp.float32)
    c = jnp.zeros((Bb, H), jnp.float32)
    for t in range(T):
        gates = xg_scr[pl.ds(t * Bb, Bb), :] + jnp.dot(
            h.astype(jnp.bfloat16), w_hh_t, preferred_element_type=jnp.float32)
        # One full-width sigmoid (single EUP pass); g columns were pre-scaled
        # by 2 in the wrapper so tanh(g) == 2*sigmoid(2g) - 1 exactly.
        s = jax.nn.sigmoid(gates)
        i_g = s[:, 0 * H:1 * H]
        f_g = s[:, 1 * H:2 * H]
        g_g = s[:, 2 * H:3 * H] * 2.0 - 1.0
        o_g = s[:, 3 * H:4 * H]
        c = f_g * c + i_g * g_g
        h = o_g * jnp.tanh(c)

    # Dropout is identity at inference (eval) time.
    # ---- MLP head (bf16 matmul inputs, f32 accumulate) ----
    z1 = jnp.maximum(jnp.dot(h.astype(jnp.bfloat16), w1_t_ref[...],
                             preferred_element_type=jnp.float32) + b1_ref[...], 0.0)
    z2 = jnp.maximum(jnp.dot(z1.astype(jnp.bfloat16), w2_t_ref[...],
                             preferred_element_type=jnp.float32) + b2_ref[...], 0.0)
    z3 = jnp.dot(z2.astype(jnp.bfloat16), w3_t_ref[...],
                 preferred_element_type=jnp.float32) + b3_ref[...]       # (Bb, 128)
    out_ref[...] = z3.astype(out_ref.dtype)


def init_params(key):
    """Deterministic synthetic parameters matching the PyTorch module's shapes."""
    ks = jax.random.split(key, 12)
    s = 0.1
    return {
        "conv_w": jax.random.normal(ks[0], (H, 1, KCONV), jnp.float32) * s,  # Conv1d(1,64,3)
        "conv_b": jax.random.normal(ks[1], (H,), jnp.float32) * s,
        "w_ih":   jax.random.normal(ks[2], (4 * H, H), jnp.float32) * s,     # LSTM(64,64)
        "w_hh":   jax.random.normal(ks[3], (4 * H, H), jnp.float32) * s,
        "b_ih":   jax.random.normal(ks[4], (4 * H,), jnp.float32) * s,
        "b_hh":   jax.random.normal(ks[5], (4 * H,), jnp.float32) * s,
        "w1":     jax.random.normal(ks[6], (256, H), jnp.float32) * s,       # Linear(64,256)
        "b1":     jax.random.normal(ks[7], (256,), jnp.float32) * s,
        "w2":     jax.random.normal(ks[8], (32, 256), jnp.float32) * s,      # Linear(256,32)
        "b2":     jax.random.normal(ks[9], (32,), jnp.float32) * s,
        "w3":     jax.random.normal(ks[10], (2, 32), jnp.float32) * s,       # Linear(32,2)
        "b3":     jax.random.normal(ks[11], (2,), jnp.float32) * s,
    }


def _pick_block_b(B):
    # MXU-friendly batch blocks; VMEM per block is tiny even at 256 (fits v7x).
    for bb in (256, 128, 64, 32, 16, 8):
        if B % bb == 0:
            return bb
    return B  # small / irregular batch: single block


def lstm0_forward(x, params, block_b=None):
    """x: (B, T, L) float32 with L - 2 == POOL (e.g. L = 17). Returns (B, 2)."""
    B, T, L = x.shape
    assert L - KCONV + 1 == POOL, "sequence length must give pool output width 1"
    Bb = _pick_block_b(B) if block_b is None else block_b
    assert B % Bb == 0 and (Bb % 8 == 0 or Bb == B)
    grid = (B // Bb,)

    # ---- layout / dtype prep (glue only, no compute hoisted out of kernel) ----
    x_tb = jnp.transpose(x, (1, 0, 2))                         # (T, B, L)
    conv_w = params["conv_w"].reshape(H, KCONV).T              # (KCONV, H)
    conv_b = params["conv_b"].reshape(1, H)

    # Pre-scale the g-gate (cell-candidate) columns by 2 so the kernel can use
    # a single full-width sigmoid:  tanh(a) == 2*sigmoid(2a) - 1.
    g_scale = jnp.ones((4 * H,), jnp.float32).at[2 * H:3 * H].set(2.0)
    w_ih_t = (params["w_ih"].T * g_scale[None, :]).astype(jnp.bfloat16)   # (H, 4H)
    w_hh_t = (params["w_hh"].T * g_scale[None, :]).astype(jnp.bfloat16)   # (H, 4H)
    b_lstm = ((params["b_ih"] + params["b_hh"]) * g_scale).reshape(1, 4 * H)

    w1_t = params["w1"].T.astype(jnp.bfloat16)                 # (H, 256)
    b1 = params["b1"].reshape(1, 256)
    w2_t = params["w2"].T.astype(jnp.bfloat16)                 # (256, 32)
    b2 = params["b2"].reshape(1, 32)
    # Pad the 2-wide head to 128 lanes for lane-dense stores; slice outside.
    w3_t = jnp.zeros((32, OUT_PAD), jnp.float32).at[:, :2].set(
        params["w3"].T).astype(jnp.bfloat16)
    b3 = jnp.zeros((1, OUT_PAD), jnp.float32).at[:, :2].set(
        params["b3"].reshape(1, 2))

    def resident(shape):           # weights: constant index_map -> stay in VMEM
        return pl.BlockSpec(shape, lambda i: (0, 0))

    in_specs = [
        pl.BlockSpec((T, Bb, L), lambda i: (0, i, 0)),   # x: tiled over batch
        resident((KCONV, H)),
        resident((1, H)),
        resident((H, 4 * H)),
        resident((H, 4 * H)),
        resident((1, 4 * H)),
        resident((H, 256)),
        resident((1, 256)),
        resident((256, 32)),
        resident((1, 32)),
        resident((32, OUT_PAD)),
        resident((1, OUT_PAD)),
    ]
    out_spec = pl.BlockSpec((Bb, OUT_PAD), lambda i: (i, 0))

    out_padded = pl.pallas_call(
        lstm0_kernel,
        out_shape=jax.ShapeDtypeStruct((B, OUT_PAD), jnp.float32),
        grid_spec=pltpu.PrefetchScalarGridSpec(
            num_scalar_prefetch=0,
            grid=grid,
            in_specs=in_specs,
            out_specs=out_spec,
            scratch_shapes=[pltpu.VMEM((T * Bb, 4 * H), jnp.float32)],
        ),
        compiler_params=pltpu.CompilerParams(
            dimension_semantics=("parallel",),        # megacore split on v7x
            vmem_limit_bytes=32 * 1024 * 1024,        # explicit; safe on v5e/v6e/v7x
        ),
    )(x_tb, conv_w, conv_b, w_ih_t, w_hh_t, b_lstm,
      w1_t, b1, w2_t, b2, w3_t, b3)

    return out_padded[:, :2]


if __name__ == "__main__":
    key = jax.random.PRNGKey(0)
    kx, kp = jax.random.split(key)

    # L=17 -> conv width 15 -> pool width 1 -> LSTM input 64 (matches module).
    B, T, L = 16, 8, 17
    x = jax.random.normal(kx, (B, T, L), jnp.float32)
    params = init_params(kp)

    out = lstm0_forward(x, params, block_b=8)   # 2 batch blocks -> pipelined grid
    jax.block_until_ready(out)
    assert out.shape == (B, 2) and out.dtype == jnp.float32
    assert bool(jnp.all(jnp.isfinite(out)))
    print("KERNEL_OK")
</pallas_src>

<mosaic_0001>
module attributes {stable_mosaic.version = 11 : i64} {
  func.func @lstm0_kernel(%arg0: i32, %arg1: memref<8x8x17xf32, #tpu.memory_space<vmem>>, %arg2: memref<3x64xf32, #tpu.memory_space<vmem>>, %arg3: memref<1x64xf32, #tpu.memory_space<vmem>>, %arg4: memref<64x256xbf16, #tpu.memory_space<vmem>>, %arg5: memref<64x256xbf16, #tpu.memory_space<vmem>>, %arg6: memref<1x256xf32, #tpu.memory_space<vmem>>, %arg7: memref<64x256xbf16, #tpu.memory_space<vmem>>, %arg8: memref<1x256xf32, #tpu.memory_space<vmem>>, %arg9: memref<256x32xbf16, #tpu.memory_space<vmem>>, %arg10: memref<1x32xf32, #tpu.memory_space<vmem>>, %arg11: memref<32x128xbf16, #tpu.memory_space<vmem>>, %arg12: memref<1x128xf32, #tpu.memory_space<vmem>>, %arg13: memref<8x128xf32, #tpu.memory_space<vmem>>, %arg14: memref<64x256xf32, #tpu.memory_space<vmem>>) attributes {dimension_semantics = [#tpu.dimension_semantics<parallel>], iteration_bounds = array<i64: 2>, scalar_prefetch = 0 : i64, scratch_operands = 1 : i64, tpu.core_type = #tpu.core_type<tc>, window_params = [{transform_indices = @transform_0, window_bounds = array<i64: 8, 8, 17>}, {pipeline_mode = #tpu.pipeline_mode<synchronous>, transform_indices = @transform_1, window_bounds = array<i64: 3, 64>}, {pipeline_mode = #tpu.pipeline_mode<synchronous>, transform_indices = @transform_2, window_bounds = array<i64: 1, 64>}, {pipeline_mode = #tpu.pipeline_mode<synchronous>, transform_indices = @transform_3, window_bounds = array<i64: 64, 256>}, {pipeline_mode = #tpu.pipeline_mode<synchronous>, transform_indices = @transform_4, window_bounds = array<i64: 64, 256>}, {pipeline_mode = #tpu.pipeline_mode<synchronous>, transform_indices = @transform_5, window_bounds = array<i64: 1, 256>}, {pipeline_mode = #tpu.pipeline_mode<synchronous>, transform_indices = @transform_6, window_bounds = array<i64: 64, 256>}, {pipeline_mode = #tpu.pipeline_mode<synchronous>, transform_indices = @transform_7, window_bounds = array<i64: 1, 256>}, {pipeline_mode = #tpu.pipeline_mode<synchronous>, transform_indices = @transform_8, window_bounds = array<i64: 256, 32>}, {pipeline_mode = #tpu.pipeline_mode<synchronous>, transform_indices = @transform_9, window_bounds = array<i64: 1, 32>}, {pipeline_mode = #tpu.pipeline_mode<synchronous>, transform_indices = @transform_10, window_bounds = array<i64: 32, 128>}, {pipeline_mode = #tpu.pipeline_mode<synchronous>, transform_indices = @transform_11, window_bounds = array<i64: 1, 128>}, {transform_indices = @transform_12, window_bounds = array<i64: 8, 128>}]} {
    %c0 = arith.constant 0 : index
    %c0_0 = arith.constant 0 : index
    %c0_1 = arith.constant 0 : index
    %0 = vector.load %arg1[%c0, %c0_0, %c0_1] : memref<8x8x17xf32, #tpu.memory_space<vmem>>, vector<8x8x17xf32>
    %1 = vector.shape_cast %0 : vector<8x8x17xf32> to vector<64x17xf32>
    %c0_2 = arith.constant 0 : index
    %c0_3 = arith.constant 0 : index
    %2 = vector.load %arg2[%c0_2, %c0_3] : memref<3x64xf32, #tpu.memory_space<vmem>>, vector<3x64xf32>
    %3 = vector.extract_strided_slice %1 {offsets = [0, 0], sizes = [64, 1], strides = [1, 1]} : vector<64x17xf32> to vector<64x1xf32>
    %4 = vector.extract_strided_slice %2 {offsets = [0, 0], sizes = [1, 64], strides = [1, 1]} : vector<3x64xf32> to vector<1x64xf32>
    %5 = vector.broadcast %3 : vector<64x1xf32> to vector<64x64xf32>
    %6 = vector.broadcast %4 : vector<1x64xf32> to vector<64x64xf32>
    %7 = arith.mulf %5, %6 : vector<64x64xf32>
    %8 = vector.extract_strided_slice %1 {offsets = [0, 1], sizes = [64, 1], strides = [1, 1]} : vector<64x17xf32> to vector<64x1xf32>
    %9 = vector.extract_strided_slice %2 {offsets = [1, 0], sizes = [1, 64], strides = [1, 1]} : vector<3x64xf32> to vector<1x64xf32>
    %10 = vector.broadcast %8 : vector<64x1xf32> to vector<64x64xf32>
    %11 = vector.broadcast %9 : vector<1x64xf32> to vector<64x64xf32>
    %12 = arith.mulf %10, %11 : vector<64x64xf32>
    %13 = arith.addf %7, %12 : vector<64x64xf32>
    %14 = vector.extract_strided_slice %1 {offsets = [0, 2], sizes = [64, 1], strides = [1, 1]} : vector<64x17xf32> to vector<64x1xf32>
    %15 = vector.extract_strided_slice %2 {offsets = [2, 0], sizes = [1, 64], strides = [1, 1]} : vector<3x64xf32> to vector<1x64xf32>
    %16 = vector.broadcast %14 : vector<64x1xf32> to vector<64x64xf32>
    %17 = vector.broadcast %15 : vector<1x64xf32> to vector<64x64xf32>
    %18 = arith.mulf %16, %17 : vector<64x64xf32>
    %19 = arith.addf %13, %18 : vector<64x64xf32>
    %20 = vector.extract_strided_slice %1 {offsets = [0, 1], sizes = [64, 1], strides = [1, 1]} : vector<64x17xf32> to vector<64x1xf32>
    %21 = vector.extract_strided_slice %2 {offsets = [0, 0], sizes = [1, 64], strides = [1, 1]} : vector<3x64xf32> to vector<1x64xf32>
    %22 = vector.broadcast %20 : vector<64x1xf32> to vector<64x64xf32>
    %23 = vector.broadcast %21 : vector<1x64xf32> to vector<64x64xf32>
    %24 = arith.mulf %22, %23 : vector<64x64xf32>
    %25 = vector.extract_strided_slice %1 {offsets = [0, 2], sizes = [64, 1], strides = [1, 1]} : vector<64x17xf32> to vector<64x1xf32>
    %26 = vector.extract_strided_slice %2 {offsets = [1, 0], sizes = [1, 64], strides = [1, 1]} : vector<3x64xf32> to vector<1x64xf32>
    %27 = vector.broadcast %25 : vector<64x1xf32> to vector<64x64xf32>
    %28 = vector.broadcast %26 : vector<1x64xf32> to vector<64x64xf32>
    %29 = arith.mulf %27, %28 : vector<64x64xf32>
    %30 = arith.addf %24, %29 : vector<64x64xf32>
    %31 = vector.extract_strided_slice %1 {offsets = [0, 3], sizes = [64, 1], strides = [1, 1]} : vector<64x17xf32> to vector<64x1xf32>
    %32 = vector.extract_strided_slice %2 {offsets = [2, 0], sizes = [1, 64], strides = [1, 1]} : vector<3x64xf32> to vector<1x64xf32>
    %33 = vector.broadcast %31 : vector<64x1xf32> to vector<64x64xf32>
    %34 = vector.broadcast %32 : vector<1x64xf32> to vector<64x64xf32>
    %35 = arith.mulf %33, %34 : vector<64x64xf32>
    %36 = arith.addf %30, %35 : vector<64x64xf32>
    %37 = arith.maximumf %19, %36 : vector<64x64xf32>
    %38 = vector.extract_strided_slice %1 {offsets = [0, 2], sizes = [64, 1], strides = [1, 1]} : vector<64x17xf32> to vector<64x1xf32>
    %39 = vector.extract_strided_slice %2 {offsets = [0, 0], sizes = [1, 64], strides = [1, 1]} : vector<3x64xf32> to vector<1x64xf32>
    %40 = vector.broadcast %38 : vector<64x1xf32> to vector<64x64xf32>
    %41 = vector.broadcast %39 : vector<1x64xf32> to vector<64x64xf32>
    %42 = arith.mulf %40, %41 : vector<64x64xf32>
    %43 = vector.extract_strided_slice %1 {offsets = [0, 3], sizes = [64, 1], strides = [1, 1]} : vector<64x17xf32> to vector<64x1xf32>
    %44 = vector.extract_strided_slice %2 {offsets = [1, 0], sizes = [1, 64], strides = [1, 1]} : vector<3x64xf32> to vector<1x64xf32>
    %45 = vector.broadcast %43 : vector<64x1xf32> to vector<64x64xf32>
    %46 = vector.broadcast %44 : vector<1x64xf32> to vector<64x64xf32>
    %47 = arith.mulf %45, %46 : vector<64x64xf32>
    %48 = arith.addf %42, %47 : vector<64x64xf32>
    %49 = vector.extract_strided_slice %1 {offsets = [0, 4], sizes = [64, 1], strides = [1, 1]} : vector<64x17xf32> to vector<64x1xf32>
    %50 = vector.extract_strided_slice %2 {offsets = [2, 0], sizes = [1, 64], strides = [1, 1]} : vector<3x64xf32> to vector<1x64xf32>
    %51 = vector.broadcast %49 : vector<64x1xf32> to vector<64x64xf32>
    %52 = vector.broadcast %50 : vector<1x64xf32> to vector<64x64xf32>
    %53 = arith.mulf %51, %52 : vector<64x64xf32>
    %54 = arith.addf %48, %53 : vector<64x64xf32>
    %55 = arith.maximumf %37, %54 : vector<64x64xf32>
    %56 = vector.extract_strided_slice %1 {offsets = [0, 3], sizes = [64, 1], strides = [1, 1]} : vector<64x17xf32> to vector<64x1xf32>
    %57 = vector.extract_strided_slice %2 {offsets = [0, 0], sizes = [1, 64], strides = [1, 1]} : vector<3x64xf32> to vector<1x64xf32>
    %58 = vector.broadcast %56 : vector<64x1xf32> to vector<64x64xf32>
    %59 = vector.broadcast %57 : vector<1x64xf32> to vector<64x64xf32>
    %60 = arith.mulf %58, %59 : vector<64x64xf32>
    %61 = vector.extract_strided_slice %1 {offsets = [0, 4], sizes = [64, 1], strides = [1, 1]} : vector<64x17xf32> to vector<64x1xf32>
    %62 = vector.extract_strided_slice %2 {offsets = [1, 0], sizes = [1, 64], strides = [1, 1]} : vector<3x64xf32> to vector<1x64xf32>
    %63 = vector.broadcast %61 : vector<64x1xf32> to vector<64x64xf32>
    %64 = vector.broadcast %62 : vector<1x64xf32> to vector<64x64xf32>
    %65 = arith.mulf %63, %64 : vector<64x64xf32>
    %66 = arith.addf %60, %65 : vector<64x64xf32>
    %67 = vector.extract_strided_slice %1 {offsets = [0, 5], sizes = [64, 1], strides = [1, 1]} : vector<64x17xf32> to vector<64x1xf32>
    %68 = vector.extract_strided_slice %2 {offsets = [2, 0], sizes = [1, 64], strides = [1, 1]} : vector<3x64xf32> to vector<1x64xf32>
    %69 = vector.broadcast %67 : vector<64x1xf32> to vector<64x64xf32>
    %70 = vector.broadcast %68 : vector<1x64xf32> to vector<64x64xf32>
    %71 = arith.mulf %69, %70 : vector<64x64xf32>
    %72 = arith.addf %66, %71 : vector<64x64xf32>
    %73 = arith.maximumf %55, %72 : vector<64x64xf32>
    %74 = vector.extract_strided_slice %1 {offsets = [0, 4], sizes = [64, 1], strides = [1, 1]} : vector<64x17xf32> to vector<64x1xf32>
    %75 = vector.extract_strided_slice %2 {offsets = [0, 0], sizes = [1, 64], strides = [1, 1]} : vector<3x64xf32> to vector<1x64xf32>
    %76 = vector.broadcast %74 : vector<64x1xf32> to vector<64x64xf32>
    %77 = vector.broadcast %75 : vector<1x64xf32> to vector<64x64xf32>
    %78 = arith.mulf %76, %77 : vector<64x64xf32>
    %79 = vector.extract_strided_slice %1 {offsets = [0, 5], sizes = [64, 1], strides = [1, 1]} : vector<64x17xf32> to vector<64x1xf32>
    %80 = vector.extract_strided_slice %2 {offsets = [1, 0], sizes = [1, 64], strides = [1, 1]} : vector<3x64xf32> to vector<1x64xf32>
    %81 = vector.broadcast %79 : vector<64x1xf32> to vector<64x64xf32>
    %82 = vector.broadcast %80 : vector<1x64xf32> to vector<64x64xf32>
    %83 = arith.mulf %81, %82 : vector<64x64xf32>
    %84 = arith.addf %78, %83 : vector<64x64xf32>
    %85 = vector.extract_strided_slice %1 {offsets = [0, 6], sizes = [64, 1], strides = [1, 1]} : vector<64x17xf32> to vector<64x1xf32>
    %86 = vector.extract_strided_slice %2 {offsets = [2, 0], sizes = [1, 64], strides = [1, 1]} : vector<3x64xf32> to vector<1x64xf32>
    %87 = vector.broadcast %85 : vector<64x1xf32> to vector<64x64xf32>
    %88 = vector.broadcast %86 : vector<1x64xf32> to vector<64x64xf32>
    %89 = arith.mulf %87, %88 : vector<64x64xf32>
    %90 = arith.addf %84, %89 : vector<64x64xf32>
    %91 = arith.maximumf %73, %90 : vector<64x64xf32>
    %92 = vector.extract_strided_slice %1 {offsets = [0, 5], sizes = [64, 1], strides = [1, 1]} : vector<64x17xf32> to vector<64x1xf32>
    %93 = vector.extract_strided_slice %2 {offsets = [0, 0], sizes = [1, 64], strides = [1, 1]} : vector<3x64xf32> to vector<1x64xf32>
    %94 = vector.broadcast %92 : vector<64x1xf32> to vector<64x64xf32>
    %95 = vector.broadcast %93 : vector<1x64xf32> to vector<64x64xf32>
    %96 = arith.mulf %94, %95 : vector<64x64xf32>
    %97 = vector.extract_strided_slice %1 {offsets = [0, 6], sizes = [64, 1], strides = [1, 1]} : vector<64x17xf32> to vector<64x1xf32>
    %98 = vector.extract_strided_slice %2 {offsets = [1, 0], sizes = [1, 64], strides = [1, 1]} : vector<3x64xf32> to vector<1x64xf32>
    %99 = vector.broadcast %97 : vector<64x1xf32> to vector<64x64xf32>
    %100 = vector.broadcast %98 : vector<1x64xf32> to vector<64x64xf32>
    %101 = arith.mulf %99, %100 : vector<64x64xf32>
    %102 = arith.addf %96, %101 : vector<64x64xf32>
    %103 = vector.extract_strided_slice %1 {offsets = [0, 7], sizes = [64, 1], strides = [1, 1]} : vector<64x17xf32> to vector<64x1xf32>
    %104 = vector.extract_strided_slice %2 {offsets = [2, 0], sizes = [1, 64], strides = [1, 1]} : vector<3x64xf32> to vector<1x64xf32>
    %105 = vector.broadcast %103 : vector<64x1xf32> to vector<64x64xf32>
    %106 = vector.broadcast %104 : vector<1x64xf32> to vector<64x64xf32>
    %107 = arith.mulf %105, %106 : vector<64x64xf32>
    %108 = arith.addf %102, %107 : vector<64x64xf32>
    %109 = arith.maximumf %91, %108 : vector<64x64xf32>
    %110 = vector.extract_strided_slice %1 {offsets = [0, 6], sizes = [64, 1], strides = [1, 1]} : vector<64x17xf32> to vector<64x1xf32>
    %111 = vector.extract_strided_slice %2 {offsets = [0, 0], sizes = [1, 64], strides = [1, 1]} : vector<3x64xf32> to vector<1x64xf32>
    %112 = vector.broadcast %110 : vector<64x1xf32> to vector<64x64xf32>
    %113 = vector.broadcast %111 : vector<1x64xf32> to vector<64x64xf32>
    %114 = arith.mulf %112, %113 : vector<64x64xf32>
    %115 = vector.extract_strided_slice %1 {offsets = [0, 7], sizes = [64, 1], strides = [1, 1]} : vector<64x17xf32> to vector<64x1xf32>
    %116 = vector.extract_strided_slice %2 {offsets = [1, 0], sizes = [1, 64], strides = [1, 1]} : vector<3x64xf32> to vector<1x64xf32>
    %117 = vector.broadcast %115 : vector<64x1xf32> to vector<64x64xf32>
    %118 = vector.broadcast %116 : vector<1x64xf32> to vector<64x64xf32>
    %119 = arith.mulf %117, %118 : vector<64x64xf32>
    %120 = arith.addf %114, %119 : vector<64x64xf32>
    %121 = vector.extract_strided_slice %1 {offsets = [0, 8], sizes = [64, 1], strides = [1, 1]} : vector<64x17xf32> to vector<64x1xf32>
    %122 = vector.extract_strided_slice %2 {offsets = [2, 0], sizes = [1, 64], strides = [1, 1]} : vector<3x64xf32> to vector<1x64xf32>
    %123 = vector.broadcast %121 : vector<64x1xf32> to vector<64x64xf32>
    %124 = vector.broadcast %122 : vector<1x64xf32> to vector<64x64xf32>
    %125 = arith.mulf %123, %124 : vector<64x64xf32>
    %126 = arith.addf %120, %125 : vector<64x64xf32>
    %127 = arith.maximumf %109, %126 : vector<64x64xf32>
    %128 = vector.extract_strided_slice %1 {offsets = [0, 7], sizes = [64, 1], strides = [1, 1]} : vector<64x17xf32> to vector<64x1xf32>
    %129 = vector.extract_strided_slice %2 {offsets = [0, 0], sizes = [1, 64], strides = [1, 1]} : vector<3x64xf32> to vector<1x64xf32>
    %130 = vector.broadcast %128 : vector<64x1xf32> to vector<64x64xf32>
    %131 = vector.broadcast %129 : vector<1x64xf32> to vector<64x64xf32>
    %132 = arith.mulf %130, %131 : vector<64x64xf32>
    %133 = vector.extract_strided_slice %1 {offsets = [0, 8], sizes = [64, 1], strides = [1, 1]} : vector<64x17xf32> to vector<64x1xf32>
    %134 = vector.extract_strided_slice %2 {offsets = [1, 0], sizes = [1, 64], strides = [1, 1]} : vector<3x64xf32> to vector<1x64xf32>
    %135 = vector.broadcast %133 : vector<64x1xf32> to vector<64x64xf32>
    %136 = vector.broadcast %134 : vector<1x64xf32> to vector<64x64xf32>
    %137 = arith.mulf %135, %136 : vector<64x64xf32>
    %138 = arith.addf %132, %137 : vector<64x64xf32>
    %139 = vector.extract_strided_slice %1 {offsets = [0, 9], sizes = [64, 1], strides = [1, 1]} : vector<64x17xf32> to vector<64x1xf32>
    %140 = vector.extract_strided_slice %2 {offsets = [2, 0], sizes = [1, 64], strides = [1, 1]} : vector<3x64xf32> to vector<1x64xf32>
    %141 = vector.broadcast %139 : vector<64x1xf32> to vector<64x64xf32>
    %142 = vector.broadcast %140 : vector<1x64xf32> to vector<64x64xf32>
    %143 = arith.mulf %141, %142 : vector<64x64xf32>
    %144 = arith.addf %138, %143 : vector<64x64xf32>
    %145 = arith.maximumf %127, %144 : vector<64x64xf32>
    %146 = vector.extract_strided_slice %1 {offsets = [0, 8], sizes = [64, 1], strides = [1, 1]} : vector<64x17xf32> to vector<64x1xf32>
    %147 = vector.extract_strided_slice %2 {offsets = [0, 0], sizes = [1, 64], strides = [1, 1]} : vector<3x64xf32> to vector<1x64xf32>
    %148 = vector.broadcast %146 : vector<64x1xf32> to vector<64x64xf32>
    %149 = vector.broadcast %147 : vector<1x64xf32> to vector<64x64xf32>
    %150 = arith.mulf %148, %149 : vector<64x64xf32>
    %151 = vector.extract_strided_slice %1 {offsets = [0, 9], sizes = [64, 1], strides = [1, 1]} : vector<64x17xf32> to vector<64x1xf32>
    %152 = vector.extract_strided_slice %2 {offsets = [1, 0], sizes = [1, 64], strides = [1, 1]} : vector<3x64xf32> to vector<1x64xf32>
    %153 = vector.broadcast %151 : vector<64x1xf32> to vector<64x64xf32>
    %154 = vector.broadcast %152 : vector<1x64xf32> to vector<64x64xf32>
    %155 = arith.mulf %153, %154 : vector<64x64xf32>
    %156 = arith.addf %150, %155 : vector<64x64xf32>
    %157 = vector.extract_strided_slice %1 {offsets = [0, 10], sizes = [64, 1], strides = [1, 1]} : vector<64x17xf32> to vector<64x1xf32>
    %158 = vector.extract_strided_slice %2 {offsets = [2, 0], sizes = [1, 64], strides = [1, 1]} : vector<3x64xf32> to vector<1x64xf32>
    %159 = vector.broadcast %157 : vector<64x1xf32> to vector<64x64xf32>
    %160 = vector.broadcast %158 : vector<1x64xf32> to vector<64x64xf32>
    %161 = arith.mulf %159, %160 : vector<64x64xf32>
    %162 = arith.addf %156, %161 : vector<64x64xf32>
    %163 = arith.maximumf %145, %162 : vector<64x64xf32>
    %164 = vector.extract_strided_slice %1 {offsets = [0, 9], sizes = [64, 1], strides = [1, 1]} : vector<64x17xf32> to vector<64x1xf32>
    %165 = vector.extract_strided_slice %2 {offsets = [0, 0], sizes = [1, 64], strides = [1, 1]} : vector<3x64xf32> to vector<1x64xf32>
    %166 = vector.broadcast %164 : vector<64x1xf32> to vector<64x64xf32>
    %167 = vector.broadcast %165 : vector<1x64xf32> to vector<64x64xf32>
    %168 = arith.mulf %166, %167 : vector<64x64xf32>
    %169 = vector.extract_strided_slice %1 {offsets = [0, 10], sizes = [64, 1], strides = [1, 1]} : vector<64x17xf32> to vector<64x1xf32>
    %170 = vector.extract_strided_slice %2 {offsets = [1, 0], sizes = [1, 64], strides = [1, 1]} : vector<3x64xf32> to vector<1x64xf32>
    %171 = vector.broadcast %169 : vector<64x1xf32> to vector<64x64xf32>
    %172 = vector.broadcast %170 : vector<1x64xf32> to vector<64x64xf32>
    %173 = arith.mulf %171, %172 : vector<64x64xf32>
    %174 = arith.addf %168, %173 : vector<64x64xf32>
    %175 = vector.extract_strided_slice %1 {offsets = [0, 11], sizes = [64, 1], strides = [1, 1]} : vector<64x17xf32> to vector<64x1xf32>
    %176 = vector.extract_strided_slice %2 {offsets = [2, 0], sizes = [1, 64], strides = [1, 1]} : vector<3x64xf32> to vector<1x64xf32>
    %177 = vector.broadcast %175 : vector<64x1xf32> to vector<64x64xf32>
    %178 = vector.broadcast %176 : vector<1x64xf32> to vector<64x64xf32>
    %179 = arith.mulf %177, %178 : vector<64x64xf32>
    %180 = arith.addf %174, %179 : vector<64x64xf32>
    %181 = arith.maximumf %163, %180 : vector<64x64xf32>
    %182 = vector.extract_strided_slice %1 {offsets = [0, 10], sizes = [64, 1], strides = [1, 1]} : vector<64x17xf32> to vector<64x1xf32>
    %183 = vector.extract_strided_slice %2 {offsets = [0, 0], sizes = [1, 64], strides = [1, 1]} : vector<3x64xf32> to vector<1x64xf32>
    %184 = vector.broadcast %182 : vector<64x1xf32> to vector<64x64xf32>
    %185 = vector.broadcast %183 : vector<1x64xf32> to vector<64x64xf32>
    %186 = arith.mulf %184, %185 : vector<64x64xf32>
    %187 = vector.extract_strided_slice %1 {offsets = [0, 11], sizes = [64, 1], strides = [1, 1]} : vector<64x17xf32> to vector<64x1xf32>
    %188 = vector.extract_strided_slice %2 {offsets = [1, 0], sizes = [1, 64], strides = [1, 1]} : vector<3x64xf32> to vector<1x64xf32>
    %189 = vector.broadcast %187 : vector<64x1xf32> to vector<64x64xf32>
    %190 = vector.broadcast %188 : vector<1x64xf32> to vector<64x64xf32>
    %191 = arith.mulf %189, %190 : vector<64x64xf32>
    %192 = arith.addf %186, %191 : vector<64x64xf32>
    %193 = vector.extract_strided_slice %1 {offsets = [0, 12], sizes = [64, 1], strides = [1, 1]} : vector<64x17xf32> to vector<64x1xf32>
    %194 = vector.extract_strided_slice %2 {offsets = [2, 0], sizes = [1, 64], strides = [1, 1]} : vector<3x64xf32> to vector<1x64xf32>
    %195 = vector.broadcast %193 : vector<64x1xf32> to vector<64x64xf32>
    %196 = vector.broadcast %194 : vector<1x64xf32> to vector<64x64xf32>
    %197 = arith.mulf %195, %196 : vector<64x64xf32>
    %198 = arith.addf %192, %197 : vector<64x64xf32>
    %199 = arith.maximumf %181, %198 : vector<64x64xf32>
    %200 = vector.extract_strided_slice %1 {offsets = [0, 11], sizes = [64, 1], strides = [1, 1]} : vector<64x17xf32> to vector<64x1xf32>
    %201 = vector.extract_strided_slice %2 {offsets = [0, 0], sizes = [1, 64], strides = [1, 1]} : vector<3x64xf32> to vector<1x64xf32>
    %202 = vector.broadcast %200 : vector<64x1xf32> to vector<64x64xf32>
    %203 = vector.broadcast %201 : vector<1x64xf32> to vector<64x64xf32>
    %204 = arith.mulf %202, %203 : vector<64x64xf32>
    %205 = vector.extract_strided_slice %1 {offsets = [0, 12], sizes = [64, 1], strides = [1, 1]} : vector<64x17xf32> to vector<64x1xf32>
    %206 = vector.extract_strided_slice %2 {offsets = [1, 0], sizes = [1, 64], strides = [1, 1]} : vector<3x64xf32> to vector<1x64xf32>
    %207 = vector.broadcast %205 : vector<64x1xf32> to vector<64x64xf32>
    %208 = vector.broadcast %206 : vector<1x64xf32> to vector<64x64xf32>
    %209 = arith.mulf %207, %208 : vector<64x64xf32>
    %210 = arith.addf %204, %209 : vector<64x64xf32>
    %211 = vector.extract_strided_slice %1 {offsets = [0, 13], sizes = [64, 1], strides = [1, 1]} : vector<64x17xf32> to vector<64x1xf32>
    %212 = vector.extract_strided_slice %2 {offsets = [2, 0], sizes = [1, 64], strides = [1, 1]} : vector<3x64xf32> to vector<1x64xf32>
    %213 = vector.broadcast %211 : vector<64x1xf32> to vector<64x64xf32>
    %214 = vector.broadcast %212 : vector<1x64xf32> to vector<64x64xf32>
    %215 = arith.mulf %213, %214 : vector<64x64xf32>
    %216 = arith.addf %210, %215 : vector<64x64xf32>
    %217 = arith.maximumf %199, %216 : vector<64x64xf32>
    %218 = vector.extract_strided_slice %1 {offsets = [0, 12], sizes = [64, 1], strides = [1, 1]} : vector<64x17xf32> to vector<64x1xf32>
    %219 = vector.extract_strided_slice %2 {offsets = [0, 0], sizes = [1, 64], strides = [1, 1]} : vector<3x64xf32> to vector<1x64xf32>
    %220 = vector.broadcast %218 : vector<64x1xf32> to vector<64x64xf32>
    %221 = vector.broadcast %219 : vector<1x64xf32> to vector<64x64xf32>
    %222 = arith.mulf %220, %221 : vector<64x64xf32>
    %223 = vector.extract_strided_slice %1 {offsets = [0, 13], sizes = [64, 1], strides = [1, 1]} : vector<64x17xf32> to vector<64x1xf32>
    %224 = vector.extract_strided_slice %2 {offsets = [1, 0], sizes = [1, 64], strides = [1, 1]} : vector<3x64xf32> to vector<1x64xf32>
    %225 = vector.broadcast %223 : vector<64x1xf32> to vector<64x64xf32>
    %226 = vector.broadcast %224 : vector<1x64xf32> to vector<64x64xf32>
    %227 = arith.mulf %225, %226 : vector<64x64xf32>
    %228 = arith.addf %222, %227 : vector<64x64xf32>
    %229 = vector.extract_strided_slice %1 {offsets = [0, 14], sizes = [64, 1], strides = [1, 1]} : vector<64x17xf32> to vector<64x1xf32>
    %230 = vector.extract_strided_slice %2 {offsets = [2, 0], sizes = [1, 64], strides = [1, 1]} : vector<3x64xf32> to vector<1x64xf32>
    %231 = vector.broadcast %229 : vector<64x1xf32> to vector<64x64xf32>
    %232 = vector.broadcast %230 : vector<1x64xf32> to vector<64x64xf32>
    %233 = arith.mulf %231, %232 : vector<64x64xf32>
    %234 = arith.addf %228, %233 : vector<64x64xf32>
    %235 = arith.maximumf %217, %234 : vector<64x64xf32>
    %236 = vector.extract_strided_slice %1 {offsets = [0, 13], sizes = [64, 1], strides = [1, 1]} : vector<64x17xf32> to vector<64x1xf32>
    %237 = vector.extract_strided_slice %2 {offsets = [0, 0], sizes = [1, 64], strides = [1, 1]} : vector<3x64xf32> to vector<1x64xf32>
    %238 = vector.broadcast %236 : vector<64x1xf32> to vector<64x64xf32>
    %239 = vector.broadcast %237 : vector<1x64xf32> to vector<64x64xf32>
    %240 = arith.mulf %238, %239 : vector<64x64xf32>
    %241 = vector.extract_strided_slice %1 {offsets = [0, 14], sizes = [64, 1], strides = [1, 1]} : vector<64x17xf32> to vector<64x1xf32>
    %242 = vector.extract_strided_slice %2 {offsets = [1, 0], sizes = [1, 64], strides = [1, 1]} : vector<3x64xf32> to vector<1x64xf32>
    %243 = vector.broadcast %241 : vector<64x1xf32> to vector<64x64xf32>
    %244 = vector.broadcast %242 : vector<1x64xf32> to vector<64x64xf32>
    %245 = arith.mulf %243, %244 : vector<64x64xf32>
    %246 = arith.addf %240, %245 : vector<64x64xf32>
    %247 = vector.extract_strided_slice %1 {offsets = [0, 15], sizes = [64, 1], strides = [1, 1]} : vector<64x17xf32> to vector<64x1xf32>
    %248 = vector.extract_strided_slice %2 {offsets = [2, 0], sizes = [1, 64], strides = [1, 1]} : vector<3x64xf32> to vector<1x64xf32>
    %249 = vector.broadcast %247 : vector<64x1xf32> to vector<64x64xf32>
    %250 = vector.broadcast %248 : vector<1x64xf32> to vector<64x64xf32>
    %251 = arith.mulf %249, %250 : vector<64x64xf32>
    %252 = arith.addf %246, %251 : vector<64x64xf32>
    %253 = arith.maximumf %235, %252 : vector<64x64xf32>
    %254 = vector.extract_strided_slice %1 {offsets = [0, 14], sizes = [64, 1], strides = [1, 1]} : vector<64x17xf32> to vector<64x1xf32>
    %255 = vector.extract_strided_slice %2 {offsets = [0, 0], sizes = [1, 64], strides = [1, 1]} : vector<3x64xf32> to vector<1x64xf32>
    %256 = vector.broadcast %254 : vector<64x1xf32> to vector<64x64xf32>
    %257 = vector.broadcast %255 : vector<1x64xf32> to vector<64x64xf32>
    %258 = arith.mulf %256, %257 : vector<64x64xf32>
    %259 = vector.extract_strided_slice %1 {offsets = [0, 15], sizes = [64, 1], strides = [1, 1]} : vector<64x17xf32> to vector<64x1xf32>
    %260 = vector.extract_strided_slice %2 {offsets = [1, 0], sizes = [1, 64], strides = [1, 1]} : vector<3x64xf32> to vector<1x64xf32>
    %261 = vector.broadcast %259 : vector<64x1xf32> to vector<64x64xf32>
    %262 = vector.broadcast %260 : vector<1x64xf32> to vector<64x64xf32>
    %263 = arith.mulf %261, %262 : vector<64x64xf32>
    %264 = arith.addf %258, %263 : vector<64x64xf32>
    %265 = vector.extract_strided_slice %1 {offsets = [0, 16], sizes = [64, 1], strides = [1, 1]} : vector<64x17xf32> to vector<64x1xf32>
    %266 = vector.extract_strided_slice %2 {offsets = [2, 0], sizes = [1, 64], strides = [1, 1]} : vector<3x64xf32> to vector<1x64xf32>
    %267 = vector.broadcast %265 : vector<64x1xf32> to vector<64x64xf32>
    %268 = vector.broadcast %266 : vector<1x64xf32> to vector<64x64xf32>
    %269 = arith.mulf %267, %268 : vector<64x64xf32>
    %270 = arith.addf %264, %269 : vector<64x64xf32>
    %271 = arith.maximumf %253, %270 : vector<64x64xf32>
    %c0_4 = arith.constant 0 : index
    %c0_5 = arith.constant 0 : index
    %272 = vector.load %arg3[%c0_4, %c0_5] : memref<1x64xf32, #tpu.memory_space<vmem>>, vector<1x64xf32>
    %273 = vector.broadcast %272 : vector<1x64xf32> to vector<64x64xf32>
    %274 = arith.addf %271, %273 : vector<64x64xf32>
    %275 = arith.truncf %274 : vector<64x64xf32> to vector<64x64xbf16>
    %c0_6 = arith.constant 0 : index
    %c0_7 = arith.constant 0 : index
    %276 = vector.load %arg4[%c0_6, %c0_7] : memref<64x256xbf16, #tpu.memory_space<vmem>>, vector<64x256xbf16>
    %cst = arith.constant dense<0.000000e+00> : vector<64x256xf32>
    %277 = tpu.matmul %275, %276, %cst {dimension_numbers = #tpu.dot_dimension_numbers<[1], [0], [0], [1], [0, 0, 1, 1], [], []>} : vector<64x64xbf16>, vector<64x256xbf16>, vector<64x256xf32> -> vector<64x256xf32>
    %c0_8 = arith.constant 0 : index
    %c0_9 = arith.constant 0 : index
    %278 = vector.load %arg6[%c0_8, %c0_9] : memref<1x256xf32, #tpu.memory_space<vmem>>, vector<1x256xf32>
    %279 = vector.broadcast %278 : vector<1x256xf32> to vector<64x256xf32>
    %280 = arith.addf %277, %279 : vector<64x256xf32>
    %c0_10 = arith.constant 0 : index
    %c0_11 = arith.constant 0 : index
    %281 = vector.load %arg14[%c0_10, %c0_11] : memref<64x256xf32, #tpu.memory_space<vmem>>, vector<64x256xf32>
    tpu.vector_store %arg14[%c0_10, %c0_11], %280 {strides = array<i32>} : memref<64x256xf32, #tpu.memory_space<vmem>>, vector<64x256xf32>,
    %c0_12 = arith.constant 0 : index
    %c0_13 = arith.constant 0 : index
    %282 = vector.load %arg5[%c0_12, %c0_13] : memref<64x256xbf16, #tpu.memory_space<vmem>>, vector<64x256xbf16>
    %cst_14 = arith.constant 0.000000e+00 : f32
    %283 = vector.broadcast %cst_14 : f32 to vector<8x64xf32>
    %cst_15 = arith.constant 0.000000e+00 : f32
    %284 = vector.broadcast %cst_15 : f32 to vector<8x64xf32>
    %c0_16 = arith.constant 0 : index
    %c0_17 = arith.constant 0 : index
    %285 = vector.load %arg14[%c0_16, %c0_17] : memref<64x256xf32, #tpu.memory_space<vmem>>, vector<8x256xf32>
    %286 = arith.truncf %283 : vector<8x64xf32> to vector<8x64xbf16>
    %cst_18 = arith.constant dense<0.000000e+00> : vector<8x256xf32>
    %287 = tpu.matmul %286, %282, %cst_18 {dimension_numbers = #tpu.dot_dimension_numbers<[1], [0], [0], [1], [0, 0, 1, 1], [], []>} : vector<8x64xbf16>, vector<64x256xbf16>, vector<8x256xf32> -> vector<8x256xf32>
    %288 = arith.addf %285, %287 : vector<8x256xf32>
    %289 = arith.negf %288 : vector<8x256xf32>
    %290 = math.exp %289 : vector<8x256xf32>
    %cst_19 = arith.constant 1.000000e+00 : f32
    %291 = vector.broadcast %cst_19 : f32 to vector<8x256xf32>
    %292 = arith.addf %291, %290 : vector<8x256xf32>
    %293 = arith.divf %291, %292 : vector<8x256xf32>
    %294 = vector.extract_strided_slice %293 {offsets = [0, 0], sizes = [8, 64], strides = [1, 1]} : vector<8x256xf32> to vector<8x64xf32>
    %295 = vector.extract_strided_slice %293 {offsets = [0, 64], sizes = [8, 64], strides = [1, 1]} : vector<8x256xf32> to vector<8x64xf32>
    %296 = vector.extract_strided_slice %293 {offsets = [0, 128], sizes = [8, 64], strides = [1, 1]} : vector<8x256xf32> to vector<8x64xf32>
    %cst_20 = arith.constant 2.000000e+00 : f32
    %297 = vector.broadcast %cst_20 : f32 to vector<8x64xf32>
    %298 = arith.mulf %296, %297 : vector<8x64xf32>
    %cst_21 = arith.constant 1.000000e+00 : f32
    %299 = vector.broadcast %cst_21 : f32 to vector<8x64xf32>
    %300 = arith.subf %298, %299 : vector<8x64xf32>
    %301 = vector.extract_strided_slice %293 {offsets = [0, 192], sizes = [8, 64], strides = [1, 1]} : vector<8x256xf32> to vector<8x64xf32>
    %302 = arith.mulf %295, %284 : vector<8x64xf32>
    %303 = arith.mulf %294, %300 : vector<8x64xf32>
    %304 = arith.addf %302, %303 : vector<8x64xf32>
    %305 = math.tanh %304 : vector<8x64xf32>
    %306 = arith.mulf %301, %305 : vector<8x64xf32>
    %c8 = arith.constant 8 : index
    %c0_22 = arith.constant 0 : index
    %307 = vector.load %arg14[%c8, %c0_22] : memref<64x256xf32, #tpu.memory_space<vmem>>, vector<8x256xf32>
    %308 = arith.truncf %306 : vector<8x64xf32> to vector<8x64xbf16>
    %cst_23 = arith.constant dense<0.000000e+00> : vector<8x256xf32>
    %309 = tpu.matmul %308, %282, %cst_23 {dimension_numbers = #tpu.dot_dimension_numbers<[1], [0], [0], [1], [0, 0, 1, 1], [], []>} : vector<8x64xbf16>, vector<64x256xbf16>, vector<8x256xf32> -> vector<8x256xf32>
    %310 = arith.addf %307, %309 : vector<8x256xf32>
    %311 = arith.negf %310 : vector<8x256xf32>
    %312 = math.exp %311 : vector<8x256xf32>
    %cst_24 = arith.constant 1.000000e+00 : f32
    %313 = vector.broadcast %cst_24 : f32 to vector<8x256xf32>
    %314 = arith.addf %313, %312 : vector<8x256xf32>
    %315 = arith.divf %313, %314 : vector<8x256xf32>
    %316 = vector.extract_strided_slice %315 {offsets = [0, 0], sizes = [8, 64], strides = [1, 1]} : vector<8x256xf32> to vector<8x64xf32>
    %317 = vector.extract_strided_slice %315 {offsets = [0, 64], sizes = [8, 64], strides = [1, 1]} : vector<8x256xf32> to vector<8x64xf32>
    %318 = vector.extract_strided_slice %315 {offsets = [0, 128], sizes = [8, 64], strides = [1, 1]} : vector<8x256xf32> to vector<8x64xf32>
    %cst_25 = arith.constant 2.000000e+00 : f32
    %319 = vector.broadcast %cst_25 : f32 to vector<8x64xf32>
    %320 = arith.mulf %318, %319 : vector<8x64xf32>
    %cst_26 = arith.constant 1.000000e+00 : f32
    %321 = vector.broadcast %cst_26 : f32 to vector<8x64xf32>
    %322 = arith.subf %320, %321 : vector<8x64xf32>
    %323 = vector.extract_strided_slice %315 {offsets = [0, 192], sizes = [8, 64], strides = [1, 1]} : vector<8x256xf32> to vector<8x64xf32>
    %324 = arith.mulf %317, %304 : vector<8x64xf32>
    %325 = arith.mulf %316, %322 : vector<8x64xf32>
    %326 = arith.addf %324, %325 : vector<8x64xf32>
    %327 = math.tanh %326 : vector<8x64xf32>
    %328 = arith.mulf %323, %327 : vector<8x64xf32>
    %c16 = arith.constant 16 : index
    %c0_27 = arith.constant 0 : index
    %329 = vector.load %arg14[%c16, %c0_27] : memref<64x256xf32, #tpu.memory_space<vmem>>, vector<8x256xf32>
    %330 = arith.truncf %328 : vector<8x64xf32> to vector<8x64xbf16>
    %cst_28 = arith.constant dense<0.000000e+00> : vector<8x256xf32>
    %331 = tpu.matmul %330, %282, %cst_28 {dimension_numbers = #tpu.dot_dimension_numbers<[1], [0], [0], [1], [0, 0, 1, 1], [], []>} : vector<8x64xbf16>, vector<64x256xbf16>, vector<8x256xf32> -> vector<8x256xf32>
    %332 = arith.addf %329, %331 : vector<8x256xf32>
    %333 = arith.negf %332 : vector<8x256xf32>
    %334 = math.exp %333 : vector<8x256xf32>
    %cst_29 = arith.constant 1.000000e+00 : f32
    %335 = vector.broadcast %cst_29 : f32 to vector<8x256xf32>
    %336 = arith.addf %335, %334 : vector<8x256xf32>
    %337 = arith.divf %335, %336 : vector<8x256xf32>
    %338 = vector.extract_strided_slice %337 {offsets = [0, 0], sizes = [8, 64], strides = [1, 1]} : vector<8x256xf32> to vector<8x64xf32>
    %339 = vector.extract_strided_slice %337 {offsets = [0, 64], sizes = [8, 64], strides = [1, 1]} : vector<8x256xf32> to vector<8x64xf32>
    %340 = vector.extract_strided_slice %337 {offsets = [0, 128], sizes = [8, 64], strides = [1, 1]} : vector<8x256xf32> to vector<8x64xf32>
    %cst_30 = arith.constant 2.000000e+00 : f32
    %341 = vector.broadcast %cst_30 : f32 to vector<8x64xf32>
    %342 = arith.mulf %340, %341 : vector<8x64xf32>
    %cst_31 = arith.constant 1.000000e+00 : f32
    %343 = vector.broadcast %cst_31 : f32 to vector<8x64xf32>
    %344 = arith.subf %342, %343 : vector<8x64xf32>
    %345 = vector.extract_strided_slice %337 {offsets = [0, 192], sizes = [8, 64], strides = [1, 1]} : vector<8x256xf32> to vector<8x64xf32>
    %346 = arith.mulf %339, %326 : vector<8x64xf32>
    %347 = arith.mulf %338, %344 : vector<8x64xf32>
    %348 = arith.addf %346, %347 : vector<8x64xf32>
    %349 = math.tanh %348 : vector<8x64xf32>
    %350 = arith.mulf %345, %349 : vector<8x64xf32>
    %c24 = arith.constant 24 : index
    %c0_32 = arith.constant 0 : index
    %351 = vector.load %arg14[%c24, %c0_32] : memref<64x256xf32, #tpu.memory_space<vmem>>, vector<8x256xf32>
    %352 = arith.truncf %350 : vector<8x64xf32> to vector<8x64xbf16>
    %cst_33 = arith.constant dense<0.000000e+00> : vector<8x256xf32>
    %353 = tpu.matmul %352, %282, %cst_33 {dimension_numbers = #tpu.dot_dimension_numbers<[1], [0], [0], [1], [0, 0, 1, 1], [], []>} : vector<8x64xbf16>, vector<64x256xbf16>, vector<8x256xf32> -> vector<8x256xf32>
    %354 = arith.addf %351, %353 : vector<8x256xf32>
    %355 = arith.negf %354 : vector<8x256xf32>
    %356 = math.exp %355 : vector<8x256xf32>
    %cst_34 = arith.constant 1.000000e+00 : f32
    %357 = vector.broadcast %cst_34 : f32 to vector<8x256xf32>
    %358 = arith.addf %357, %356 : vector<8x256xf32>
    %359 = arith.divf %357, %358 : vector<8x256xf32>
    %360 = vector.extract_strided_slice %359 {offsets = [0, 0], sizes = [8, 64], strides = [1, 1]} : vector<8x256xf32> to vector<8x64xf32>
    %361 = vector.extract_strided_slice %359 {offsets = [0, 64], sizes = [8, 64], strides = [1, 1]} : vector<8x256xf32> to vector<8x64xf32>
    %362 = vector.extract_strided_slice %359 {offsets = [0, 128], sizes = [8, 64], strides = [1, 1]} : vector<8x256xf32> to vector<8x64xf32>
    %cst_35 = arith.constant 2.000000e+00 : f32
    %363 = vector.broadcast %cst_35 : f32 to vector<8x64xf32>
    %364 = arith.mulf %362, %363 : vector<8x64xf32>
    %cst_36 = arith.constant 1.000000e+00 : f32
    %365 = vector.broadcast %cst_36 : f32 to vector<8x64xf32>
    %366 = arith.subf %364, %365 : vector<8x64xf32>
    %367 = vector.extract_strided_slice %359 {offsets = [0, 192], sizes = [8, 64], strides = [1, 1]} : vector<8x256xf32> to vector<8x64xf32>
    %368 = arith.mulf %361, %348 : vector<8x64xf32>
    %369 = arith.mulf %360, %366 : vector<8x64xf32>
    %370 = arith.addf %368, %369 : vector<8x64xf32>
    %371 = math.tanh %370 : vector<8x64xf32>
    %372 = arith.mulf %367, %371 : vector<8x64xf32>
    %c32 = arith.constant 32 : index
    %c0_37 = arith.constant 0 : index
    %373 = vector.load %arg14[%c32, %c0_37] : memref<64x256xf32, #tpu.memory_space<vmem>>, vector<8x256xf32>
    %374 = arith.truncf %372 : vector<8x64xf32> to vector<8x64xbf16>
    %cst_38 = arith.constant dense<0.000000e+00> : vector<8x256xf32>
    %375 = tpu.matmul %374, %282, %cst_38 {dimension_numbers = #tpu.dot_dimension_numbers<[1], [0], [0], [1], [0, 0, 1, 1], [], []>} : vector<8x64xbf16>, vector<64x256xbf16>, vector<8x256xf32> -> vector<8x256xf32>
    %376 = arith.addf %373, %375 : vector<8x256xf32>
    %377 = arith.negf %376 : vector<8x256xf32>
    %378 = math.exp %377 : vector<8x256xf32>
    %cst_39 = arith.constant 1.000000e+00 : f32
    %379 = vector.broadcast %cst_39 : f32 to vector<8x256xf32>
    %380 = arith.addf %379, %378 : vector<8x256xf32>
    %381 = arith.divf %379, %380 : vector<8x256xf32>
    %382 = vector.extract_strided_slice %381 {offsets = [0, 0], sizes = [8, 64], strides = [1, 1]} : vector<8x256xf32> to vector<8x64xf32>
    %383 = vector.extract_strided_slice %381 {offsets = [0, 64], sizes = [8, 64], strides = [1, 1]} : vector<8x256xf32> to vector<8x64xf32>
    %384 = vector.extract_strided_slice %381 {offsets = [0, 128], sizes = [8, 64], strides = [1, 1]} : vector<8x256xf32> to vector<8x64xf32>
    %cst_40 = arith.constant 2.000000e+00 : f32
    %385 = vector.broadcast %cst_40 : f32 to vector<8x64xf32>
    %386 = arith.mulf %384, %385 : vector<8x64xf32>
    %cst_41 = arith.constant 1.000000e+00 : f32
    %387 = vector.broadcast %cst_41 : f32 to vector<8x64xf32>
    %388 = arith.subf %386, %387 : vector<8x64xf32>
    %389 = vector.extract_strided_slice %381 {offsets = [0, 192], sizes = [8, 64], strides = [1, 1]} : vector<8x256xf32> to vector<8x64xf32>
    %390 = arith.mulf %383, %370 : vector<8x64xf32>
    %391 = arith.mulf %382, %388 : vector<8x64xf32>
    %392 = arith.addf %390, %391 : vector<8x64xf32>
    %393 = math.tanh %392 : vector<8x64xf32>
    %394 = arith.mulf %389, %393 : vector<8x64xf32>
    %c40 = arith.constant 40 : index
    %c0_42 = arith.constant 0 : index
    %395 = vector.load %arg14[%c40, %c0_42] : memref<64x256xf32, #tpu.memory_space<vmem>>, vector<8x256xf32>
    %396 = arith.truncf %394 : vector<8x64xf32> to vector<8x64xbf16>
    %cst_43 = arith.constant dense<0.000000e+00> : vector<8x256xf32>
    %397 = tpu.matmul %396, %282, %cst_43 {dimension_numbers = #tpu.dot_dimension_numbers<[1], [0], [0], [1], [0, 0, 1, 1], [], []>} : vector<8x64xbf16>, vector<64x256xbf16>, vector<8x256xf32> -> vector<8x256xf32>
    %398 = arith.addf %395, %397 : vector<8x256xf32>
    %399 = arith.negf %398 : vector<8x256xf32>
    %400 = math.exp %399 : vector<8x256xf32>
    %cst_44 = arith.constant 1.000000e+00 : f32
    %401 = vector.broadcast %cst_44 : f32 to vector<8x256xf32>
    %402 = arith.addf %401, %400 : vector<8x256xf32>
    %403 = arith.divf %401, %402 : vector<8x256xf32>
    %404 = vector.extract_strided_slice %403 {offsets = [0, 0], sizes = [8, 64], strides = [1, 1]} : vector<8x256xf32> to vector<8x64xf32>
    %405 = vector.extract_strided_slice %403 {offsets = [0, 64], sizes = [8, 64], strides = [1, 1]} : vector<8x256xf32> to vector<8x64xf32>
    %406 = vector.extract_strided_slice %403 {offsets = [0, 128], sizes = [8, 64], strides = [1, 1]} : vector<8x256xf32> to vector<8x64xf32>
    %cst_45 = arith.constant 2.000000e+00 : f32
    %407 = vector.broadcast %cst_45 : f32 to vector<8x64xf32>
    %408 = arith.mulf %406, %407 : vector<8x64xf32>
    %cst_46 = arith.constant 1.000000e+00 : f32
    %409 = vector.broadcast %cst_46 : f32 to vector<8x64xf32>
    %410 = arith.subf %408, %409 : vector<8x64xf32>
    %411 = vector.extract_strided_slice %403 {offsets = [0, 192], sizes = [8, 64], strides = [1, 1]} : vector<8x256xf32> to vector<8x64xf32>
    %412 = arith.mulf %405, %392 : vector<8x64xf32>
    %413 = arith.mulf %404, %410 : vector<8x64xf32>
    %414 = arith.addf %412, %413 : vector<8x64xf32>
    %415 = math.tanh %414 : vector<8x64xf32>
    %416 = arith.mulf %411, %415 : vector<8x64xf32>
    %c48 = arith.constant 48 : index
    %c0_47 = arith.constant 0 : index
    %417 = vector.load %arg14[%c48, %c0_47] : memref<64x256xf32, #tpu.memory_space<vmem>>, vector<8x256xf32>
    %418 = arith.truncf %416 : vector<8x64xf32> to vector<8x64xbf16>
    %cst_48 = arith.constant dense<0.000000e+00> : vector<8x256xf32>
    %419 = tpu.matmul %418, %282, %cst_48 {dimension_numbers = #tpu.dot_dimension_numbers<[1], [0], [0], [1], [0, 0, 1, 1], [], []>} : vector<8x64xbf16>, vector<64x256xbf16>, vector<8x256xf32> -> vector<8x256xf32>
    %420 = arith.addf %417, %419 : vector<8x256xf32>
    %421 = arith.negf %420 : vector<8x256xf32>
    %422 = math.exp %421 : vector<8x256xf32>
    %cst_49 = arith.constant 1.000000e+00 : f32
    %423 = vector.broadcast %cst_49 : f32 to vector<8x256xf32>
    %424 = arith.addf %423, %422 : vector<8x256xf32>
    %425 = arith.divf %423, %424 : vector<8x256xf32>
    %426 = vector.extract_strided_slice %425 {offsets = [0, 0], sizes = [8, 64], strides = [1, 1]} : vector<8x256xf32> to vector<8x64xf32>
    %427 = vector.extract_strided_slice %425 {offsets = [0, 64], sizes = [8, 64], strides = [1, 1]} : vector<8x256xf32> to vector<8x64xf32>
    %428 = vector.extract_strided_slice %425 {offsets = [0, 128], sizes = [8, 64], strides = [1, 1]} : vector<8x256xf32> to vector<8x64xf32>
    %cst_50 = arith.constant 2.000000e+00 : f32
    %429 = vector.broadcast %cst_50 : f32 to vector<8x64xf32>
    %430 = arith.mulf %428, %429 : vector<8x64xf32>
    %cst_51 = arith.constant 1.000000e+00 : f32
    %431 = vector.broadcast %cst_51 : f32 to vector<8x64xf32>
    %432 = arith.subf %430, %431 : vector<8x64xf32>
    %433 = vector.extract_strided_slice %425 {offsets = [0, 192], sizes = [8, 64], strides = [1, 1]} : vector<8x256xf32> to vector<8x64xf32>
    %434 = arith.mulf %427, %414 : vector<8x64xf32>
    %435 = arith.mulf %426, %432 : vector<8x64xf32>
    %436 = arith.addf %434, %435 : vector<8x64xf32>
    %437 = math.tanh %436 : vector<8x64xf32>
    %438 = arith.mulf %433, %437 : vector<8x64xf32>
    %c56 = arith.constant 56 : index
    %c0_52 = arith.constant 0 : index
    %439 = vector.load %arg14[%c56, %c0_52] : memref<64x256xf32, #tpu.memory_space<vmem>>, vector<8x256xf32>
    %440 = arith.truncf %438 : vector<8x64xf32> to vector<8x64xbf16>
    %cst_53 = arith.constant dense<0.000000e+00> : vector<8x256xf32>
    %441 = tpu.matmul %440, %282, %cst_53 {dimension_numbers = #tpu.dot_dimension_numbers<[1], [0], [0], [1], [0, 0, 1, 1], [], []>} : vector<8x64xbf16>, vector<64x256xbf16>, vector<8x256xf32> -> vector<8x256xf32>
    %442 = arith.addf %439, %441 : vector<8x256xf32>
    %443 = arith.negf %442 : vector<8x256xf32>
    %444 = math.exp %443 : vector<8x256xf32>
    %cst_54 = arith.constant 1.000000e+00 : f32
    %445 = vector.broadcast %cst_54 : f32 to vector<8x256xf32>
    %446 = arith.addf %445, %444 : vector<8x256xf32>
    %447 = arith.divf %445, %446 : vector<8x256xf32>
    %448 = vector.extract_strided_slice %447 {offsets = [0, 0], sizes = [8, 64], strides = [1, 1]} : vector<8x256xf32> to vector<8x64xf32>
    %449 = vector.extract_strided_slice %447 {offsets = [0, 64], sizes = [8, 64], strides = [1, 1]} : vector<8x256xf32> to vector<8x64xf32>
    %450 = vector.extract_strided_slice %447 {offsets = [0, 128], sizes = [8, 64], strides = [1, 1]} : vector<8x256xf32> to vector<8x64xf32>
    %cst_55 = arith.constant 2.000000e+00 : f32
    %451 = vector.broadcast %cst_55 : f32 to vector<8x64xf32>
    %452 = arith.mulf %450, %451 : vector<8x64xf32>
    %cst_56 = arith.constant 1.000000e+00 : f32
    %453 = vector.broadcast %cst_56 : f32 to vector<8x64xf32>
    %454 = arith.subf %452, %453 : vector<8x64xf32>
    %455 = vector.extract_strided_slice %447 {offsets = [0, 192], sizes = [8, 64], strides = [1, 1]} : vector<8x256xf32> to vector<8x64xf32>
    %456 = arith.mulf %449, %436 : vector<8x64xf32>
    %457 = arith.mulf %448, %454 : vector<8x64xf32>
    %458 = arith.addf %456, %457 : vector<8x64xf32>
    %459 = math.tanh %458 : vector<8x64xf32>
    %460 = arith.mulf %455, %459 : vector<8x64xf32>
    %461 = arith.truncf %460 : vector<8x64xf32> to vector<8x64xbf16>
    %c0_57 = arith.constant 0 : index
    %c0_58 = arith.constant 0 : index
    %462 = vector.load %arg7[%c0_57, %c0_58] : memref<64x256xbf16, #tpu.memory_space<vmem>>, vector<64x256xbf16>
    %cst_59 = arith.constant dense<0.000000e+00> : vector<8x256xf32>
    %463 = tpu.matmul %461, %462, %cst_59 {dimension_numbers = #tpu.dot_dimension_numbers<[1], [0], [0], [1], [0, 0, 1, 1], [], []>} : vector<8x64xbf16>, vector<64x256xbf16>, vector<8x256xf32> -> vector<8x256xf32>
    %c0_60 = arith.constant 0 : index
    %c0_61 = arith.constant 0 : index
    %464 = vector.load %arg8[%c0_60, %c0_61] : memref<1x256xf32, #tpu.memory_space<vmem>>, vector<1x256xf32>
    %465 = vector.broadcast %464 : vector<1x256xf32> to vector<8x256xf32>
    %466 = arith.addf %463, %465 : vector<8x256xf32>
    %cst_62 = arith.constant 0.000000e+00 : f32
    %467 = vector.broadcast %cst_62 : f32 to vector<8x256xf32>
    %468 = arith.maximumf %466, %467 : vector<8x256xf32>
    %469 = arith.truncf %468 : vector<8x256xf32> to vector<8x256xbf16>
    %c0_63 = arith.constant 0 : index
    %c0_64 = arith.constant 0 : index
    %470 = vector.load %arg9[%c0_63, %c0_64] : memref<256x32xbf16, #tpu.memory_space<vmem>>, vector<256x32xbf16>
    %cst_65 = arith.constant dense<0.000000e+00> : vector<8x32xf32>
    %471 = tpu.matmul %469, %470, %cst_65 {dimension_numbers = #tpu.dot_dimension_numbers<[1], [0], [0], [1], [0, 0, 1, 1], [], []>} : vector<8x256xbf16>, vector<256x32xbf16>, vector<8x32xf32> -> vector<8x32xf32>
    %c0_66 = arith.constant 0 : index
    %c0_67 = arith.constant 0 : index
    %472 = vector.load %arg10[%c0_66, %c0_67] : memref<1x32xf32, #tpu.memory_space<vmem>>, vector<1x32xf32>
    %473 = vector.broadcast %472 : vector<1x32xf32> to vector<8x32xf32>
    %474 = arith.addf %471, %473 : vector<8x32xf32>
    %cst_68 = arith.constant 0.000000e+00 : f32
    %475 = vector.broadcast %cst_68 : f32 to vector<8x32xf32>
    %476 = arith.maximumf %474, %475 : vector<8x32xf32>
    %477 = arith.truncf %476 : vector<8x32xf32> to vector<8x32xbf16>
    %c0_69 = arith.constant 0 : index
    %c0_70 = arith.constant 0 : index
    %478 = vector.load %arg11[%c0_69, %c0_70] : memref<32x128xbf16, #tpu.memory_space<vmem>>, vector<32x128xbf16>
    %cst_71 = arith.constant dense<0.000000e+00> : vector<8x128xf32>
    %479 = tpu.matmul %477, %478, %cst_71 {dimension_numbers = #tpu.dot_dimension_numbers<[1], [0], [0], [1], [0, 0, 1, 1], [], []>} : vector<8x32xbf16>, vector<32x128xbf16>, vector<8x128xf32> -> vector<8x128xf32>
    %c0_72 = arith.constant 0 : index
    %c0_73 = arith.constant 0 : index
    %480 = vector.load %arg12[%c0_72, %c0_73] : memref<1x128xf32, #tpu.memory_space<vmem>>, vector<1x128xf32>
    %481 = vector.broadcast %480 : vector<1x128xf32> to vector<8x128xf32>
    %482 = arith.addf %479, %481 : vector<8x128xf32>
    %c0_74 = arith.constant 0 : index
    %c0_75 = arith.constant 0 : index
    %483 = vector.load %arg13[%c0_74, %c0_75] : memref<8x128xf32, #tpu.memory_space<vmem>>, vector<8x128xf32>
    tpu.vector_store %arg13[%c0_74, %c0_75], %482 {strides = array<i32>} : memref<8x128xf32, #tpu.memory_space<vmem>>, vector<8x128xf32>,
    return
  }
  func.func @transform_0(%arg0: i32) -> (i32, i32, i32) {
    %c0_i32 = arith.constant 0 : i32
    %c0_i32_0 = arith.constant 0 : i32
    %c0_i32_1 = arith.constant 0 : i32
    return %c0_i32, %arg0, %c0_i32_0 : i32, i32, i32
  }
  func.func @transform_1(%arg0: i32) -> (i32, i32) {
    %c0_i32 = arith.constant 0 : i32
    %c0_i32_0 = arith.constant 0 : i32
    %c0_i32_1 = arith.constant 0 : i32
    return %c0_i32, %c0_i32_0 : i32, i32
  }
  func.func @transform_2(%arg0: i32) -> (i32, i32) {
    %c0_i32 = arith.constant 0 : i32
    %c0_i32_0 = arith.constant 0 : i32
    %c0_i32_1 = arith.constant 0 : i32
    return %c0_i32, %c0_i32_0 : i32, i32
  }
  func.func @transform_3(%arg0: i32) -> (i32, i32) {
    %c0_i32 = arith.constant 0 : i32
    %c0_i32_0 = arith.constant 0 : i32
    %c0_i32_1 = arith.constant 0 : i32
    return %c0_i32, %c0_i32_0 : i32, i32
  }
  func.func @transform_4(%arg0: i32) -> (i32, i32) {
    %c0_i32 = arith.constant 0 : i32
    %c0_i32_0 = arith.constant 0 : i32
    %c0_i32_1 = arith.constant 0 : i32
    return %c0_i32, %c0_i32_0 : i32, i32
  }
  func.func @transform_5(%arg0: i32) -> (i32, i32) {
    %c0_i32 = arith.constant 0 : i32
    %c0_i32_0 = arith.constant 0 : i32
    %c0_i32_1 = arith.constant 0 : i32
    return %c0_i32, %c0_i32_0 : i32, i32
  }
  func.func @transform_6(%arg0: i32) -> (i32, i32) {
    %c0_i32 = arith.constant 0 : i32
    %c0_i32_0 = arith.constant 0 : i32
    %c0_i32_1 = arith.constant 0 : i32
    return %c0_i32, %c0_i32_0 : i32, i32
  }
  func.func @transform_7(%arg0: i32) -> (i32, i32) {
    %c0_i32 = arith.constant 0 : i32
    %c0_i32_0 = arith.constant 0 : i32
    %c0_i32_1 = arith.constant 0 : i32
    return %c0_i32, %c0_i32_0 : i32, i32
  }
  func.func @transform_8(%arg0: i32) -> (i32, i32) {
    %c0_i32 = arith.constant 0 : i32
    %c0_i32_0 = arith.constant 0 : i32
    %c0_i32_1 = arith.constant 0 : i32
    return %c0_i32, %c0_i32_0 : i32, i32
  }
  func.func @transform_9(%arg0: i32) -> (i32, i32) {
    %c0_i32 = arith.constant 0 : i32
    %c0_i32_0 = arith.constant 0 : i32
    %c0_i32_1 = arith.constant 0 : i32
    return %c0_i32, %c0_i32_0 : i32, i32
  }
  func.func @transform_10(%arg0: i32) -> (i32, i32) {
    %c0_i32 = arith.constant 0 : i32
    %c0_i32_0 = arith.constant 0 : i32
    %c0_i32_1 = arith.constant 0 : i32
    return %c0_i32, %c0_i32_0 : i32, i32
  }
  func.func @transform_11(%arg0: i32) -> (i32, i32) {
    %c0_i32 = arith.constant 0 : i32
    %c0_i32_0 = arith.constant 0 : i32
    %c0_i32_1 = arith.constant 0 : i32
    return %c0_i32, %c0_i32_0 : i32, i32
  }
  func.func @transform_12(%arg0: i32) -> (i32, i32) {
    %c0_i32 = arith.constant 0 : i32
    %c0_i32_0 = arith.constant 0 : i32
    return %arg0, %c0_i32 : i32, i32
  }
}

</mosaic_0001>

<bundles_post_ra>
// kernel: tpu_custom_call.1
= control target key start
LH: loop header
LB: loop body
LE: loop exit
PB: predicated region body
PF: predicated region fallthrough
CT: control target
= control target key end

     0   :  { %s5388_s0 = inlined_call_operand.vmem [shape: f32[8,16,17], index: 0, kind: input, shape index: {}]   ;;  %s5389_s1 = inlined_call_operand.vmem [shape: f32[3,64], index: 1, kind: input, shape index: {}]   ;;  %s5390_s2 = inlined_call_operand.vmem [shape: f32[1,64], index: 2, kind: input, shape index: {}]   ;;  %s5391_s3 = inlined_call_operand.hbm [shape: bf16[64,256], index: 3, kind: input, shape index: {}]   ;;  %s5392_s4 = inlined_call_operand.hbm [shape: bf16[64,256], index: 4, kind: input, shape index: {}]   ;;  %s5393_s5 = inlined_call_operand.vmem [shape: f32[1,256], index: 5, kind: input, shape index: {}]   ;;  %s5394_s6 = inlined_call_operand.hbm [shape: bf16[64,256], index: 6, kind: input, shape index: {}]   ;;  %s5395_s7 = inlined_call_operand.vmem [shape: f32[1,256], index: 7, kind: input, shape index: {}]   ;;  %s5396_s8 = inlined_call_operand.vmem [shape: bf16[256,32], index: 8, kind: input, shape index: {}]   ;;  %s5397_s9 = inlined_call_operand.vmem [shape: f32[1,32], index: 9, kind: input, shape index: {}]   ;;  %s5398_s10 = inlined_call_operand.vmem [shape: bf16[32,128], index: 10, kind: input, shape index: {}]   ;;  %s5399_s11 = inlined_call_operand.vmem [shape: f32[1,128], index: 11, kind: input, shape index: {}]   ;;  %s5400_s12 = inlined_call_operand.hbm [shape: f32[16,128], index: 12, kind: output, shape index: {}]  }
   0x1   :  { %5445 = sst [smem:[#allocation29_spill]] %s5397_s9 }
   0x2   :  { %5446 = sst [smem:[#allocation30_spill]] %s5398_s10 }
   0x3   :  { %5447 = sst [smem:[#allocation31_spill]] %s5399_s11 }
   0x4   :  { %5448 = sst [smem:[#allocation32_spill]] %s5400_s12 }
   0x5   :  { %17 = vsyncpa [#allocation5], 0 }
   0x6   :  { %18 = vsyncpa [#allocation8], 0 }
   0x7   :  { %19 = vsyncpa [#allocation6], 0 }
   0x8   :  { %21 = vsyncpa [#allocation6 + $0x1], 0  ;;  %s3813_s21 = smov 0   ;;  %s3815_s22 = smov 0  }
   0x9   :  { %s3817_s23 = smov 0   ;;  %s3819_s24 = smov 0  }
   0xa LB: > { %5449 = sst [smem:[#allocation14_spill]] %s3708_s21  ;;  %s3834_s25 = sadd.s32 4294967295, %s3720_s24   ;;  %s3720_s24 = sphi %s3819_s24, %s5512_s24   ;;  %s3716_s23 = sphi %s3817_s23, %s5516_s23   ;;  %s3712_s22 = sphi %s3815_s22, %s5515_s22   ;;  %s3708_s21 = sphi %s3813_s21, %s5514_s21  }
   0xb   : > { %s3096_s26 = sadd.s32 4294967294, %s3720_s24   ;;  %s3838_s27 = sadd.s32 1, %s3720_s24  }
   0xc   : > { %5450 = sst [smem:[#allocation15_spill]] %s3838_s27  ;;  %s34_s28 = sadd.s32 1, %s3716_s23 }
   0xd   : > { %s31_s29 = ssub.s32 %s3720_s24, %s3838_s27  ;;  %p41_p0 = scmp.ne.s32.totalorder %s3716_s23, %s3712_s22 }
   0xe   : > { %p32_p1 = scmp.eq.s32.totalorder %s31_s29, 0  ;;  %p42_p2 = scmp.eq.s32.totalorder %s3720_s24, 0 }
   0xf   : > { %p302_p3 = scmp.eq.s32.totalorder %s3834_s25, 1  ;;  %p307_p4 = scmp.ne.s32.totalorder %s3712_s22, %s3708_s21 }
  0x10   : > { %s3850_s30 = scalar_select %p32_p1, %s3716_s23, %s34_s28  }
  0x11   : > { %p3852_p5 = por %p42_p2, %p41_p0  ;;  %p3856_p6 = por %p302_p3, %p41_p0 }
  0x12   : > { %5451 = sst [smem:[#allocation16_spill]] %s3850_s30  ;;  %p308_p7 = scmp.eq.s32.totalorder %s3096_s26, 1 }
  0x13   : > { %s5452_s13 = scalar_select %p3852_p5, 1, 0 }
  0x14   : > { %s5453_s14 = scalar_select %p3856_p6, 1, 0 }
  0x15   : > { %p3097_p8 = scmp.ge.s32.totalorder %s3720_s24, 1  ;;  %p315_p9 = scmp.lt.s32.totalorder %s3720_s24, 3 }
  0x16   : > { %5454 = sst [smem:[#allocation17_spill]] %s5453_s14  ;;  %p3862_p10 = por %p308_p7, %p307_p4 }
  0x17   : > { %p5406_p11 = scmp.eq.s32.totalorder %s3834_s25, 0  ;;  %p3867_p12 = pnand %p3097_p8, %p315_p9 }
  0x18   : > { %s5455_s15 = scalar_select %p3862_p10, 1, 0 }
  0x19   : > { %s5457_s16 = scalar_select %p3867_p12, 1, 0 }
  0x1a   : > { %5456 = sst [smem:[#allocation18_spill]] %s5455_s15  ;;  %p3243_p13 = pneg %p3867_p12 }
  0x1b   : > { %s3722_s17 = smov [#allocation7]   ;;  %s3723_s20 = smov [#allocation4]  }
  0x1c   : > { %s346_s18 = sshll.u32 %s3722_s17, 4  ;;  %p3877_p0 = pnand %p5406_p11, %p3243_p13  ;;  %s3873_s18 = int_to_ptr.vmem [resolvable:$true] %s346_s18 }
  0x1d   : > { %s333_s26 = sshll.u32 %s3723_s20, 4  ;;  %s3724_s28 = smov [#allocation9]   ;;  %s3881_s26 = int_to_ptr.vmem [resolvable:$true] %s333_s26 }
  0x1e   : > { %s3883_s29 = sshll.u32 %s3724_s28, 4  ;;  %s3566_s15 = scalar_lea.hbm %s5392_s4, 1024  ;;  %s363_s29 = int_to_ptr.vmem [resolvable:$true] %s3883_s29 }
  0x1f   : > { %p3567_p1 = scmp.ne.s32.totalorder %s5392_s4, %s3566_s15  ;;  %p3893_p2 = pneg %p3877_p0 }
  0x20   : > { %p3573_p7 = scmp.lt.u32.totalorder %s3566_s15, %s5392_s4 }
  0x21   : > { %p3569_p3 = pnand %p3893_p2, %p3567_p1 }
  0x23   : > { %p3570_p4 = pneg %p3569_p3 }
  0x25   : > { %p3575_p8 = pnand %p3573_p7, %p3570_p4 }
  0x27   : > { %3578 = shalt.err (!%p3575_p8)
}
  0x28   : > { %s3579_s21 = scalar_lea.vmem %s3873_s18, 1024  ;;  %p3587_p10 = scmp.lt.s32.totalorder %s3873_s18, %s3873_s18 }
  0x29   : > { %p3580_p9 = scmp.ne.s32.totalorder %s3873_s18, %s3579_s21  ;;  %p3588_p6 = scmp.lt.s32.totalorder %s3579_s21, %s3579_s21 }
  0x2b   : > { %p3582_p13 = pnand %p3580_p9, %p3893_p2  ;;  %p3589_p1 = por %p3588_p6, %p3587_p10 }
  0x2d   : > { %p3583_p11 = pneg %p3582_p13 }
  0x2f   : > { %p3590_p3 = pnand %p3589_p1, %p3583_p11 }
  0x31   : > { %3593 = shalt.err (!%p3590_p3)
}
  0x32   : > { %s3725_s27 = smov 128   ;;  %s3726_s30 = smov 8  }
  0x33   : > { %3249 = dma.hbm_to_vmem [thread:$0]  (!%p3877_p0), %s5392_s4, 1024, %s3873_s18, [#allocation8], %s3725_s27, %s3725_s27, %s3726_s30  }
  0x34   : > { %s3594_s21 = scalar_lea.hbm %s5391_s3, 1024 }
  0x35   : > { %p3595_p6 = scmp.ne.s32.totalorder %s5391_s3, %s3594_s21  ;;  %p3601_p4 = scmp.lt.u32.totalorder %s3594_s21, %s5391_s3 }
  0x37   : > { %p3597_p10 = pnand %p3595_p6, %p3893_p2 }
  0x39   : > { %p3598_p11 = pneg %p3597_p10 }
  0x3b   : > { %p3603_p7 = pnand %p3601_p4, %p3598_p11 }
  0x3d   : > { %3606 = shalt.err (!%p3603_p7)
}
  0x3e   : > { %s3607_s18 = scalar_lea.vmem %s3881_s26, 1024  ;;  %p3615_p1 = scmp.lt.s32.totalorder %s3881_s26, %s3881_s26 }
  0x3f   : > { %p3608_p8 = scmp.ne.s32.totalorder %s3881_s26, %s3607_s18  ;;  %p3616_p3 = scmp.lt.s32.totalorder %s3607_s18, %s3607_s18 }
  0x41   : > { %p3610_p9 = pnand %p3608_p8, %p3893_p2  ;;  %p3617_p6 = por %p3616_p3, %p3615_p1 }
  0x43   : > { %p3611_p13 = pneg %p3610_p9 }
  0x45   : > { %p3618_p10 = pnand %p3617_p6, %p3611_p13 }
  0x47   : > { %3621 = shalt.err (!%p3618_p10)
}
  0x48   : > { %3246 = dma.hbm_to_vmem [thread:$0]  (!%p3877_p0), %s5391_s3, 1024, %s3881_s26, [#allocation5], %s3725_s27, %s3725_s27, %s3726_s30  }
  0x49   : > { %s3622_s15 = scalar_lea.hbm %s5394_s6, 1024 }
  0x4a   : > { %p3623_p11 = scmp.ne.s32.totalorder %s5394_s6, %s3622_s15  ;;  %p3629_p8 = scmp.lt.u32.totalorder %s3622_s15, %s5394_s6 }
  0x4c   : > { %p3625_p4 = pnand %p3623_p11, %p3893_p2 }
  0x4e   : > { %p3626_p7 = pneg %p3625_p4 }
  0x50   : > { %p3631_p9 = pnand %p3629_p8, %p3626_p7 }
  0x52   : > { %3634 = shalt.err (!%p3631_p9)
}
  0x53   : > { %s3635_s18 = scalar_lea.vmem %s363_s29, 1024  ;;  %p3643_p6 = scmp.lt.s32.totalorder %s363_s29, %s363_s29 }
  0x54   : > { %p3636_p13 = scmp.ne.s32.totalorder %s363_s29, %s3635_s18  ;;  %p3644_p10 = scmp.lt.s32.totalorder %s3635_s18, %s3635_s18 }
  0x56   : > { %p3638_p1 = pnand %p3636_p13, %p3893_p2  ;;  %p3645_p12 = por %p3644_p10, %p3643_p6 }
  0x58   : > { %p3639_p3 = pneg %p3638_p1 }
  0x5a   : > { %p3646_p5 = pnand %p3645_p12, %p3639_p3 }
  0x5c   : > { %3649 = shalt.err (!%p3646_p5)
}
  0x5d   : > { %3252 = dma.hbm_to_vmem [thread:$0]  (!%p3877_p0), %s5394_s6, 1024, %s363_s29, [#allocation8], %s3725_s27, %s3725_s27, %s3726_s30  }
  0x5e   : > { %p3101_p11 = scmp.ge.s32.totalorder %s3720_s24, 2 }
  0x5f   : > { %p5460_p2 = scmp.ne.s32.totalorder (!%p3101_p11), %s5452_s13, 0 }
  0x60   : > { %387 = sbr.rel (%p3101_p11) target bundleno = 111 (0x6f), region = 60 }
  0x67   : > { %390 = sbr.rel (!%p5460_p2) target bundleno = 111 (0x6f), region = 64  ;;  %s392_s12 = sand.u32 (%p5460_p2), 1, %s3716_s23  }
  0x68   : > { %s3103_s10 = sshll.u32 (%p5460_p2), %s3720_s24, 3  ;;  %s3102_s19 = sshll.u32 (%p5460_p2), %s392_s12, 6 }
  0x69   : > { %s396_s15 = scalar_lea.vmem (%p5460_p2), %s5388_s0, %s3103_s10  ;;  %s394_s29 = scalar_lea.vmem (%p5460_p2), [#allocation3], %s3102_s19 }
  0x6a   : > { %v438_v0 = vld [vmem:[%s396_s15] sm:$0xff] (%p5460_p2)  ;;  %v440_v1 = vld [vmem:[%s396_s15 + $0x10] sm:$0xff] (%p5460_p2) }
  0x6b   : > { %v442_v2 = vld [vmem:[%s396_s15 + $0x20] sm:$0xff] (%p5460_p2)  ;;  %439 = vst [vmem:[%s394_s29] sm:$0xff] (%p5460_p2), %v438_v0  ;;  %441 = vst [vmem:[%s394_s29 + $0x8] sm:$0xff] (%p5460_p2), %v440_v1  ;;  %v444_v3 = vld [vmem:[%s396_s15 + $0x30] sm:$0xff] (%p5460_p2) }
  0x6c   : > { %443 = vst [vmem:[%s394_s29 + $0x10] sm:$0xff] (%p5460_p2), %v442_v2  ;;  %v446_v4 = vld [vmem:[%s396_s15 + $0x40] sm:$0xff] (%p5460_p2)  ;;  %v448_v5 = vld [vmem:[%s396_s15 + $0x50] sm:$0xff] (%p5460_p2)  ;;  %445 = vst [vmem:[%s394_s29 + $0x18] sm:$0xff] (%p5460_p2), %v444_v3 }
  0x6d   : > { %447 = vst [vmem:[%s394_s29 + $0x20] sm:$0xff] (%p5460_p2), %v446_v4  ;;  %449 = vst [vmem:[%s394_s29 + $0x28] sm:$0xff] (%p5460_p2), %v448_v5  ;;  %v450_v6 = vld [vmem:[%s396_s15 + $0x60] sm:$0xff] (%p5460_p2)  ;;  %v452_v7 = vld [vmem:[%s396_s15 + $0x70] sm:$0xff] (%p5460_p2) }
  0x6e   : > { %451 = vst [vmem:[%s394_s29 + $0x30] sm:$0xff] %v450_v6  ;;  %453 = vst [vmem:[%s394_s29 + $0x38] sm:$0xff] %v452_v7 }
  0x6f PF: > { %p5461_p5 = scmp.ne.s32.totalorder %s5457_s16, 0 }
  0x71   : > { %462 = sbr.rel (%p5461_p5) target bundleno = 4991 (0x137f), region = 102 }
  0x78   : > { %s3978_s13 = sand.u32 1, %s3712_s22   ;;  %p5462_p12 = scmp.eq.s32.totalorder %s3834_s25, 0 }
  0x79   : > { %s3105_s27 = sshll.u32 %s3978_s13, 6 }
  0x7a   : > { %s3981_s30 = scalar_lea.vmem [#allocation3], %s3105_s27 }
  0x7b   : > { %3695 = dma.done.wait (%p5462_p12), [#allocation5], 1024   ;;  %p5463_p0 = pmov %p5462_p12 }
  0x7d   : > { %3697 = vsyncadd (%p5463_p0), [#allocation5], 4294966272  ;;  %p5464_p4 = pmov %p5463_p0 }
  0x7e   : > { %p5465_p7 = pmov %p5463_p0 }
  0x7f   : > { %3699 = dma.done.wait (%p5464_p4), [#allocation8], 2048  }
  0x80   : > { %3701 = vsyncadd (%p5465_p7), [#allocation8], 4294965248  ;;  %v3727_v8 = vmov 1   ;;  %v5430_v9 = vmov 0   ;;  %v3996_v10 = vld [vmem:[%s3981_s30] sm:$0xff]  ;;  %v3999_v11 = vld [vmem:[%s3981_s30 + $0x8] sm:$0xff]  ;;  %v568_v52 = vlaneseq }
  0x81   : > { %3322 = vset.pattern.permute.xlu1 %v3727_v8  ;;  %3321 = vset.pattern.permute.xlu0 %v5430_v9  ;;  %v3729_v12 = vmov 2   ;;  %v3730_v13 = vmov 3   ;;  %v5434_v14 = vmov 4   ;;  %v5433_v15 = vmov 5   ;;  %v4058_v26 = vld [vmem:[#allocation7 + $0x4] ss:$8 sps:$4 sm:$0xff]  }
  0x82   : > { %2070 = vmatprep.mubr.bf16.mxu1 %v5430_v9  ;;  %1928 = vmatprep.mubr.bf16.mxu0 %v5430_v9  ;;  %v5432_v16 = vmov 6   ;;  %v5424_v17 = vmov 8   ;;  %v5420_v18 = vmov 9   ;;  %v5426_v19 = vmov 7   ;;  %v3420_v27 = vld [vmem:[#allocation4 + $0x4] ss:$8 sps:$4 sm:$0xff]  }
  0x83   : > { %581 = vperm.xlu1 %3322, %v3996_v10   ;;  %530 = vperm.xlu0 %3321, %v3996_v10   ;;  %v5437_v20 = vmov 11   ;;  %v5414_v21 = vmov 12   ;;  %v5428_v22 = vmov 14   ;;  %v5416_v23 = vmov 15   ;;  %v4060_v28 = vld [vmem:[#allocation7] ss:$8 sps:$4 sm:$0xff]  }
  0x84   : > { %v5418_v24 = vmov 10   ;;  %v5412_v25 = vmov 13   ;;  %2038 = vmatprep.subr.bf16.mxu1 %v4058_v26  ;;  %v3423_v29 = vld [vmem:[#allocation4] ss:$8 sps:$4 sm:$0xff]   ;;  %v5422_v30 = vmov 16   ;;  %1896 = vmatprep.subr.bf16.mxu0 %v3420_v27  ;;  %v569_v54 = vshrl.u32 %v568_v52, 7 }
  0x85   : > { %2039 = vmatpush1.bf16.msra.mxu1 %v4060_v28  ;;  %v4066_v31 = vld [vmem:[#allocation7 + $0x14] ss:$8 sps:$4 sm:$0xff]   ;;  %1897 = vmatpush1.bf16.msra.mxu0 %v3423_v29  ;;  %v4068_v33 = vld [vmem:[#allocation7 + $0x10] ss:$8 sps:$4 sm:$0xff]   ;;  %v4073_v35 = vld [vmem:[#allocation7 + $0x24] ss:$8 sps:$4 sm:$0xff]  }
  0x86   : > { %v3426_v32 = vld [vmem:[#allocation4 + $0x14] ss:$8 sps:$4 sm:$0xff]   ;;  %2040 = vmatprep.subr.bf16.mxu1 %v4066_v31  ;;  %v3429_v34 = vld [vmem:[#allocation4 + $0x10] ss:$8 sps:$4 sm:$0xff]   ;;  %v3432_v36 = vld [vmem:[#allocation4 + $0x24] ss:$8 sps:$4 sm:$0xff]  }
  0x87   : > { %585 = vperm.xlu1 %3322, %v3999_v11   ;;  %535 = vperm.xlu0 %3321, %v3999_v11   ;;  %v4075_v37 = vld [vmem:[#allocation7 + $0x20] ss:$8 sps:$4 sm:$0xff]   ;;  %v4079_v39 = vld [vmem:[#allocation7 + $0x34] ss:$8 sps:$4 sm:$0xff]   ;;  %v4082_v41 = vld [vmem:[#allocation7 + $0x30] ss:$8 sps:$4 sm:$0xff]  }
  0x88   : > { %1898 = vmatprep.subr.bf16.mxu0 %v3426_v32  ;;  %v3435_v38 = vld [vmem:[#allocation4 + $0x20] ss:$8 sps:$4 sm:$0xff]   ;;  %v3438_v40 = vld [vmem:[#allocation4 + $0x34] ss:$8 sps:$4 sm:$0xff]   ;;  %v3441_v42 = vld [vmem:[#allocation4 + $0x30] ss:$8 sps:$4 sm:$0xff]  }
  0x89   : > { %2041 = vmatpush1.bf16.msra.mxu1 %v4068_v33  ;;  %1899 = vmatpush1.bf16.msra.mxu0 %v3429_v34  ;;  %v4110_v57 = vsub.s32 1, %v569_v54  ;;  %v527_v58 = vld [vmem:[%s5389_s1] sm:$0x7]  ;;  %v4115_v59 = vsub.s32 0, %v569_v54  ;;  %v666_v60 = vsub.s32 2, %v569_v54  ;;  %vm1883_vm0 = vcmask 523264  }
  0x8a   : > { %2042 = vmatprep.subr.bf16.mxu1 %v4073_v35  ;;  %1900 = vmatprep.subr.bf16.mxu0 %v3432_v36  ;;  %s3744_s26 = smov 64   ;;  %s5503_s14 = sld [smem:[#allocation30_spill]]  ;;  %vm3746_vm1 = vmmov 0   ;;  %vm2941_vm2 = vcmask 261120  }
  0x8b   : > { %3324 = vset.pattern.permute.xlu1 %v3729_v12  ;;  %3323 = vset.pattern.permute.xlu0 %v3729_v12  ;;  %5466 = vst [vmem:[#allocation19_spill] sm:$0xff] %v4110_v57  ;;  %5467 = vst [vmem:[#allocation20_spill] sm:$0xff] %v4115_v59  ;;  %v4120_v63 = vrot.slane %v527_v58, %v4110_v57  ;;  %v4123_v0 = vrot.slane %v527_v58, %v4115_v59  ;;  %s3109_s16 = sshll.u32 %s3978_s13, 3  ;;  %s5505_s28 = sld [smem:[#allocation31_spill]] }
  0x8c   : > { %637 = vperm.xlu1 %3324, %v3999_v11   ;;  %633 = vperm.xlu0 %3323, %v3996_v10   ;;  %v4125_v1 = vrot.slane %v527_v58, %v666_v60  ;;  %s5506_s21 = sld [smem:[#allocation17_spill]]  ;;  %s3193_s18 = sshll.u32 %s3834_s25, 7 }
  0x8d   : > { %2043 = vmatpush1.bf16.msra.mxu1 %v4075_v37  ;;  %1901 = vmatpush1.bf16.msra.mxu0 %v3435_v38  ;;  %s517_s9 = scalar_lea.vmem [#allocation10], %s3109_s16  ;;  %s5507_s11 = sld [smem:[#allocation32_spill]] }
  0x8e   : > { %2044 = vmatprep.subr.bf16.mxu1 %v4079_v39  ;;  %1902 = vmatprep.subr.bf16.mxu0 %v3438_v40  ;;  %s3000_s12 = sshll.u32 %s517_s9, 4  ;;  %s2987_s29 = scalar_lea.sflag [#allocation6], %s3978_s13  ;;  %s5346_s12 = int_to_ptr.vmem [resolvable:$true] %s3000_s12 }
  0x8f   : > { %s3650_s25 = scalar_lea.vmem %s5346_s12, 128  ;;  %s3747_s27 = smov [#allocation10]  }
  0x90   : > { %3325 = vset.pattern.permute.xlu1 %v3730_v13  ;;  %3326 = vset.pattern.permute.xlu0 %v3730_v13  ;;  %p3651_p8 = scmp.ne.s32.totalorder %s5346_s12, %s3650_s25 }
  0x91   : > { %709 = vperm.xlu1 %3325, %v3996_v10   ;;  %713 = vperm.xlu0 %3326, %v3999_v11  }
  0x92   : > { %2045 = vmatpush1.bf16.msra.mxu1 %v4082_v41  ;;  %1903 = vmatpush1.bf16.msra.mxu0 %v3441_v42  ;;  %p5508_p9 = scmp.ne.s32.totalorder %s5506_s21, 0 }
  0x93   : > { %2113 = vmatprep.subr.bf16.mxu1 %v4058_v26  ;;  %2188 = vmatprep.subr.bf16.mxu0 %v4058_v26  ;;  %s5344_s15 = scalar_lea.hbm %s5507_s11, %s3193_s18 }
  0x94   : > { %p3652_p13 = pnand %p3651_p8, %p5508_p9 }
  0x95   : > { %3327 = vset.pattern.permute.xlu1 %v5434_v14  ;;  %3328 = vset.pattern.permute.xlu0 %v5433_v15 }
  0x96   : > { %789 = vperm.xlu1 %3327, %v3996_v10   ;;  %869 = vperm.xlu0 %3328, %v3996_v10   ;;  %p3653_p1 = pneg %p3652_p13 }
  0x97   : > { %2071 = vmatmul.mubr.bf16.vlgmr.msra.gmra.mrb[0].mxu1 %v5430_v9 }
  0x98   : > { %2114 = vmatpush1.bf16.msra.mxu1 %v4060_v28  ;;  %2145 = vmatprep.mubr.bf16.mxu1 %v5430_v9 }
  0x99   : > { %2115 = vmatprep.subr.bf16.mxu1 %v4066_v31 }
  0x9a   : > { %793 = vperm.xlu1 %3327, %v3999_v11   ;;  %3331 = vset.pattern.permute.xlu0 %v5432_v16 }
  0x9b   : > { %953 = vperm.xlu0 %3331, %v3999_v11  }
  0x9c   : > { %2116 = vmatpush1.bf16.msra.mxu1 %v4068_v33 }
  0x9d   : > { %2117 = vmatprep.subr.bf16.mxu1 %v4073_v35 }
  0x9e   : > { %3329 = vset.pattern.permute.xlu1 %v5433_v15 }
  0x9f   : > { %873 = vperm.xlu1 %3329, %v3999_v11   ;;  %3333 = vset.pattern.permute.xlu0 %v5424_v17 }
  0xa0   : > { %1109 = vperm.xlu0 %3333, %v3996_v10   ;;  %2118 = vmatpush1.bf16.msra.mxu1 %v4075_v37 }
  0xa1   : > { %2119 = vmatprep.subr.bf16.mxu1 %v4079_v39 }
  0xa3   : > { %3330 = vset.pattern.permute.xlu1 %v5432_v16 }
  0xa4   : > { %949 = vperm.xlu1 %3330, %v3996_v10   ;;  %3336 = vset.pattern.permute.xlu0 %v5420_v18 }
  0xa5   : > { %1193 = vperm.xlu0 %3336, %v3999_v11   ;;  %2120 = vmatpush1.bf16.msra.mxu1 %v4082_v41 }
  0xa6   : > { %2263 = vmatprep.subr.bf16.mxu1 %v4058_v26 }
  0xa8   : > { %3332 = vset.pattern.permute.xlu1 %v5426_v19 }
  0xa9   : > { %1029 = vperm.xlu1 %3332, %v3996_v10   ;;  %3338 = vset.pattern.permute.xlu0 %v5437_v20 }
  0xaa   : > { %1349 = vperm.xlu0 %3338, %v3996_v10  }
  0xad   : > { %1033 = vperm.xlu1 %3332, %v3999_v11  }
  0xae   : > { %3341 = vset.pattern.permute.xlu0 %v5414_v21 }
  0xaf   : > { %1433 = vperm.xlu0 %3341, %v3999_v11  }
  0xb1   : > { %3334 = vset.pattern.permute.xlu1 %v5424_v17 }
  0xb2   : > { %1113 = vperm.xlu1 %3334, %v3999_v11  }
  0xb3   : > { %3343 = vset.pattern.permute.xlu0 %v5428_v22 }
  0xb4   : > { %1589 = vperm.xlu0 %3343, %v3996_v10  }
  0xb6   : > { %3335 = vset.pattern.permute.xlu1 %v5420_v18 }
  0xb7   : > { %1189 = vperm.xlu1 %3335, %v3996_v10  }
  0xb8   : > { %3346 = vset.pattern.permute.xlu0 %v5416_v23 }
  0xb9   : > { %1673 = vperm.xlu0 %3346, %v3999_v11  }
  0xbb   : > { %3337 = vset.pattern.permute.xlu1 %v5418_v24 }
  0xbc   : > { %1269 = vperm.xlu1 %3337, %v3996_v10  }
  0xbd   : > { %3349 = vset.pattern.permute.xlu0 %v5430_v9 }
  0xc0   : > { %1273 = vperm.xlu1 %3337, %v3999_v11  }
  0xc4   : > { %3339 = vset.pattern.permute.xlu1 %v5437_v20 }
  0xc5   : > { %1353 = vperm.xlu1 %3339, %v3999_v11  }
  0xc9   : > { %3340 = vset.pattern.permute.xlu1 %v5414_v21 }
  0xca   : > { %1429 = vperm.xlu1 %3340, %v3996_v10  }
  0xce   : > { %3342 = vset.pattern.permute.xlu1 %v5412_v25 }
  0xcf   : > { %1509 = vperm.xlu1 %3342, %v3996_v10  }
  0xd3   : > { %1513 = vperm.xlu1 %3342, %v3999_v11  }
  0xd7   : > { %3344 = vset.pattern.permute.xlu1 %v5428_v22 }
  0xd8   : > { %1593 = vperm.xlu1 %3344, %v3999_v11  }
  0xdc   : > { %3345 = vset.pattern.permute.xlu1 %v5416_v23 }
  0xdd   : > { %1669 = vperm.xlu1 %3345, %v3996_v10  }
  0xe1   : > { %3347 = vset.pattern.permute.xlu1 %v5422_v30 }
  0xe2   : > { %1749 = vperm.xlu1 %3347, %v3996_v10  }
  0xe6   : > { %1753 = vperm.xlu1 %3347, %v3999_v11  }
  0xea   : > { %3348 = vset.pattern.permute.xlu1 %v5430_v9 }
 0x102   : > { %v582_v43 = vpop.permute.xlu1 %581  ;;  %v531_v51 = vpop.permute.xlu0 %530 }
 0x103   : > { %v616_v3 = vmul.f32 %v4120_v63, %v582_v43  ;;  %v684_v7 = vmul.f32 %v582_v43, %v4123_v0  ;;  %v572_v10 = vmul.f32 %v4123_v0, %v531_v51 }
 0x106   : > { %v586_v44 = vpop.permute.xlu1 %585  ;;  %v536_v55 = vpop.permute.xlu0 %535 }
 0x107   : > { %v617_v11 = vmul.f32 %v4120_v63, %v586_v44  ;;  %v685_v27 = vmul.f32 %v586_v44, %v4123_v0  ;;  %v573_v29 = vmul.f32 %v4123_v0, %v536_v55 }
 0x10b   : > { %v638_v45 = vpop.permute.xlu1 %637  ;;  %v634_v61 = vpop.permute.xlu0 %633 }
 0x10c   : > { %v693_v4 = vmul.f32 %v638_v45, %v4120_v63  ;;  %v692_v5 = vmul.f32 %v634_v61, %v4120_v63  ;;  %v669_v32 = vmul.f32 %v4125_v1, %v638_v45  ;;  %v765_v34 = vmul.f32 %v638_v45, %v4123_v0 }
 0x10d   : > { %v764_v38 = vmul.f32 %v634_v61, %v4123_v0  ;;  %v668_v52 = vmul.f32 %v4125_v1, %v634_v61 }
 0x10e   : > { %v701_v51 = vadd.f32 %v693_v4, %v685_v27  ;;  %v700_v44 = vadd.f32 %v692_v5, %v684_v7  ;;  %v624_v4 = vadd.f32 %v616_v3, %v572_v10  ;;  %v625_v27 = vadd.f32 %v617_v11, %v573_v29 }
 0x110   : > { %v710_v46 = vpop.permute.xlu1 %709  ;;  %v714_v6 = vpop.permute.xlu0 %713  ;;  %v677_v18 = vadd.f32 %v669_v32, %v625_v27  ;;  %v676_v30 = vadd.f32 %v668_v52, %v624_v4 }
 0x111   : > { %v740_v36 = vmul.f32 %v710_v46, %v4125_v1  ;;  %v772_v40 = vmul.f32 %v710_v46, %v4120_v63  ;;  %v741_v42 = vmul.f32 %v714_v6, %v4125_v1  ;;  %v773_v43 = vmul.f32 %v714_v6, %v4120_v63 }
 0x112   : > { %v845_v54 = vmul.f32 %v714_v6, %v4123_v0  ;;  %v844_v5 = vmul.f32 %v710_v46, %v4123_v0 }
 0x113   : > { %v748_v61 = vadd.f32 %v740_v36, %v700_v44  ;;  %v780_v7 = vadd.f32 %v772_v40, %v764_v38  ;;  %v749_v21 = vadd.f32 %v741_v42, %v701_v51  ;;  %v781_v23 = vadd.f32 %v773_v43, %v765_v34 }
 0x115   : > { %v4098_v47 = vpop.permute.xlu1 %789  ;;  %v870_v6 = vpop.permute.xlu0 %869  ;;  %v756_v38 = vmax.f32 %v676_v30, %v748_v61  ;;  %v757_v40 = vmax.f32 %v677_v18, %v749_v21 }
 0x116   : > { %v820_v45 = vmul.f32 %v4098_v47, %v4125_v1  ;;  %v852_v58 = vmul.f32 %v4098_v47, %v4120_v63  ;;  %v900_v17 = vmul.f32 %v870_v6, %v4125_v1  ;;  %v924_v29 = vmul.f32 %v4098_v47, %v4123_v0 }
 0x117   : > { %v932_v34 = vmul.f32 %v870_v6, %v4120_v63  ;;  %v1004_v42 = vmul.f32 %v870_v6, %v4123_v0 }
 0x118   : > { %v828_v3 = vadd.f32 %v820_v45, %v780_v7  ;;  %v860_v10 = vadd.f32 %v852_v58, %v844_v5 }
 0x119   : > { %v4100_v48 = vpop.permute.xlu1 %793 }
 0x11a   : > { %v821_v60 = vmul.f32 %v4100_v48, %v4125_v1  ;;  %v853_v25 = vmul.f32 %v4100_v48, %v4120_v63  ;;  %v925_v32 = vmul.f32 %v4100_v48, %v4123_v0  ;;  %v954_v36 = vpop.permute.xlu0 %953  ;;  %v836_v47 = vmax.f32 %v756_v38, %v828_v3 }
 0x11b   : > { %v981_v52 = vmul.f32 %v954_v36, %v4125_v1  ;;  %v908_v44 = vadd.f32 %v900_v17, %v860_v10  ;;  %v940_v48 = vadd.f32 %v932_v34, %v924_v29  ;;  %v1013_v58 = vmul.f32 %v954_v36, %v4120_v63 }
 0x11c   : > { %v829_v11 = vadd.f32 %v821_v60, %v781_v23  ;;  %v861_v46 = vadd.f32 %v853_v25, %v845_v54  ;;  %v1085_v60 = vmul.f32 %v954_v36, %v4123_v0 }
 0x11d   : > { %v916_v5 = vmax.f32 %v836_v47, %v908_v44 }
 0x11e   : > { %v4102_v49 = vpop.permute.xlu1 %873  ;;  %v837_v54 = vmax.f32 %v757_v40, %v829_v11 }
 0x11f   : > { %v901_v24 = vmul.f32 %v4102_v49, %v4125_v1  ;;  %v933_v19 = vmul.f32 %v4102_v49, %v4120_v63  ;;  %v1110_v21 = vpop.permute.xlu0 %1109 }
 0x120   : > { %v1140_v6 = vmul.f32 %v1110_v21, %v4125_v1 }
 0x121   : > { %v909_v43 = vadd.f32 %v901_v24, %v861_v46  ;;  %v941_v51 = vadd.f32 %v933_v19, %v925_v32  ;;  %v1005_v24 = vmul.f32 %v4102_v49, %v4123_v0  ;;  %v1172_v46 = vmul.f32 %v1110_v21, %v4120_v63 }
 0x123   : > { %v4104_v50 = vpop.permute.xlu1 %949  ;;  %v917_v30 = vmax.f32 %v837_v54, %v909_v43  ;;  %v989_v17 = vadd.f32 %v981_v52, %v941_v51 }
 0x124   : > { %v980_v23 = vmul.f32 %v4104_v50, %v4125_v1  ;;  %v1012_v25 = vmul.f32 %v4104_v50, %v4120_v63  ;;  %v1084_v61 = vmul.f32 %v4104_v50, %v4123_v0  ;;  %v1194_v29 = vpop.permute.xlu0 %1193  ;;  %v1021_v50 = vadd.f32 %v1013_v58, %v1005_v24 }
 0x125   : > { %v997_v38 = vmax.f32 %v917_v30, %v989_v17  ;;  %v1221_v54 = vmul.f32 %v1194_v29, %v4125_v1  ;;  %v1253_v58 = vmul.f32 %v1194_v29, %v4120_v63 }
 0x126   : > { %v988_v4 = vadd.f32 %v980_v23, %v940_v48  ;;  %v1020_v27 = vadd.f32 %v1012_v25, %v1004_v42  ;;  %v1244_v42 = vmul.f32 %v1110_v21, %v4123_v0 }
 0x128   : > { %v4106_v53 = vpop.permute.xlu1 %1029  ;;  %v996_v40 = vmax.f32 %v916_v5, %v988_v4 }
 0x129   : > { %v1060_v18 = vmul.f32 %v4106_v53, %v4125_v1  ;;  %v1092_v19 = vmul.f32 %v4106_v53, %v4120_v63  ;;  %v1164_v10 = vmul.f32 %v4106_v53, %v4123_v0  ;;  %v1350_v48 = vpop.permute.xlu0 %1349 }
 0x12a   : > { %v1380_v17 = vmul.f32 %v1350_v48, %v4125_v1 }
 0x12b   : > { %v1068_v3 = vadd.f32 %v1060_v18, %v1020_v27  ;;  %v1100_v11 = vadd.f32 %v1092_v19, %v1084_v61  ;;  %v1180_v44 = vadd.f32 %v1172_v46, %v1164_v10 }
 0x12c   : > { %v4108_v56 = vpop.permute.xlu1 %1033 }
 0x12d   : > { %v1061_v7 = vmul.f32 %v4108_v56, %v4125_v1  ;;  %v1093_v49 = vmul.f32 %v4108_v56, %v4120_v63  ;;  %v1165_v53 = vmul.f32 %v4108_v56, %v4123_v0  ;;  %v1076_v25 = vmax.f32 %v996_v40, %v1068_v3 }
 0x12e   : > { %v1148_v47 = vadd.f32 %v1140_v6, %v1100_v11  ;;  %v1434_v3 = vpop.permute.xlu0 %1433 }
 0x12f   : > { %v1069_v43 = vadd.f32 %v1061_v7, %v1021_v50  ;;  %v1101_v51 = vadd.f32 %v1093_v49, %v1085_v60  ;;  %v1325_v60 = vmul.f32 %v1194_v29, %v4123_v0  ;;  %v1412_v7 = vmul.f32 %v1350_v48, %v4120_v63 }
 0x130   : > { %v1156_v6 = vmax.f32 %v1076_v25, %v1148_v47 }
 0x131   : > { %v4117_v62 = vpop.permute.xlu1 %1113  ;;  %v1077_v4 = vmax.f32 %v997_v38, %v1069_v43  ;;  %v1493_v43 = vmul.f32 %v1434_v3, %v4120_v63 }
 0x132   : > { %v1141_v32 = vmul.f32 %v4117_v62, %v4125_v1  ;;  %v1173_v36 = vmul.f32 %v4117_v62, %v4120_v63  ;;  %v1245_v30 = vmul.f32 %v4117_v62, %v4123_v0 }
 0x134   : > { %v1149_v18 = vadd.f32 %v1141_v32, %v1101_v51  ;;  %v1181_v19 = vadd.f32 %v1173_v36, %v1165_v53  ;;  %v1261_v32 = vadd.f32 %v1253_v58, %v1245_v30  ;;  %v1461_v53 = vmul.f32 %v1434_v3, %v4125_v1 }
 0x135   : > { %v1565_v58 = vmul.f32 %v1434_v3, %v4123_v0 }
 0x136   : > { %v4127_v2 = vpop.permute.xlu1 %1189  ;;  %v1157_v10 = vmax.f32 %v1077_v4, %v1149_v18  ;;  %v1229_v11 = vadd.f32 %v1221_v54, %v1181_v19  ;;  %v1590_v18 = vpop.permute.xlu0 %1589 }
 0x137   : > { %v1220_v52 = vmul.f32 %v4127_v2, %v4125_v1  ;;  %v1252_v23 = vmul.f32 %v4127_v2, %v4120_v63  ;;  %v1324_v5 = vmul.f32 %v4127_v2, %v4123_v0  ;;  %v1620_v4 = vmul.f32 %v1590_v18, %v4125_v1 }
 0x138   : > { %v1237_v25 = vmax.f32 %v1157_v10, %v1229_v11 }
 0x139   : > { %v1228_v27 = vadd.f32 %v1220_v52, %v1180_v44  ;;  %v1260_v61 = vadd.f32 %v1252_v23, %v1244_v42  ;;  %v1484_v42 = vmul.f32 %v1350_v48, %v4123_v0 }
 0x13b   : > { %v4146_v55 = vpop.permute.xlu1 %1269  ;;  %v1236_v40 = vmax.f32 %v1156_v6, %v1228_v27 }
 0x13c   : > { %v1300_v21 = vmul.f32 %v4146_v55, %v4125_v1  ;;  %v1332_v56 = vmul.f32 %v4146_v55, %v4120_v63  ;;  %v1404_v36 = vmul.f32 %v4146_v55, %v4123_v0 }
 0x13e   : > { %v1308_v46 = vadd.f32 %v1300_v21, %v1260_v61  ;;  %v1340_v29 = vadd.f32 %v1332_v56, %v1324_v5  ;;  %v1420_v48 = vadd.f32 %v1412_v7, %v1404_v36  ;;  %v1652_v61 = vmul.f32 %v1590_v18, %v4120_v63 }
 0x13f   : > { %v4162_v22 = vpop.permute.xlu1 %1273 }
 0x140   : > { %v1301_v49 = vmul.f32 %v4162_v22, %v4125_v1  ;;  %v1333_v62 = vmul.f32 %v4162_v22, %v4120_v63  ;;  %v1405_v23 = vmul.f32 %v4162_v22, %v4123_v0  ;;  %v1316_v47 = vmax.f32 %v1236_v40, %v1308_v46 }
 0x141   : > { %v1388_v44 = vadd.f32 %v1380_v17, %v1340_v29  ;;  %v1724_v40 = vmul.f32 %v1590_v18, %v4123_v0 }
 0x142   : > { %v1309_v51 = vadd.f32 %v1301_v49, %v1261_v32  ;;  %v1341_v52 = vadd.f32 %v1333_v62, %v1325_v60 }
 0x143   : > { %v1396_v6 = vmax.f32 %v1316_v47, %v1388_v44 }
 0x144   : > { %v4175_v45 = vpop.permute.xlu1 %1353  ;;  %v1317_v17 = vmax.f32 %v1237_v25, %v1309_v51 }
 0x145   : > { %v1381_v2 = vmul.f32 %v4175_v45, %v4125_v1  ;;  %v1413_v38 = vmul.f32 %v4175_v45, %v4120_v63  ;;  %v1485_v21 = vmul.f32 %v4175_v45, %v4123_v0 }
 0x147   : > { %v1389_v19 = vadd.f32 %v1381_v2, %v1341_v52  ;;  %v1421_v56 = vadd.f32 %v1413_v38, %v1405_v23  ;;  %v1501_v10 = vadd.f32 %v1493_v43, %v1485_v21  ;;  %v1674_v52 = vpop.permute.xlu0 %1673 }
 0x148   : > { %v1733_v18 = vmul.f32 %v1674_v52, %v4120_v63 }
 0x149   : > { %v4195_v34 = vpop.permute.xlu1 %1429  ;;  %v1397_v62 = vmax.f32 %v1317_v17, %v1389_v19  ;;  %v1469_v3 = vadd.f32 %v1461_v53, %v1421_v56 }
 0x14a   : > { %v1460_v55 = vmul.f32 %v4195_v34, %v4125_v1  ;;  %v1492_v54 = vmul.f32 %v4195_v34, %v4120_v63  ;;  %v1564_v45 = vmul.f32 %v4195_v34, %v4123_v0 }
 0x14c   : > { %v1468_v27 = vadd.f32 %v1460_v55, %v1420_v48  ;;  %v1500_v7 = vadd.f32 %v1492_v54, %v1484_v42  ;;  %v1701_v55 = vmul.f32 %v1674_v52, %v4125_v1 }
 0x14e   : > { %v1510_v24 = vpop.permute.xlu1 %1509  ;;  %v1476_v38 = vmax.f32 %v1396_v6, %v1468_v27 }
 0x14f   : > { %v1540_v22 = vmul.f32 %v1510_v24, %v4125_v1  ;;  %v1572_v60 = vmul.f32 %v1510_v24, %v4120_v63  ;;  %v1644_v11 = vmul.f32 %v1510_v24, %v4123_v0  ;;  %v1477_v24 = vmax.f32 %v1397_v62, %v1469_v3 }
 0x151   : > { %v1548_v46 = vadd.f32 %v1540_v22, %v1500_v7  ;;  %v1580_v29 = vadd.f32 %v1572_v60, %v1564_v45  ;;  %v1660_v23 = vadd.f32 %v1652_v61, %v1644_v11 }
 0x152   : > { %v1514_v50 = vpop.permute.xlu1 %1513 }
 0x153   : > { %v1541_v5 = vmul.f32 %v1514_v50, %v4125_v1  ;;  %v1573_v49 = vmul.f32 %v1514_v50, %v4120_v63  ;;  %v1645_v34 = vmul.f32 %v1514_v50, %v4123_v0  ;;  %v1556_v25 = vmax.f32 %v1476_v38, %v1548_v46 }
 0x154   : > { %v1628_v47 = vadd.f32 %v1620_v4, %v1580_v29 }
 0x155   : > { %v1549_v42 = vadd.f32 %v1541_v5, %v1501_v10  ;;  %v1581_v51 = vadd.f32 %v1573_v49, %v1565_v58 }
 0x156   : > { %v1636_v22 = vmax.f32 %v1556_v25, %v1628_v47 }
 0x157   : > { %v1594_v30 = vpop.permute.xlu1 %1593  ;;  %v1557_v48 = vmax.f32 %v1477_v24, %v1549_v42 }
 0x158   : > { %v1621_v32 = vmul.f32 %v1594_v30, %v4125_v1  ;;  %v1653_v36 = vmul.f32 %v1594_v30, %v4120_v63  ;;  %v1725_v21 = vmul.f32 %v1594_v30, %v4123_v0  ;;  %v3110_v30 = vld [vmem:[%s5390_s2] ss:$0 sm:$0xff] }
 0x15a   : > { %v1629_v44 = vadd.f32 %v1621_v32, %v1581_v51  ;;  %v1661_v54 = vadd.f32 %v1653_v36, %v1645_v34  ;;  %v1741_v5 = vadd.f32 %v1733_v18, %v1725_v21 }
 0x15c   : > { %v1670_v2 = vpop.permute.xlu1 %1669  ;;  %v1637_v60 = vmax.f32 %v1557_v48, %v1629_v44  ;;  %v1709_v17 = vadd.f32 %v1701_v55, %v1661_v54 }
 0x15d   : > { %v1700_v53 = vmul.f32 %v1670_v2, %v4125_v1  ;;  %v1732_v43 = vmul.f32 %v1670_v2, %v4120_v63  ;;  %v1831_v2 = vld [vmem:[%s5393_s5] sm:$0x3] }
 0x15e   : > { %v1717_v7 = vmax.f32 %v1637_v60, %v1709_v17  ;;  %v4280_v38 = vrot.slane %v1831_v2, %v4115_v59  ;;  %v4302_v60 = vld [vmem:[%s3981_s30 + $0x30] sm:$0xff] }
 0x15f   : > { %v1708_v50 = vadd.f32 %v1700_v53, %v1660_v23  ;;  %v1740_v56 = vadd.f32 %v1732_v43, %v1724_v40  ;;  %v4283_v40 = vrot.slane %v1831_v2, %v4110_v57  ;;  %v4306_v17 = vld [vmem:[%s3981_s30 + $0x10] sm:$0xff] }
 0x161   : > { %v1750_v19 = vpop.permute.xlu1 %1749  ;;  %v1716_v6 = vmax.f32 %v1636_v22, %v1708_v50  ;;  %5468 = vst [vmem:[#allocation21_spill] sm:$0xff] %v4283_v40  ;;  %v4297_v22 = vld [vmem:[%s3981_s30 + $0x28] sm:$0xff] }
 0x162   : > { %v1780_v58 = vmul.f32 %v1750_v19, %v4125_v1 }
 0x164   : > { %v1788_v27 = vadd.f32 %v1780_v58, %v1740_v56  ;;  %v4293_v58 = vld [vmem:[%s3981_s30 + $0x18] sm:$0xff] }
 0x165   : > { %v1754_v61 = vpop.permute.xlu1 %1753 }
 0x166   : > { %v1781_v4 = vmul.f32 %v1754_v61, %v4125_v1  ;;  %v1796_v45 = vmax.f32 %v1716_v6, %v1788_v27  ;;  %v4311_v27 = vld [vmem:[%s3981_s30 + $0x20] sm:$0xff]  ;;  %v4315_v61 = vld [vmem:[%s3981_s30 + $0x38] sm:$0xff] }
 0x168   : > { %v1789_v49 = vadd.f32 %v1781_v4, %v1741_v5  ;;  %v1811_v3 = vadd.f32 %v3110_v30, %v1796_v45 }
 0x16a   : > { %v1797_v62 = vmax.f32 %v1717_v7, %v1789_v49  ;;  %v2072_v46 = vpop.f32.mrb[0].mxu1  ;;  %v5472_v49 = vmov 14  }
 0x16b   : > { %v2074_v29 = vpop.f32.mrb[1].mxu1 }
 0x16c   : > { %v1812_v10 = vadd.f32 %v3110_v30, %v1797_v62  ;;  %v2076_v32 = vpop.f32.mrb[2].mxu1  ;;  %v5473_v62 = vmov 7  }
 0x16d   : > { %v2077_v36 = vpop.f32.mrb[3].mxu1 }
 0x16e   : > { %v1819_v11 = vpack.c.bf16 %v1812_v10, %v1811_v3  ;;  %v5474_v3 = vmov 8   ;;  %v5475_v10 = vmov 16  }
 0x170   : > { %3119 = vmatmul.mubr.msk.bf16.vlgmr.msra.gmra.mrb[0].mxu0 %vm1883_vm0, %v1819_v11  ;;  %v5476_v11 = vmov 9  }
 0x171   : > { %1938 = vmatprep.mubr.bf16.mxu0 %v5430_v9  ;;  %2189 = vmatpush1.bf16.msra.mxu0 %v4060_v28 }
 0x172   : > { %2190 = vmatprep.subr.bf16.mxu0 %v4066_v31 }
 0x175   : > { %2191 = vmatpush1.bf16.msra.mxu0 %v4068_v33 }
 0x176   : > { %2192 = vmatprep.subr.bf16.mxu0 %v4073_v35 }
 0x179   : > { %2193 = vmatpush1.bf16.msra.mxu0 %v4075_v37 }
 0x17a   : > { %2194 = vmatprep.subr.bf16.mxu0 %v4079_v39 }
 0x17d   : > { %2195 = vmatpush1.bf16.msra.mxu0 %v4082_v41 }
 0x17e   : > { %2338 = vmatprep.subr.bf16.mxu0 %v4058_v26 }
 0x243   : > { %v1930_v42 = vpop.f32.mrb[0].mxu0 }
 0x244   : > { %v1931_v51 = vadd.f32 %v1930_v42, %v4280_v38  ;;  %v1932_v34 = vpop.f32.mrb[1].mxu0 }
 0x245   : > { %v1933_v52 = vadd.f32 %v1932_v34, %v4283_v40  ;;  %v4287_v53 = vpop.f32.mrb[2].mxu0 }
 0x246   : > { %5469 = vst [vmem:[#allocation22_spill] sm:$0xff] %v4287_v53  ;;  %v2079_v43 = vadd.f32 %v2072_v46, %v1931_v51  ;;  %v4289_v24 = vpop.f32.mrb[3].mxu0  ;;  %v5477_v46 = vmov 10  }
 0x247   : > { %5470 = vst [vmem:[#allocation23_spill] sm:$0xff] %v4289_v24  ;;  %v2080_v23 = vadd.f32 %v2074_v29, %v1933_v52  ;;  %v5478_v29 = vmov 15  }
 0x248   : > { %v3131_v55 = vmul.f32 -1.442695, %v2079_v43 }
 0x249   : > { %v3132_v25 = vmul.f32 -1.442695, %v2080_v23 }
 0x24a   : > { %3472 = vpow2.f32 %v3131_v55 }
 0x24b   : > { %3474 = vpow2.f32 %v3132_v25 }
 0x254   : > { %v3473_v47 = vpop.eup %3472 }
 0x255   : > { %v3475_v44 = vpop.eup %3474  ;;  %v2087_v48 = vadd.f32 1.0, %v3473_v47 }
 0x256   : > { %v2088_v54 = vadd.f32 1.0, %v3475_v44 }
 0x258   : > { %3476 = vrcp.f32 %v2088_v54 }
 0x259   : > { %3478 = vrcp.f32 %v2087_v48 }
 0x262   : > { %v3477_v18 = vpop.eup %3476 }
 0x263   : > { %v2093_v19 = vmul.f32 2.0, %v3477_v18  ;;  %v3479_v50 = vpop.eup %3478 }
 0x264   : > { %v2095_v5 = vmul.f32 0.0, %v3479_v50 }
 0x265   : > { %v3133_v21 = vadd.f32 -1.0, %v2093_v19 }
 0x267   : > { %v2096_v56 = vmul.f32 %v3479_v50, %v3133_v21 }
 0x269   : > { %2098 = vrot.lane.b32.xlu0 %v2096_v56, %s3744_s26 }
 0x26d   : > { %545 = vperm.xlu0 %3349, %v4293_v58  }
 0x271   : > { %555 = vperm.xlu0 %3349, %v4297_v22  }
 0x275   : > { %3366 = vset.pattern.permute.xlu0 %v3727_v8 }
 0x276   : > { %605 = vperm.xlu0 %3366, %v4302_v60  }
 0x27a   : > { %3367 = vset.pattern.permute.xlu0 %v3729_v12 }
 0x27b   : > { %641 = vperm.xlu0 %3367, %v4306_v17  }
 0x27f   : > { %649 = vperm.xlu0 %3367, %v4311_v27  }
 0x283   : > { %661 = vperm.xlu0 %3367, %v4315_v61  }
 0x287   : > { %3370 = vset.pattern.permute.xlu0 %v3730_v13 }
 0x288   : > { %721 = vperm.xlu0 %3370, %v4293_v58  }
 0x28c   : > { %737 = vperm.xlu0 %3370, %v4315_v61  }
 0x290   : > { %3375 = vset.pattern.permute.xlu0 %v5437_v20 }
 0x291   : > { %1357 = vperm.xlu0 %3375, %v4306_v17  }
 0x295   : > { %3376 = vset.pattern.permute.xlu0 %v5434_v14 }
 0x296   : > { %809 = vperm.xlu0 %3376, %v4297_v22  }
 0x29a   : > { %817 = vperm.xlu0 %3376, %v4315_v61  }
 0x29e   : > { %3379 = vset.pattern.permute.xlu0 %v5433_v15 }
 0x29f   : > { %877 = vperm.xlu0 %3379, %v4306_v17  }
 0x2a3   : > { %885 = vperm.xlu0 %3379, %v4311_v27  }
 0x2a7   : > { %897 = vperm.xlu0 %3379, %v4315_v61  }
 0x2ab   : > { %3383 = vset.pattern.permute.xlu0 %v5432_v16 }
 0x2ac   : > { %961 = vperm.xlu0 %3383, %v4293_v58  }
 0x2b0   : > { %977 = vperm.xlu0 %3383, %v4315_v61  }
 0x2b4   : > { %3388 = vset.pattern.permute.xlu0 %v5472_v49 }
 0x2b5   : > { %1597 = vperm.xlu0 %3388, %v4306_v17  }
 0x2b9   : > { %3389 = vset.pattern.permute.xlu0 %v5473_v62 }
 0x2ba   : > { %1037 = vperm.xlu0 %3389, %v4306_v17  }
 0x2be   : > { %1057 = vperm.xlu0 %3389, %v4315_v61  }
 0x2c2   : > { %3395 = vset.pattern.permute.xlu0 %v5474_v3 }
 0x2c3   : > { %1137 = vperm.xlu0 %3395, %v4315_v61  }
 0x2c7   : > { %3397 = vset.pattern.permute.xlu0 %v5475_v10 }
 0x2c8   : > { %1757 = vperm.xlu0 %3397, %v4306_v17  }
 0x2cc   : > { %3398 = vset.pattern.permute.xlu0 %v5476_v11 }
 0x2cd   : > { %1201 = vperm.xlu0 %3398, %v4293_v58  }
 0x2d1   : > { %1217 = vperm.xlu0 %3398, %v4315_v61  }
 0x2d5   : > { %3401 = vset.pattern.permute.xlu0 %v5477_v46 }
 0x2d6   : > { %1277 = vperm.xlu0 %3401, %v4306_v17  }
 0x2da   : > { %1293 = vperm.xlu0 %3401, %v4302_v60  }
 0x2db   : > { %v2099_v6 = vpop.permute.xlu0 %2098 }
 0x2dc   : > { %v4329_v4 = vadd.f32 %v2099_v6, %v2095_v5 }
 0x2de   : > { %5471 = vst [vmem:[#allocation24_spill] sm:$0xff] %v4329_v4  ;;  %3480 = vtanh.f32 %v4329_v4  ;;  %3403 = vset.pattern.permute.xlu0 %v5478_v29 }
 0x2e8   : > { %v3481_v7 = vpop.eup %3480 }
 0x2e9   : > { %v2103_v45 = vmul.f32 %v3481_v7, %v3477_v18 }
 0x2eb   : > { %v2106_v30 = vpack.c.bf16 %v2103_v45, %v2103_v45 }
 0x2ec   : > { %v4377_v32 = vpop.permute.xlu0 %545 }
 0x2ed   : > { %2108 = vrot.lane.b32.xlu1 %v2106_v30, %s3744_s26 }
 0x2f0   : > { %v4380_v36 = vpop.permute.xlu0 %555 }
 0x2f1   : > { %540 = vperm.xlu1 %3348, %v4306_v17  }
 0x2f5   : > { %3350 = vset.pattern.permute.xlu1 %v3727_v8  ;;  %v4384_v2 = vpop.permute.xlu0 %605 }
 0x2f6   : > { %589 = vperm.xlu1 %3350, %v4306_v17  }
 0x2fa   : > { %593 = vperm.xlu1 %3350, %v4293_v58   ;;  %v4387_v42 = vpop.permute.xlu0 %641 }
 0x2fb   : > { %v766_v57 = vmul.f32 %v4387_v42, %v4123_v0 }
 0x2fe   : > { %3351 = vset.pattern.permute.xlu1 %v3729_v12  ;;  %v4390_v51 = vpop.permute.xlu0 %649 }
 0x2ff   : > { %645 = vperm.xlu1 %3351, %v4293_v58  }
 0x302   : > { %v4394_v34 = vpop.permute.xlu0 %661 }
 0x303   : > { %3352 = vset.pattern.permute.xlu1 %v3730_v13  ;;  %v771_v43 = vmul.f32 %v4394_v34, %v4123_v0 }
 0x304   : > { %717 = vperm.xlu1 %3352, %v4306_v17  }
 0x307   : > { %v4397_v52 = vpop.permute.xlu0 %721 }
 0x308   : > { %3353 = vset.pattern.permute.xlu1 %v5434_v14 }
 0x309   : > { %797 = vperm.xlu1 %3353, %v4306_v17  }
 0x30b   : > { %v4403_v23 = vpop.permute.xlu0 %737 }
 0x30c   : > { %v779_v55 = vmul.f32 %v4403_v23, %v4120_v63  ;;  %v851_v54 = vmul.f32 %v4403_v23, %v4123_v0 }
 0x30d   : > { %801 = vperm.xlu1 %3353, %v4293_v58  }
 0x30e   : > { %v787_v25 = vadd.f32 %v779_v55, %v771_v43 }
 0x310   : > { %v4409_v47 = vpop.permute.xlu0 %1357 }
 0x311   : > { %3354 = vset.pattern.permute.xlu1 %v5433_v15 }
 0x312   : > { %881 = vperm.xlu1 %3354, %v4293_v58  }
 0x315   : > { %v4412_v44 = vpop.permute.xlu0 %809 }
 0x316   : > { %3355 = vset.pattern.permute.xlu1 %v5430_v9 }
 0x317   : > { %550 = vperm.xlu1 %3355, %v4311_v27  }
 0x319   : > { %v818_v48 = vpop.permute.xlu0 %817 }
 0x31a   : > { %v827_v18 = vmul.f32 %v818_v48, %v4125_v1  ;;  %v859_v19 = vmul.f32 %v818_v48, %v4120_v63  ;;  %v931_v6 = vmul.f32 %v818_v48, %v4123_v0 }
 0x31b   : > { %3356 = vset.pattern.permute.xlu1 %v3727_v8 }
 0x31c   : > { %597 = vperm.xlu1 %3356, %v4311_v27   ;;  %v4420_v21 = vadd.f32 %v827_v18, %v787_v25  ;;  %v867_v50 = vadd.f32 %v859_v19, %v851_v54  ;;  %v575_v19 = vmul.f32 %v4123_v0, %v4377_v32 }
 0x31e   : > { %v4422_v56 = vpop.permute.xlu0 %877 }
 0x320   : > { %601 = vperm.xlu1 %3356, %v4297_v22  }
 0x322   : > { %v4427_v5 = vpop.permute.xlu0 %885 }
 0x324   : > { %3357 = vset.pattern.permute.xlu1 %v3729_v12 }
 0x325   : > { %653 = vperm.xlu1 %3357, %v4297_v22  }
 0x329   : > { %3358 = vset.pattern.permute.xlu1 %v5432_v16 }
 0x32a   : > { %957 = vperm.xlu1 %3358, %v4306_v17  }
 0x32e   : > { %3359 = vset.pattern.permute.xlu1 %v3730_v13 }
 0x32f   : > { %725 = vperm.xlu1 %3359, %v4311_v27  }
 0x333   : > { %729 = vperm.xlu1 %3359, %v4297_v22  }
 0x337   : > { %3360 = vset.pattern.permute.xlu1 %v5473_v62 }
 0x338   : > { %1041 = vperm.xlu1 %3360, %v4293_v58  }
 0x33c   : > { %3361 = vset.pattern.permute.xlu1 %v5434_v14 }
 0x33d   : > { %805 = vperm.xlu1 %3361, %v4311_v27  }
 0x341   : > { %3362 = vset.pattern.permute.xlu1 %v5474_v3 }
 0x342   : > { %1117 = vperm.xlu1 %3362, %v4306_v17  }
 0x346   : > { %1121 = vperm.xlu1 %3362, %v4293_v58  }
 0x34a   : > { %3363 = vset.pattern.permute.xlu1 %v5433_v15 }
 0x34b   : > { %889 = vperm.xlu1 %3363, %v4297_v22  }
 0x34f   : > { %3364 = vset.pattern.permute.xlu1 %v5476_v11 }
 0x350   : > { %1197 = vperm.xlu1 %3364, %v4306_v17  }
 0x354   : > { %3365 = vset.pattern.permute.xlu1 %v5430_v9 }
 0x355   : > { %560 = vperm.xlu1 %3365, %v4302_v60  }
 0x359   : > { %565 = vperm.xlu1 %3365, %v4315_v61  }
 0x35d   : > { %3368 = vset.pattern.permute.xlu1 %v3727_v8  ;;  %v898_v8 = vpop.permute.xlu0 %897 }
 0x35e   : > { %609 = vperm.xlu1 %3368, %v4315_v61   ;;  %v907_v7 = vmul.f32 %v898_v8, %v4125_v1  ;;  %v939_v45 = vmul.f32 %v898_v8, %v4120_v63  ;;  %v1011_v30 = vmul.f32 %v898_v8, %v4123_v0 }
 0x35f   : > { %v2109_v17 = vpop.permute.xlu1 %2108 }
 0x360   : > { %3134 = vmatmul.mubr.msk.bf16.vlgmr.msra.gmra.mrb[4].mxu1 %vm1883_vm0, %v2109_v17 }
 0x361   : > { %2264 = vmatpush1.bf16.msra.mxu1 %v4060_v28  ;;  %2295 = vmatprep.mubr.bf16.mxu1 %v5430_v9  ;;  %v4440_v28 = vadd.f32 %v907_v7, %v867_v50 }
 0x362   : > { %3369 = vset.pattern.permute.xlu1 %v3729_v12  ;;  %2265 = vmatprep.subr.bf16.mxu1 %v4066_v31  ;;  %v947_v12 = vadd.f32 %v939_v45, %v931_v6  ;;  %v4443_v31 = vpop.permute.xlu0 %961 }
 0x363   : > { %657 = vperm.xlu1 %3369, %v4302_v60  }
 0x365   : > { %2266 = vmatpush1.bf16.msra.mxu1 %v4068_v33 }
 0x366   : > { %2267 = vmatprep.subr.bf16.mxu1 %v4073_v35  ;;  %v978_v33 = vpop.permute.xlu0 %977 }
 0x367   : > { %3371 = vset.pattern.permute.xlu1 %v5432_v16  ;;  %v987_v35 = vmul.f32 %v978_v33, %v4125_v1  ;;  %v1019_v43 = vmul.f32 %v978_v33, %v4120_v63 }
 0x368   : > { %965 = vperm.xlu1 %3371, %v4311_v27  }
 0x369   : > { %2268 = vmatpush1.bf16.msra.mxu1 %v4075_v37  ;;  %v4453_v55 = vadd.f32 %v987_v35, %v947_v12  ;;  %v1027_v25 = vadd.f32 %v1019_v43, %v1011_v30 }
 0x36a   : > { %2269 = vmatprep.subr.bf16.mxu1 %v4079_v39  ;;  %v4456_v39 = vpop.permute.xlu0 %1597 }
 0x36b   : > { %5479 = vst [vmem:[#allocation25_spill] sm:$0xff] %v4456_v39 }
 0x36c   : > { %969 = vperm.xlu1 %3371, %v4297_v22  }
 0x36d   : > { %2270 = vmatpush1.bf16.msra.mxu1 %v4082_v41  ;;  %v1091_v41 = vmul.f32 %v978_v33, %v4123_v0 }
 0x36e   : > { %2413 = vmatprep.subr.bf16.mxu1 %v4058_v26  ;;  %v4459_v54 = vpop.permute.xlu0 %1037 }
 0x370   : > { %3372 = vset.pattern.permute.xlu1 %v5477_v46  ;;  %v541_v37 = vpop.permute.xlu1 %540 }
 0x371   : > { %1281 = vperm.xlu1 %3372, %v4293_v58   ;;  %v574_v7 = vmul.f32 %v4123_v0, %v541_v37  ;;  %v694_v37 = vmul.f32 %v4387_v42, %v4120_v63 }
 0x372   : > { %v1058_v26 = vpop.permute.xlu0 %1057 }
 0x373   : > { %v1067_v50 = vmul.f32 %v1058_v26, %v4125_v1  ;;  %v1099_v17 = vmul.f32 %v1058_v26, %v4120_v63  ;;  %v1171_v12 = vmul.f32 %v1058_v26, %v4123_v0 }
 0x375   : > { %3373 = vset.pattern.permute.xlu1 %v3730_v13  ;;  %v590_v48 = vpop.permute.xlu1 %589  ;;  %v4471_v13 = vadd.f32 %v1067_v50, %v1027_v25  ;;  %v1107_v8 = vadd.f32 %v1099_v17, %v1091_v41 }
 0x376   : > { %733 = vperm.xlu1 %3373, %v4302_v60   ;;  %v618_v45 = vmul.f32 %v4120_v63, %v590_v48  ;;  %v4476_v32 = vpop.permute.xlu0 %1137  ;;  %v686_v25 = vmul.f32 %v590_v48, %v4123_v0  ;;  %v670_v48 = vmul.f32 %v4125_v1, %v4387_v42 }
 0x377   : > { %5480 = vst [vmem:[#allocation26_spill] sm:$0xff] %v4476_v32  ;;  %v1147_v35 = vmul.f32 %v4476_v32, %v4125_v1  ;;  %v1179_v43 = vmul.f32 %v4476_v32, %v4120_v63 }
 0x378   : > { %v702_v15 = vadd.f32 %v694_v37, %v686_v25  ;;  %v775_v25 = vmul.f32 %v4397_v52, %v4120_v63  ;;  %v5481_v37 = vmov 4  }
 0x379   : > { %v594_v18 = vpop.permute.xlu1 %593  ;;  %v4493_v17 = vadd.f32 %v1179_v43, %v1171_v12 }
 0x37a   : > { %3374 = vset.pattern.permute.xlu1 %v5473_v62  ;;  %v619_v6 = vmul.f32 %v4120_v63, %v594_v18  ;;  %v687_v30 = vmul.f32 %v594_v18, %v4123_v0  ;;  %v743_v18 = vmul.f32 %v4397_v52, %v4125_v1 }
 0x37b   : > { %1045 = vperm.xlu1 %3374, %v4311_v27  }
 0x37c   : > { %v627_v33 = vadd.f32 %v619_v6, %v575_v19  ;;  %v4491_v19 = vadd.f32 %v1147_v35, %v1107_v8  ;;  %v626_v6 = vadd.f32 %v618_v45, %v574_v7 }
 0x37e   : > { %v646_v41 = vpop.permute.xlu1 %645  ;;  %v678_v7 = vadd.f32 %v670_v48, %v626_v6 }
 0x37f   : > { %1049 = vperm.xlu1 %3374, %v4297_v22   ;;  %v671_v26 = vmul.f32 %v4125_v1, %v646_v41  ;;  %v695_v50 = vmul.f32 %v646_v41, %v4120_v63  ;;  %v767_v35 = vmul.f32 %v646_v41, %v4123_v0  ;;  %v847_v41 = vmul.f32 %v4397_v52, %v4123_v0 }
 0x381   : > { %v679_v9 = vadd.f32 %v671_v26, %v627_v33  ;;  %v703_v16 = vadd.f32 %v695_v50, %v687_v30 }
 0x383   : > { %3377 = vset.pattern.permute.xlu1 %v5437_v20  ;;  %v718_v14 = vpop.permute.xlu1 %717  ;;  %v751_v59 = vadd.f32 %v743_v18, %v703_v16 }
 0x384   : > { %1361 = vperm.xlu1 %3377, %v4293_v58   ;;  %v742_v8 = vmul.f32 %v718_v14, %v4125_v1  ;;  %v774_v12 = vmul.f32 %v718_v14, %v4120_v63  ;;  %v846_v30 = vmul.f32 %v718_v14, %v4123_v0 }
 0x385   : > { %v759_v45 = vmax.f32 %v679_v9, %v751_v59  ;;  %v902_v9 = vmul.f32 %v4422_v56, %v4125_v1  ;;  %v783_v59 = vadd.f32 %v775_v25, %v767_v35 }
 0x386   : > { %v750_v33 = vadd.f32 %v742_v8, %v702_v15  ;;  %v782_v43 = vadd.f32 %v774_v12, %v766_v57 }
 0x388   : > { %3378 = vset.pattern.permute.xlu1 %v5481_v37  ;;  %v798_v16 = vpop.permute.xlu1 %797  ;;  %v758_v50 = vmax.f32 %v678_v7, %v750_v33  ;;  %v983_v37 = vmul.f32 %v4443_v31, %v4125_v1 }
 0x389   : > { %813 = vperm.xlu1 %3378, %v4302_v60   ;;  %v822_v42 = vmul.f32 %v798_v16, %v4125_v1  ;;  %v854_v26 = vmul.f32 %v798_v16, %v4120_v63 }
 0x38b   : > { %v830_v15 = vadd.f32 %v822_v42, %v782_v43  ;;  %v862_v14 = vadd.f32 %v854_v26, %v846_v30 }
 0x38c   : > { %v802_v57 = vpop.permute.xlu1 %801 }
 0x38d   : > { %3380 = vset.pattern.permute.xlu1 %v5474_v3  ;;  %v823_v18 = vmul.f32 %v802_v57, %v4125_v1  ;;  %v855_v6 = vmul.f32 %v802_v57, %v4120_v63  ;;  %v838_v48 = vmax.f32 %v758_v50, %v830_v15  ;;  %v910_v8 = vadd.f32 %v902_v9, %v862_v14 }
 0x38e   : > { %1125 = vperm.xlu1 %3380, %v4311_v27   ;;  %v927_v7 = vmul.f32 %v802_v57, %v4123_v0  ;;  %v5482_v50 = vmov 12  }
 0x38f   : > { %v831_v12 = vadd.f32 %v823_v18, %v783_v59  ;;  %v863_v33 = vadd.f32 %v855_v6, %v847_v41  ;;  %v918_v35 = vmax.f32 %v838_v48, %v910_v8  ;;  %v926_v18 = vmul.f32 %v798_v16, %v4123_v0 }
 0x390   : > { %v934_v48 = vmul.f32 %v4422_v56, %v4120_v63 }
 0x391   : > { %v882_v30 = vpop.permute.xlu1 %881  ;;  %v839_v43 = vmax.f32 %v759_v45, %v831_v12  ;;  %v5483_v45 = vmov 5   ;;  %v1006_v12 = vmul.f32 %v4422_v56, %v4123_v0  ;;  %v577_v56 = vmul.f32 %v4123_v0, %v4380_v36 }
 0x392   : > { %1129 = vperm.xlu1 %3380, %v4297_v22   ;;  %v903_v52 = vmul.f32 %v882_v30, %v4125_v1  ;;  %v935_v25 = vmul.f32 %v882_v30, %v4120_v63  ;;  %v942_v8 = vadd.f32 %v934_v48, %v926_v18 }
 0x394   : > { %v911_v42 = vadd.f32 %v903_v52, %v863_v33  ;;  %v943_v26 = vadd.f32 %v935_v25, %v927_v7  ;;  %v5484_v7 = vmov 13   ;;  %v1062_v52 = vmul.f32 %v4459_v54, %v4125_v1 }
 0x396   : > { %3381 = vset.pattern.permute.xlu1 %v5482_v50  ;;  %v551_v9 = vpop.permute.xlu1 %550  ;;  %v919_v15 = vmax.f32 %v839_v43, %v911_v42  ;;  %v991_v59 = vadd.f32 %v983_v37, %v943_v26 }
 0x397   : > { %1441 = vperm.xlu1 %3381, %v4293_v58   ;;  %v576_v36 = vmul.f32 %v4123_v0, %v551_v9 }
 0x398   : > { %v4527_v14 = vmax.f32 %v919_v15, %v991_v59  ;;  %v5485_v59 = vmov 6  }
 0x39b   : > { %3382 = vset.pattern.permute.xlu1 %v5483_v45  ;;  %v598_v57 = vpop.permute.xlu1 %597 }
 0x39c   : > { %893 = vperm.xlu1 %3382, %v4302_v60  }
 0x39f   : > { %v602_v41 = vpop.permute.xlu1 %601 }
 0x3a0   : > { %3384 = vset.pattern.permute.xlu1 %v5476_v11  ;;  %v621_v25 = vmul.f32 %v4120_v63, %v602_v41  ;;  %v689_v26 = vmul.f32 %v602_v41, %v4123_v0 }
 0x3a1   : > { %1205 = vperm.xlu1 %3384, %v4311_v27  }
 0x3a2   : > { %v629_v20 = vadd.f32 %v621_v25, %v577_v56  ;;  %v1015_v56 = vmul.f32 %v4443_v31, %v4120_v63 }
 0x3a4   : > { %v654_v6 = vpop.permute.xlu1 %653 }
 0x3a5   : > { %1209 = vperm.xlu1 %3384, %v4297_v22   ;;  %v697_v15 = vmul.f32 %v654_v6, %v4120_v63  ;;  %v673_v39 = vmul.f32 %v4125_v1, %v654_v6 }
 0x3a7   : > { %v681_v9 = vadd.f32 %v673_v39, %v629_v20  ;;  %v768_v39 = vmul.f32 %v4390_v51, %v4123_v0 }
 0x3a9   : > { %3385 = vset.pattern.permute.xlu1 %v5484_v7  ;;  %v4540_v33 = vpop.permute.xlu1 %957 }
 0x3aa   : > { %1521 = vperm.xlu1 %3385, %v4293_v58   ;;  %v982_v43 = vmul.f32 %v4540_v33, %v4125_v1  ;;  %v1014_v16 = vmul.f32 %v4540_v33, %v4120_v63 }
 0x3ac   : > { %v990_v37 = vadd.f32 %v982_v43, %v942_v8  ;;  %v1022_v42 = vadd.f32 %v1014_v16, %v1006_v12  ;;  %v620_v8 = vmul.f32 %v4120_v63, %v598_v57  ;;  %v688_v12 = vmul.f32 %v598_v57, %v4123_v0 }
 0x3ad   : > { %v705_v43 = vadd.f32 %v697_v15, %v689_v26  ;;  %v696_v16 = vmul.f32 %v4390_v51, %v4120_v63  ;;  %v825_v57 = vmul.f32 %v4412_v44, %v4125_v1 }
 0x3ae   : > { %3386 = vset.pattern.permute.xlu1 %v5485_v59  ;;  %v726_v45 = vpop.permute.xlu1 %725  ;;  %v4555_v18 = vmax.f32 %v918_v35, %v990_v37  ;;  %v4557_v48 = vadd.f32 %v1062_v52, %v1022_v42  ;;  %v769_v35 = vmul.f32 %v654_v6, %v4123_v0  ;;  %v1007_v52 = vmul.f32 %v882_v30, %v4123_v0 }
 0x3af   : > { %973 = vperm.xlu1 %3386, %v4302_v60   ;;  %v628_v6 = vadd.f32 %v620_v8, %v576_v36  ;;  %v672_v30 = vmul.f32 %v4125_v1, %v4390_v51  ;;  %v744_v26 = vmul.f32 %v726_v45, %v4125_v1  ;;  %v704_v15 = vadd.f32 %v696_v16, %v688_v12 }
 0x3b0   : > { %v1023_v4 = vadd.f32 %v1015_v56, %v1007_v52  ;;  %v776_v20 = vmul.f32 %v726_v45, %v4120_v63  ;;  %v848_v16 = vmul.f32 %v726_v45, %v4123_v0 }
 0x3b1   : > { %v680_v40 = vadd.f32 %v672_v30, %v628_v6  ;;  %v752_v53 = vadd.f32 %v744_v26, %v704_v15  ;;  %v1086_v26 = vmul.f32 %v4540_v33, %v4123_v0 }
 0x3b2   : > { %v730_v25 = vpop.permute.xlu1 %729  ;;  %v784_v52 = vadd.f32 %v776_v20, %v768_v39  ;;  %v857_v20 = vmul.f32 %v4412_v44, %v4120_v63 }
 0x3b3   : > { %3387 = vset.pattern.permute.xlu1 %v5477_v46  ;;  %v745_v37 = vmul.f32 %v730_v25, %v4125_v1  ;;  %v777_v42 = vmul.f32 %v730_v25, %v4120_v63  ;;  %v760_v56 = vmax.f32 %v680_v40, %v752_v53 }
 0x3b4   : > { %1285 = vperm.xlu1 %3387, %v4311_v27  }
 0x3b5   : > { %v753_v59 = vadd.f32 %v745_v37, %v705_v43  ;;  %v785_v41 = vadd.f32 %v777_v42, %v769_v35  ;;  %v4591_v43 = vpop.permute.xlu0 %1757 }
 0x3b6   : > { %5486 = vst [vmem:[#allocation27_spill] sm:$0xff] %v4591_v43 }
 0x3b7   : > { %v4584_v32 = vpop.permute.xlu1 %1041  ;;  %v761_v24 = vmax.f32 %v681_v9, %v753_v59  ;;  %v833_v36 = vadd.f32 %v825_v57, %v785_v41  ;;  %v1094_v59 = vmul.f32 %v4459_v54, %v4120_v63 }
 0x3b8   : > { %1289 = vperm.xlu1 %3387, %v4297_v22   ;;  %v1063_v8 = vmul.f32 %v4584_v32, %v4125_v1  ;;  %v1095_v57 = vmul.f32 %v4584_v32, %v4120_v63 }
 0x3b9   : > { %v4589_v12 = vmax.f32 %v761_v24, %v833_v36  ;;  %v4605_v42 = vpop.permute.xlu0 %1201  ;;  %v5487_v36 = vmov 11  }
 0x3ba   : > { %v1071_v35 = vadd.f32 %v1063_v8, %v1023_v4  ;;  %v904_v4 = vmul.f32 %v4427_v5, %v4125_v1 }
 0x3bc   : > { %3390 = vset.pattern.permute.xlu1 %v5472_v49  ;;  %v4595_v51 = vpop.permute.xlu1 %805  ;;  %v1079_v41 = vmax.f32 %v4527_v14, %v1071_v35  ;;  %v1087_v14 = vmul.f32 %v4443_v31, %v4123_v0  ;;  %v849_v31 = vmul.f32 %v730_v25, %v4123_v0 }
 0x3bd   : > { %1601 = vperm.xlu1 %3390, %v4293_v58   ;;  %v824_v9 = vmul.f32 %v4595_v51, %v4125_v1  ;;  %v856_v24 = vmul.f32 %v4595_v51, %v4120_v63  ;;  %v4628_v39 = vpop.permute.xlu0 %1217 }
 0x3be   : > { %v1103_v15 = vadd.f32 %v1095_v57, %v1087_v14 }
 0x3bf   : > { %v832_v45 = vadd.f32 %v824_v9, %v784_v52  ;;  %v864_v37 = vadd.f32 %v856_v24, %v848_v16  ;;  %v1102_v16 = vadd.f32 %v1094_v59, %v1086_v26  ;;  %v865_v52 = vadd.f32 %v857_v20, %v849_v31 }
 0x3c0   : > { %v1166_v9 = vmul.f32 %v4459_v54, %v4123_v0  ;;  %v1382_v54 = vmul.f32 %v4409_v47, %v4125_v1 }
 0x3c1   : > { %3391 = vset.pattern.permute.xlu1 %v5473_v62  ;;  %v1118_v40 = vpop.permute.xlu1 %1117  ;;  %v4612_v53 = vmax.f32 %v760_v56, %v832_v45  ;;  %v4614_v6 = vadd.f32 %v904_v4, %v864_v37  ;;  %v4645_v45 = vpop.permute.xlu0 %1277 }
 0x3c2   : > { %1053 = vperm.xlu1 %3391, %v4302_v60   ;;  %v1142_v33 = vmul.f32 %v1118_v40, %v4125_v1  ;;  %v1174_v25 = vmul.f32 %v1118_v40, %v4120_v63  ;;  %5488 = vst [vmem:[#allocation28_spill] sm:$0xff] %v4645_v45  ;;  %v1246_v14 = vmul.f32 %v1118_v40, %v4123_v0 }
 0x3c3   : > { %v1302_v31 = vmul.f32 %v4645_v45, %v4125_v1 }
 0x3c4   : > { %v1150_v37 = vadd.f32 %v1142_v33, %v1102_v16  ;;  %v1182_v26 = vadd.f32 %v1174_v25, %v1166_v9  ;;  %v5489_v33 = vmax.f32 %v4555_v18, %v4557_v48 }
 0x3c5   : > { %v4624_v62 = vpop.permute.xlu1 %1121 }
 0x3c6   : > { %3392 = vset.pattern.permute.xlu1 %v5487_v36  ;;  %v1143_v8 = vmul.f32 %v4624_v62, %v4125_v1 }
 0x3c7   : > { %1365 = vperm.xlu1 %3392, %v4311_v27  }
 0x3c8   : > { %v1151_v35 = vadd.f32 %v1143_v8, %v1103_v15  ;;  %v1334_v15 = vmul.f32 %v4645_v45, %v4120_v63 }
 0x3ca   : > { %v4636_v56 = vpop.permute.xlu1 %889  ;;  %v4640_v24 = vmax.f32 %v1079_v41, %v1151_v35  ;;  %v1158_v35 = vmax.f32 %v5489_v33, %v1150_v37  ;;  %v675_v37 = vmul.f32 %v4125_v1, %v4394_v34  ;;  %v1175_v33 = vmul.f32 %v4624_v62, %v4120_v63 }
 0x3cb   : > { %1369 = vperm.xlu1 %3392, %v4297_v22   ;;  %v905_v4 = vmul.f32 %v4636_v56, %v4125_v1 }
 0x3cd   : > { %v4647_v57 = vadd.f32 %v905_v4, %v865_v52 }
 0x3cf   : > { %3393 = vset.pattern.permute.xlu1 %v5478_v29  ;;  %v1198_v41 = vpop.permute.xlu1 %1197 }
 0x3d0   : > { %1681 = vperm.xlu1 %3393, %v4293_v58   ;;  %v1222_v40 = vmul.f32 %v1198_v41, %v4125_v1  ;;  %v1254_v20 = vmul.f32 %v1198_v41, %v4120_v63  ;;  %v1326_v8 = vmul.f32 %v1198_v41, %v4123_v0 }
 0x3d2   : > { %v1230_v16 = vadd.f32 %v1222_v40, %v1182_v26  ;;  %v1262_v52 = vadd.f32 %v1254_v20, %v1246_v14  ;;  %v1342_v25 = vadd.f32 %v1334_v15, %v1326_v8  ;;  %v747_v14 = vmul.f32 %v4403_v23, %v4125_v1 }
 0x3d3   : > { %v1167_v8 = vmul.f32 %v4584_v32, %v4123_v0 }
 0x3d4   : > { %3394 = vset.pattern.permute.xlu1 %v5474_v3  ;;  %v561_v9 = vpop.permute.xlu1 %560  ;;  %v1238_v4 = vmax.f32 %v1158_v35, %v1230_v16  ;;  %v1310_v59 = vadd.f32 %v1302_v31, %v1262_v52  ;;  %v4667_v30 = vadd.f32 %v1382_v54, %v1342_v25  ;;  %v699_v3 = vmul.f32 %v4394_v34, %v4120_v63 }
 0x3d5   : > { %1133 = vperm.xlu1 %3394, %v4302_v60   ;;  %v928_v31 = vmul.f32 %v4595_v51, %v4123_v0  ;;  %v929_v51 = vmul.f32 %v4412_v44, %v4123_v0  ;;  %v937_v35 = vmul.f32 %v4636_v56, %v4120_v63  ;;  %v1227_v44 = vmul.f32 %v4628_v39, %v4125_v1 }
 0x3d6   : > { %v4670_v43 = vmax.f32 %v1238_v4, %v1310_v59  ;;  %v1183_v4 = vadd.f32 %v1175_v33, %v1167_v8 }
 0x3d8   : > { %v566_v45 = vpop.permute.xlu1 %565  ;;  %v1398_v41 = vmax.f32 %v4670_v43, %v4667_v30 }
 0x3d9   : > { %3396 = vset.pattern.permute.xlu1 %v5482_v50  ;;  %v579_v18 = vmul.f32 %v4123_v0, %v566_v45  ;;  %v936_v45 = vmul.f32 %v4427_v5, %v4120_v63 }
 0x3da   : > { %1445 = vperm.xlu1 %3396, %v4311_v27  }
 0x3db   : > { %v944_v16 = vadd.f32 %v936_v45, %v928_v31  ;;  %v578_v31 = vmul.f32 %v4123_v0, %v561_v9 }
 0x3dd   : > { %v610_v48 = vpop.permute.xlu1 %609 }
 0x3de   : > { %1449 = vperm.xlu1 %3396, %v4297_v22   ;;  %v623_v26 = vmul.f32 %v4120_v63, %v610_v48  ;;  %v691_v15 = vmul.f32 %v610_v48, %v4123_v0  ;;  %v1247_v48 = vmul.f32 %v4624_v62, %v4123_v0 }
 0x3e0   : > { %v631_v54 = vadd.f32 %v623_v26, %v579_v18  ;;  %v707_v59 = vadd.f32 %v699_v3, %v691_v15  ;;  %v1223_v3 = vmul.f32 %v4605_v42, %v4125_v1  ;;  %v4723_v15 = vadd.f32 %v1227_v44, %v4493_v17 }
 0x3e1   : > { %v690_v17 = vmul.f32 %v4384_v2, %v4123_v0  ;;  %v1009_v44 = vmul.f32 %v4636_v56, %v4123_v0  ;;  %v1327_v56 = vmul.f32 %v4605_v42, %v4123_v0 }
 0x3e2   : > { %3399 = vset.pattern.permute.xlu1 %v5475_v10  ;;  %v683_v34 = vadd.f32 %v675_v37, %v631_v54  ;;  %v755_v40 = vadd.f32 %v747_v14, %v707_v59  ;;  %v4691_v20 = vpop.permute.xlu1 %657  ;;  %v1231_v62 = vadd.f32 %v1223_v3, %v1183_v4  ;;  %v622_v59 = vmul.f32 %v4120_v63, %v4384_v2 }
 0x3e3   : > { %1761 = vperm.xlu1 %3399, %v4293_v58   ;;  %v674_v2 = vmul.f32 %v4125_v1, %v4691_v20 }
 0x3e4   : > { %v763_v23 = vmax.f32 %v683_v34, %v755_v40  ;;  %v698_v40 = vmul.f32 %v4691_v20, %v4120_v63  ;;  %v1239_v8 = vmax.f32 %v4640_v24, %v1231_v62  ;;  %v630_v33 = vadd.f32 %v622_v59, %v578_v31 }
 0x3e6   : > { %v843_v52 = vmax.f32 %v763_v23, %v4420_v21 }
 0x3e7   : > { %3400 = vset.pattern.permute.xlu1 %v5476_v11  ;;  %v4704_v25 = vpop.permute.xlu1 %965  ;;  %v945_v11 = vadd.f32 %v937_v35, %v929_v51  ;;  %v706_v35 = vadd.f32 %v698_v40, %v690_v17 }
 0x3e8   : > { %1213 = vperm.xlu1 %3400, %v4302_v60   ;;  %v923_v58 = vmax.f32 %v843_v52, %v4440_v28  ;;  %v984_v32 = vmul.f32 %v4704_v25, %v4125_v1  ;;  %v1255_v28 = vmul.f32 %v4605_v42, %v4120_v63 }
 0x3ea   : > { %v1003_v21 = vmax.f32 %v923_v58, %v4453_v55  ;;  %v992_v18 = vadd.f32 %v984_v32, %v944_v16  ;;  %v5490_v55 = vmax.f32 %v4612_v53, %v4614_v6  ;;  %v5491_v53 = vmax.f32 %v4589_v12, %v4647_v57 }
 0x3eb   : > { %v970_v37 = vpop.permute.xlu1 %969  ;;  %v1008_v12 = vmul.f32 %v4427_v5, %v4123_v0  ;;  %v1016_v57 = vmul.f32 %v4704_v25, %v4120_v63  ;;  %v682_v58 = vadd.f32 %v674_v2, %v630_v33  ;;  %v1088_v33 = vmul.f32 %v4704_v25, %v4123_v0 }
 0x3ec   : > { %3402 = vset.pattern.permute.xlu1 %v5484_v7  ;;  %v985_v14 = vmul.f32 %v970_v37, %v4125_v1  ;;  %v1083_v26 = vmax.f32 %v1003_v21, %v4471_v13  ;;  %v4729_v54 = vmax.f32 %v5490_v55, %v992_v18  ;;  %v1263_v13 = vadd.f32 %v1255_v28, %v1247_v48 }
 0x3ed   : > { %1525 = vperm.xlu1 %3402, %v4311_v27   ;;  %v1017_v4 = vmul.f32 %v970_v37, %v4120_v63  ;;  %v1024_v5 = vadd.f32 %v1016_v57, %v1008_v12 }
 0x3ee   : > { %v993_v45 = vadd.f32 %v985_v14, %v945_v11  ;;  %v4735_v34 = vmax.f32 %v1083_v26, %v4491_v19  ;;  %v1089_v11 = vmul.f32 %v970_v37, %v4123_v0 }
 0x3ef   : > { %v1025_v18 = vadd.f32 %v1017_v4, %v1009_v44 }
 0x3f0   : > { %v4744_v6 = vmax.f32 %v5491_v53, %v993_v45  ;;  %v1282_v23 = vpop.permute.xlu1 %1281  ;;  %v1243_v9 = vmax.f32 %v4735_v34, %v4723_v15 }
 0x3f1   : > { %1529 = vperm.xlu1 %3402, %v4297_v22   ;;  %v1303_v19 = vmul.f32 %v1282_v23, %v4125_v1  ;;  %v1335_v28 = vmul.f32 %v1282_v23, %v4120_v63  ;;  %v1407_v37 = vmul.f32 %v1282_v23, %v4123_v0 }
 0x3f3   : > { %v1311_v51 = vadd.f32 %v1303_v19, %v1263_v13  ;;  %v1343_v45 = vadd.f32 %v1335_v28, %v1327_v56  ;;  %v770_v13 = vmul.f32 %v4691_v20, %v4123_v0 }
 0x3f5   : > { %3404 = vset.pattern.permute.xlu1 %v5477_v46  ;;  %v734_v16 = vpop.permute.xlu1 %733  ;;  %v4758_v52 = vmax.f32 %v1239_v8, %v1311_v51 }
 0x3f6   : > { %1297 = vperm.xlu1 %3404, %v4315_v61   ;;  %v746_v24 = vmul.f32 %v734_v16, %v4125_v1  ;;  %v778_v42 = vmul.f32 %v734_v16, %v4120_v63  ;;  %v850_v23 = vmul.f32 %v734_v16, %v4123_v0 }
 0x3f8   : > { %v754_v32 = vadd.f32 %v746_v24, %v706_v35  ;;  %v786_v8 = vadd.f32 %v778_v42, %v770_v13 }
 0x3fa   : > { %3405 = vset.pattern.permute.xlu1 %v5472_v49  ;;  %v762_v3 = vmax.f32 %v682_v58, %v754_v32  ;;  %v1046_v21 = vpop.permute.xlu1 %1045 }
 0x3fb   : > { %1605 = vperm.xlu1 %3405, %v4311_v27   ;;  %v1064_v46 = vmul.f32 %v1046_v21, %v4125_v1  ;;  %v1096_v20 = vmul.f32 %v1046_v21, %v4120_v63  ;;  %v1168_v16 = vmul.f32 %v1046_v21, %v4123_v0 }
 0x3fd   : > { %v1072_v48 = vadd.f32 %v1064_v46, %v1024_v5  ;;  %v1104_v58 = vadd.f32 %v1096_v20, %v1088_v33 }
 0x3fe   : > { %v1050_v14 = vpop.permute.xlu1 %1049 }
 0x3ff   : > { %v1080_v26 = vmax.f32 %v4729_v54, %v1072_v48  ;;  %3406 = vset.pattern.permute.xlu1 %v5487_v36  ;;  %v1065_v55 = vmul.f32 %v1050_v14, %v4125_v1  ;;  %v1097_v62 = vmul.f32 %v1050_v14, %v4120_v63  ;;  %v1169_v44 = vmul.f32 %v1050_v14, %v4123_v0 }
 0x400   : > { %1373 = vperm.xlu1 %3406, %v4302_v60  }
 0x401   : > { %v1073_v59 = vadd.f32 %v1065_v55, %v1025_v18  ;;  %v1105_v31 = vadd.f32 %v1097_v62, %v1089_v11 }
 0x403   : > { %v1081_v54 = vmax.f32 %v4744_v6, %v1073_v59  ;;  %v1362_v17 = vpop.permute.xlu1 %1361 }
 0x404   : > { %1377 = vperm.xlu1 %3406, %v4315_v61   ;;  %v1383_v36 = vmul.f32 %v1362_v17, %v4125_v1  ;;  %v1415_v40 = vmul.f32 %v1362_v17, %v4120_v63  ;;  %v1487_v48 = vmul.f32 %v1362_v17, %v4123_v0 }
 0x406   : > { %v1391_v53 = vadd.f32 %v1383_v36, %v1343_v45  ;;  %v1423_v19 = vadd.f32 %v1415_v40, %v1407_v37 }
 0x408   : > { %v1399_v2 = vmax.f32 %v4758_v52, %v1391_v53  ;;  %3408 = vset.pattern.permute.xlu1 %v5478_v29  ;;  %v814_v6 = vpop.permute.xlu1 %813  ;;  %v4827_v53 = vld [vmem:[%s3981_s30 + $0x30] sm:$0xff] }
 0x409   : > { %1689 = vperm.xlu1 %3408, %v4297_v22   ;;  %v826_v51 = vmul.f32 %v814_v6, %v4125_v1  ;;  %v858_v35 = vmul.f32 %v814_v6, %v4120_v63  ;;  %v930_v59 = vmul.f32 %v814_v6, %v4123_v0 }
 0x40b   : > { %v834_v12 = vadd.f32 %v826_v51, %v786_v8  ;;  %v866_v57 = vadd.f32 %v858_v35, %v850_v23 }
 0x40d   : > { %v4795_v24 = vmax.f32 %v762_v3, %v834_v12  ;;  %3409 = vset.pattern.permute.xlu1 %v5482_v50  ;;  %v1126_v25 = vpop.permute.xlu1 %1125 }
 0x40e   : > { %1453 = vperm.xlu1 %3409, %v4302_v60   ;;  %v1144_v52 = vmul.f32 %v1126_v25, %v4125_v1  ;;  %v1176_v32 = vmul.f32 %v1126_v25, %v4120_v63 }
 0x410   : > { %v1152_v4 = vadd.f32 %v1144_v52, %v1104_v58  ;;  %v1184_v5 = vadd.f32 %v1176_v32, %v1168_v16 }
 0x411   : > { %v1130_v46 = vpop.permute.xlu1 %1129 }
 0x412   : > { %v4802_v18 = vmax.f32 %v1080_v26, %v1152_v4  ;;  %v1145_v21 = vmul.f32 %v1130_v46, %v4125_v1  ;;  %v1177_v3 = vmul.f32 %v1130_v46, %v4120_v63  ;;  %3411 = vset.pattern.permute.xlu1 %v5475_v10 }
 0x413   : > { %1765 = vperm.xlu1 %3411, %v4311_v27  }
 0x414   : > { %v1153_v60 = vadd.f32 %v1145_v21, %v1105_v31  ;;  %v1185_v11 = vadd.f32 %v1177_v3, %v1169_v44  ;;  %v5492_v21 = vld [vmem:[#allocation22_spill] sm:$0xff] }
 0x415   : > { %v1935_v3 = vadd.f32 %v5492_v21, %v4280_v38 }
 0x416   : > { %v4809_v28 = vmax.f32 %v1081_v54, %v1153_v60  ;;  %v1442_v14 = vpop.permute.xlu1 %1441 }
 0x417   : > { %v1463_v56 = vmul.f32 %v1442_v14, %v4125_v1  ;;  %v1495_v26 = vmul.f32 %v1442_v14, %v4120_v63  ;;  %1769 = vperm.xlu1 %3411, %v4297_v22   ;;  %v1248_v22 = vmul.f32 %v1126_v25, %v4123_v0  ;;  %v1567_v35 = vmul.f32 %v1442_v14, %v4123_v0 }
 0x419   : > { %v1471_v55 = vadd.f32 %v1463_v56, %v1423_v19  ;;  %v1503_v62 = vadd.f32 %v1495_v26, %v1487_v48  ;;  %v1249_v19 = vmul.f32 %v1130_v46, %v4123_v0  ;;  %v5494_v48 = vld [vmem:[#allocation23_spill] sm:$0xff] }
 0x41b   : > { %v4815_v37 = vmax.f32 %v1399_v2, %v1471_v55  ;;  %v894_v27 = vpop.permute.xlu1 %893  ;;  %3413 = vset.pattern.permute.xlu1 %v5484_v7 }
 0x41c   : > { %v906_v31 = vmul.f32 %v894_v27, %v4125_v1  ;;  %v938_v45 = vmul.f32 %v894_v27, %v4120_v63  ;;  %1537 = vperm.xlu1 %3413, %v4315_v61  }
 0x41e   : > { %v914_v13 = vadd.f32 %v906_v31, %v866_v57  ;;  %v946_v42 = vadd.f32 %v938_v45, %v930_v59 }
 0x420   : > { %v922_v54 = vmax.f32 %v4795_v24, %v914_v13  ;;  %v1206_v17 = vpop.permute.xlu1 %1205  ;;  %3414 = vset.pattern.permute.xlu1 %v5472_v49  ;;  %v4841_v24 = vld [vmem:[%s3981_s30 + $0x38] sm:$0xff] }
 0x421   : > { %v1224_v36 = vmul.f32 %v1206_v17, %v4125_v1  ;;  %v1256_v40 = vmul.f32 %v1206_v17, %v4120_v63  ;;  %1613 = vperm.xlu1 %3414, %v4827_v53   ;;  %v1328_v60 = vmul.f32 %v1206_v17, %v4123_v0 }
 0x423   : > { %v1232_v61 = vadd.f32 %v1224_v36, %v1184_v5  ;;  %v1264_v8 = vadd.f32 %v1256_v40, %v1248_v22 }
 0x424   : > { %v1210_v23 = vpop.permute.xlu1 %1209 }
 0x425   : > { %v1240_v33 = vmax.f32 %v4802_v18, %v1232_v61  ;;  %v1225_v20 = vmul.f32 %v1210_v23, %v4125_v1  ;;  %v1257_v2 = vmul.f32 %v1210_v23, %v4120_v63  ;;  %3415 = vset.pattern.permute.xlu1 %v5478_v29  ;;  %v1010_v29 = vmul.f32 %v894_v27, %v4123_v0 }
 0x426   : > { %1693 = vperm.xlu1 %3415, %v4827_v53   ;;  %v1329_v45 = vmul.f32 %v1210_v23, %v4123_v0 }
 0x427   : > { %v1233_v6 = vadd.f32 %v1225_v20, %v1185_v11  ;;  %v1265_v51 = vadd.f32 %v1257_v2, %v1249_v19  ;;  %v5493_v11 = vld [vmem:[#allocation21_spill] sm:$0xff] }
 0x429   : > { %v1241_v12 = vmax.f32 %v4809_v28, %v1233_v6  ;;  %v1522_v57 = vpop.permute.xlu1 %1521  ;;  %v1937_v28 = vadd.f32 %v5494_v48, %v5493_v11 }
 0x42a   : > { %v1543_v58 = vmul.f32 %v1522_v57, %v4125_v1  ;;  %v1575_v16 = vmul.f32 %v1522_v57, %v4120_v63  ;;  %1697 = vperm.xlu1 %3415, %v4841_v24   ;;  %v1647_v6 = vmul.f32 %v1522_v57, %v4123_v0 }
 0x42c   : > { %v1551_v25 = vadd.f32 %v1543_v58, %v1503_v62  ;;  %v1583_v52 = vadd.f32 %v1575_v16, %v1567_v35 }
 0x42e   : > { %v1559_v32 = vmax.f32 %v4815_v37, %v1551_v25  ;;  %v974_v44 = vpop.permute.xlu1 %973  ;;  %3417 = vset.pattern.permute.xlu1 %v5475_v10 }
 0x42f   : > { %v986_v4 = vmul.f32 %v974_v44, %v4125_v1  ;;  %v1018_v5 = vmul.f32 %v974_v44, %v4120_v63  ;;  %1777 = vperm.xlu1 %3417, %v4841_v24  }
 0x431   : > { %v994_v46 = vadd.f32 %v986_v4, %v946_v42  ;;  %v1026_v18 = vadd.f32 %v1018_v5, %v1010_v29 }
 0x433   : > { %v4855_v14 = vmax.f32 %v922_v54, %v994_v46  ;;  %v2147_v56 = vpop.f32.mrb[4].mxu1  ;;  %v1286_v26 = vpop.permute.xlu1 %1285 }
 0x434   : > { %v2154_v55 = vadd.f32 %v2147_v56, %v1935_v3  ;;  %v1304_v62 = vmul.f32 %v1286_v26, %v4125_v1  ;;  %v1336_v59 = vmul.f32 %v1286_v26, %v4120_v63  ;;  %v2149_v37 = vpop.f32.mrb[5].mxu1 }
 0x435   : > { %v2155_v27 = vadd.f32 %v2149_v37, %v1937_v28  ;;  %v2151_v31 = vpop.f32.mrb[6].mxu1 }
 0x436   : > { %v3135_v13 = vmul.f32 -1.442695, %v2154_v55  ;;  %v1312_v42 = vadd.f32 %v1304_v62, %v1264_v8  ;;  %v1344_v22 = vadd.f32 %v1336_v59, %v1328_v60  ;;  %v2152_v17 = vpop.f32.mrb[7].mxu1  ;;  %v1408_v60 = vmul.f32 %v1286_v26, %v4123_v0 }
 0x437   : > { %v3136_v36 = vmul.f32 -1.442695, %v2155_v27  ;;  %v1290_v40 = vpop.permute.xlu1 %1289 }
 0x438   : > { %3482 = vpow2.f32 %v3135_v13  ;;  %v4860_v54 = vmax.f32 %v1240_v33, %v1312_v42  ;;  %v1305_v19 = vmul.f32 %v1290_v40, %v4125_v1  ;;  %v1337_v61 = vmul.f32 %v1290_v40, %v4120_v63 }
 0x439   : > { %3484 = vpow2.f32 %v3136_v36  ;;  %v1090_v33 = vmul.f32 %v974_v44, %v4123_v0  ;;  %v1409_v56 = vmul.f32 %v1290_v40, %v4123_v0 }
 0x43a   : > { %v1313_v20 = vadd.f32 %v1305_v19, %v1265_v51  ;;  %v1345_v2 = vadd.f32 %v1337_v61, %v1329_v45 }
 0x43c   : > { %v4865_v35 = vmax.f32 %v1241_v12, %v1313_v20  ;;  %v1602_v23 = vpop.permute.xlu1 %1601 }
 0x43d   : > { %v1623_v8 = vmul.f32 %v1602_v23, %v4125_v1  ;;  %v1655_v58 = vmul.f32 %v1602_v23, %v4120_v63 }
 0x43f   : > { %v1631_v16 = vadd.f32 %v1623_v8, %v1583_v52  ;;  %v1663_v25 = vadd.f32 %v1655_v58, %v1647_v6  ;;  %v3554_v58 = vld [vmem:[%s3981_s30 + $0x10] sm:$0xff] }
 0x441   : > { %v4870_v29 = vmax.f32 %v1559_v32, %v1631_v16  ;;  %v1054_v4 = vpop.permute.xlu1 %1053 }
 0x442   : > { %v3483_v5 = vpop.eup %3482  ;;  %v1066_v51 = vmul.f32 %v1054_v4, %v4125_v1  ;;  %v1098_v46 = vmul.f32 %v1054_v4, %v4120_v63 }
 0x443   : > { %v3485_v57 = vpop.eup %3484  ;;  %v2162_v48 = vadd.f32 1.0, %v3483_v5 }
 0x444   : > { %v2163_v12 = vadd.f32 1.0, %v3485_v57  ;;  %v1074_v21 = vadd.f32 %v1066_v51, %v1026_v18  ;;  %v1106_v3 = vadd.f32 %v1098_v46, %v1090_v33  ;;  %v3555_v46 = vld [vmem:[%s3981_s30 + $0x20] sm:$0xff] }
 0x446   : > { %3486 = vrcp.f32 %v2163_v12  ;;  %v1082_v52 = vmax.f32 %v4855_v14, %v1074_v21  ;;  %v1366_v28 = vpop.permute.xlu1 %1365  ;;  %v1170_v21 = vmul.f32 %v1054_v4, %v4123_v0 }
 0x447   : > { %v1384_v32 = vmul.f32 %v1366_v28, %v4125_v1  ;;  %v1416_v44 = vmul.f32 %v1366_v28, %v4120_v63  ;;  %3488 = vrcp.f32 %v2162_v48 }
 0x449   : > { %v1392_v55 = vadd.f32 %v1384_v32, %v1344_v22  ;;  %v1424_v62 = vadd.f32 %v1416_v44, %v1408_v60  ;;  %v1488_v44 = vmul.f32 %v1366_v28, %v4123_v0 }
 0x44a   : > { %v1370_v59 = vpop.permute.xlu1 %1369 }
 0x44b   : > { %v1400_v18 = vmax.f32 %v4860_v54, %v1392_v55  ;;  %v1385_v37 = vmul.f32 %v1370_v59, %v4125_v1  ;;  %v1417_v26 = vmul.f32 %v1370_v59, %v4120_v63 }
 0x44d   : > { %v1393_v27 = vadd.f32 %v1385_v37, %v1345_v2  ;;  %v1425_v31 = vadd.f32 %v1417_v26, %v1409_v56  ;;  %v1489_v37 = vmul.f32 %v1370_v59, %v4123_v0  ;;  %v5495_v59 = vld [vmem:[#allocation26_spill] sm:$0xff] }
 0x44f   : > { %v1401_v14 = vmax.f32 %v4865_v35, %v1393_v27  ;;  %v1682_v45 = vpop.permute.xlu1 %1681 }
 0x450   : > { %v4883_v13 = vpop.eup %3486  ;;  %v1703_v42 = vmul.f32 %v1682_v45, %v4125_v1  ;;  %v1735_v33 = vmul.f32 %v1682_v45, %v4120_v63 }
 0x451   : > { %v2168_v22 = vmul.f32 2.0, %v4883_v13  ;;  %v4887_v40 = vpop.eup %3488 }
 0x452   : > { %v1711_v17 = vadd.f32 %v1703_v42, %v1663_v25  ;;  %v1727_v25 = vmul.f32 %v1602_v23, %v4123_v0  ;;  %v1251_v42 = vmul.f32 %v5495_v59, %v4123_v0 }
 0x453   : > { %v3137_v36 = vadd.f32 -1.0, %v2168_v22  ;;  %v1259_v22 = vmul.f32 %v4628_v39, %v4120_v63 }
 0x454   : > { %v1719_v54 = vmax.f32 %v4870_v29, %v1711_v17  ;;  %v4890_v19 = vpop.permute.xlu1 %1133  ;;  %v1743_v12 = vadd.f32 %v1735_v33, %v1727_v25 }
 0x455   : > { %v1146_v61 = vmul.f32 %v4890_v19, %v4125_v1  ;;  %v2171_v20 = vmul.f32 %v4887_v40, %v3137_v36 }
 0x457   : > { %v1154_v2 = vadd.f32 %v1146_v61, %v1106_v3  ;;  %2173 = vrot.lane.b32.xlu0 %v2171_v20, %s3744_s26  ;;  %v1178_v3 = vmul.f32 %v4890_v19, %v4120_v63  ;;  %v1267_v61 = vadd.f32 %v1259_v22, %v1251_v42  ;;  %v5498_v42 = vld [vmem:[#allocation25_spill] sm:$0xff] }
 0x458   : > { %v5016_v22 = vmul.f32 %v5498_v42, %v4125_v1 }
 0x459   : > { %v4896_v6 = vmax.f32 %v1082_v52, %v1154_v2  ;;  %v4898_v35 = vpop.permute.xlu1 %1445  ;;  %v1186_v32 = vadd.f32 %v1178_v3, %v1170_v21 }
 0x45a   : > { %v1464_v8 = vmul.f32 %v4898_v35, %v4125_v1  ;;  %v1496_v56 = vmul.f32 %v4898_v35, %v4120_v63 }
 0x45b   : > { %1677 = vperm.xlu0 %3403, %v3554_v58  }
 0x45c   : > { %v1472_v16 = vadd.f32 %v1464_v8, %v1424_v62 }
 0x45d   : > { %v4905_v29 = vpop.permute.xlu1 %1449 }
 0x45e   : > { %v4907_v5 = vmax.f32 %v1400_v18, %v1472_v16  ;;  %v1465_v51 = vmul.f32 %v4905_v29, %v4125_v1  ;;  %v1497_v26 = vmul.f32 %v4905_v29, %v4120_v63 }
 0x45f   : > { %1685 = vperm.xlu0 %3403, %v3555_v46  }
 0x460   : > { %v1473_v57 = vadd.f32 %v1465_v51, %v1425_v31  ;;  %v1294_v51 = vpop.permute.xlu0 %1293 }
 0x462   : > { %v4915_v60 = vmax.f32 %v1401_v14, %v1473_v57  ;;  %v1762_v23 = vpop.permute.xlu1 %1761  ;;  %v1505_v14 = vadd.f32 %v1497_v26, %v1489_v37  ;;  %v5496_v57 = vld [vmem:[#allocation24_spill] sm:$0xff]  ;;  %v1306_v37 = vmul.f32 %v1294_v51, %v4125_v1  ;;  %v1414_v26 = vmul.f32 %v4409_v47, %v4120_v63 }
 0x463   : > { %v1783_v48 = vmul.f32 %v1762_v23, %v4125_v1  ;;  %3407 = vset.pattern.permute.xlu0 %v5482_v50  ;;  %v1504_v50 = vadd.f32 %v1496_v56, %v1488_v44  ;;  %v1338_v56 = vmul.f32 %v1294_v51, %v4120_v63 }
 0x464   : > { %1437 = vperm.xlu0 %3407, %v3554_v58  }
 0x465   : > { %v1791_v52 = vadd.f32 %v1783_v48, %v1743_v12  ;;  %v2170_v12 = vmul.f32 %v4887_v40, %v5496_v57 }
 0x467   : > { %v4922_v55 = vmax.f32 %v1719_v54, %v1791_v52  ;;  %v1214_v4 = vpop.permute.xlu1 %1213 }
 0x468   : > { %1457 = vperm.xlu0 %3407, %v4841_v24   ;;  %v1226_v62 = vmul.f32 %v1214_v4, %v4125_v1  ;;  %v1258_v23 = vmul.f32 %v1214_v4, %v4120_v63  ;;  %v1330_v44 = vmul.f32 %v1214_v4, %v4123_v0 }
 0x46a   : > { %v4926_v18 = vadd.f32 %v1226_v62, %v1186_v32  ;;  %v1568_v32 = vmul.f32 %v4898_v35, %v4123_v0  ;;  %v5497_v35 = vld [vmem:[#allocation28_spill] sm:$0xff] }
 0x46b   : > { %v1406_v4 = vmul.f32 %v5497_v35, %v4123_v0 }
 0x46c   : > { %v1242_v28 = vmax.f32 %v4896_v6, %v4926_v18  ;;  %3410 = vset.pattern.permute.xlu0 %v5484_v7  ;;  %v4934_v27 = vpop.permute.xlu1 %1525 }
 0x46d   : > { %v1544_v31 = vmul.f32 %v4934_v27, %v4125_v1  ;;  %1517 = vperm.xlu0 %3410, %v3554_v58   ;;  %v3556_v58 = vld [vmem:[%s3981_s30 + $0x28] sm:$0xff]  ;;  %s3654_s30 = sshll.u32 %s3747_s27, 4  ;;  %s3655_s30 = int_to_ptr.vmem [resolvable:$false] %s3654_s30 }
 0x46e   : > { %p3657_p3 = scmp.lt.s32.totalorder %s5346_s12, %s3655_s30 }
 0x46f   : > { %v4938_v45 = vadd.f32 %v1544_v31, %v1504_v50  ;;  %v1410_v31 = vmul.f32 %v1294_v51, %v4123_v0  ;;  %v5027_v51 = vmul.f32 %v5498_v42, %v4123_v0 }
 0x470   : > { %v4944_v17 = vpop.permute.xlu1 %1529 }
 0x471   : > { %v1560_v7 = vmax.f32 %v4907_v5, %v4938_v45  ;;  %v1545_v36 = vmul.f32 %v4944_v17, %v4125_v1  ;;  %1533 = vperm.xlu0 %3410, %v4827_v53   ;;  %v5071_v6 = vmul.f32 %v4944_v17, %v4123_v0 }
 0x473   : > { %v4951_v54 = vadd.f32 %v1545_v36, %v1505_v14  ;;  %v5020_v36 = vmul.f32 %v5498_v42, %v4120_v63 }
 0x475   : > { %v1561_v20 = vmax.f32 %v4915_v60, %v4951_v54  ;;  %3412 = vset.pattern.permute.xlu0 %v5472_v49  ;;  %v4956_v2 = vpop.permute.xlu1 %1297 }
 0x476   : > { %v1307_v8 = vmul.f32 %v4956_v2, %v4125_v1  ;;  %1609 = vperm.xlu0 %3412, %v3556_v58   ;;  %v1339_v50 = vmul.f32 %v4956_v2, %v4120_v63  ;;  %v1411_v35 = vmul.f32 %v4956_v2, %v4123_v0 }
 0x478   : > { %v1315_v16 = vadd.f32 %v1307_v8, %v1267_v61  ;;  %v1346_v8 = vadd.f32 %v1338_v56, %v1330_v44  ;;  %v1648_v44 = vmul.f32 %v4934_v27, %v4123_v0 }
 0x47a   : > { %v4964_v25 = vmax.f32 %v1243_v9, %v1315_v16  ;;  %1617 = vperm.xlu0 %3412, %v4841_v24   ;;  %v4969_v49 = vpop.permute.xlu1 %1605  ;;  %v1250_v24 = vmul.f32 %v4890_v19, %v4123_v0  ;;  %v1331_v19 = vmul.f32 %v4628_v39, %v4123_v0  ;;  %v1486_v39 = vmul.f32 %v4409_v47, %v4123_v0 }
 0x47b   : > { %v1624_v58 = vmul.f32 %v4969_v49, %v4125_v1  ;;  %v1656_v56 = vmul.f32 %v4969_v49, %v4120_v63 }
 0x47c   : > { %v1266_v62 = vadd.f32 %v1258_v23, %v1250_v24  ;;  %v1347_v57 = vadd.f32 %v1339_v50, %v1331_v19  ;;  %v1422_v24 = vadd.f32 %v1414_v26, %v1406_v4 }
 0x47d   : > { %v1664_v18 = vadd.f32 %v1656_v56, %v1648_v44 }
 0x47e   : > { %3416 = vset.pattern.permute.xlu0 %v5475_v10  ;;  %v1314_v47 = vadd.f32 %v1306_v37, %v1266_v62  ;;  %v5048_v62 = vld [vmem:[%s5390_s2] ss:$0 sm:$0xff] }
 0x47f   : > { %1773 = vperm.xlu0 %3416, %v4827_v53   ;;  %v1374_v33 = vpop.permute.xlu1 %1373  ;;  %v5052_v37 = vadd.f32 %v5048_v62, %v4922_v55 }
 0x480   : > { %v1418_v14 = vmul.f32 %v1374_v33, %v4120_v63  ;;  %v1386_v16 = vmul.f32 %v1374_v33, %v4125_v1  ;;  %v1322_v26 = vmax.f32 %v1242_v28, %v1314_v47  ;;  %v1490_v55 = vmul.f32 %v1374_v33, %v4123_v0 }
 0x481   : > { %v1728_v28 = vmul.f32 %v4969_v49, %v4123_v0 }
 0x482   : > { %v1426_v23 = vadd.f32 %v1418_v14, %v1410_v31  ;;  %v1394_v50 = vadd.f32 %v1386_v16, %v1346_v8 }
 0x483   : > { %v4971_v46 = vpop.permute.xlu1 %1377 }
 0x484   : > { %v1419_v31 = vmul.f32 %v4971_v46, %v4120_v63  ;;  %v1402_v16 = vmax.f32 %v1322_v26, %v1394_v50  ;;  %v1491_v47 = vmul.f32 %v4971_v46, %v4123_v0 }
 0x488   : > { %v4977_v15 = vpop.permute.xlu1 %1689 }
 0x489   : > { %v5089_v49 = vmul.f32 %v4977_v15, %v4125_v1  ;;  %v5094_v45 = vmul.f32 %v4977_v15, %v4120_v63 }
 0x48d   : > { %v4980_v34 = vpop.permute.xlu1 %1453 }
 0x48e   : > { %v1570_v43 = vmul.f32 %v4980_v34, %v4123_v0 }
 0x492   : > { %v4982_v10 = vpop.permute.xlu1 %1765 }
 0x493   : > { %v1784_v30 = vmul.f32 %v4982_v10, %v4125_v1 }
 0x496   : > { %v4991_v52 = vpop.permute.xlu1 %1769 }
 0x4c9   : > { %v2174_v21 = vpop.permute.xlu0 %2173 }
 0x4ca   : > { %v4975_v3 = vadd.f32 %v2174_v21, %v2170_v12  ;;  %v1387_v12 = vmul.f32 %v4971_v46, %v4125_v1  ;;  %v1538_v21 = vpop.permute.xlu1 %1537 }
 0x4cc   : > { %3490 = vtanh.f32 %v4975_v3  ;;  %v5060_v4 = vadd.f32 %v1387_v12, %v1347_v57  ;;  %v1427_v12 = vadd.f32 %v1419_v31, %v1411_v35 }
 0x4ce   : > { %v1614_v14 = vpop.permute.xlu1 %1613 }
 0x4cf   : > { %v1730_v10 = vmul.f32 %v1614_v14, %v4123_v0  ;;  %v1626_v31 = vmul.f32 %v1614_v14, %v4125_v1 }
 0x4d6   : > { %v3491_v9 = vpop.eup %3490 }
 0x4d7   : > { %v2178_v53 = vmul.f32 %v3491_v9, %v4883_v13  ;;  %v1576_v13 = vmul.f32 %v4934_v27, %v4120_v63  ;;  %v5499_v9 = vld [vmem:[#allocation27_spill] sm:$0xff] }
 0x4d9   : > { %v2181_v40 = vpack.c.bf16 %v2178_v53, %v2178_v53  ;;  %v1584_v61 = vadd.f32 %v1576_v13, %v1568_v32  ;;  %v5033_v53 = vmul.f32 %v5499_v9, %v4125_v1  ;;  %v1569_v32 = vmul.f32 %v4905_v29, %v4123_v0 }
 0x4da   : > { %v4988_v48 = vpop.permute.xlu0 %1677  ;;  %v1577_v13 = vmul.f32 %v4944_v17, %v4120_v63  ;;  %v1403_v17 = vmax.f32 %v4964_v25, %v5060_v4  ;;  %v5105_v25 = vmul.f32 %v4991_v52, %v4125_v1  ;;  %v1547_v9 = vmul.f32 %v1538_v21, %v4125_v1 }
 0x4db   : > { %2183 = vrot.lane.b32.xlu1 %v2181_v40, %s3744_s26  ;;  %v1466_v40 = vmul.f32 %v4980_v34, %v4125_v1  ;;  %v1632_v29 = vadd.f32 %v1624_v58, %v1584_v61  ;;  %v1498_v61 = vmul.f32 %v4980_v34, %v4120_v63  ;;  %v1734_v15 = vmul.f32 %v4988_v48, %v4120_v63 }
 0x4dc   : > { %v5067_v58 = vadd.f32 %v1577_v13, %v1569_v32  ;;  %v1702_v56 = vmul.f32 %v4988_v48, %v4125_v1  ;;  %v1658_v48 = vmul.f32 %v1614_v14, %v4120_v63 }
 0x4dd   : > { %v1474_v42 = vadd.f32 %v1466_v40, %v1426_v23  ;;  %v5078_v33 = vmax.f32 %v1560_v7, %v1632_v29  ;;  %v1506_v46 = vadd.f32 %v1498_v61, %v1490_v55  ;;  %v1579_v23 = vmul.f32 %v1538_v21, %v4120_v63 }
 0x4de   : > { %v5010_v59 = vpop.permute.xlu0 %1685  ;;  %v5112_v40 = vmul.f32 %v1538_v21, %v4123_v0 }
 0x4df   : > { %v5096_v7 = vmax.f32 %v1402_v16, %v1474_v42  ;;  %v1736_v21 = vmul.f32 %v5010_v59, %v4120_v63  ;;  %v1742_v42 = vadd.f32 %v1734_v15, %v5027_v51 }
 0x4e3   : > { %v1438_v19 = vpop.permute.xlu0 %1437 }
 0x4e4   : > { %v1462_v27 = vmul.f32 %v1438_v19, %v4125_v1  ;;  %v1494_v5 = vmul.f32 %v1438_v19, %v4120_v63 }
 0x4e6   : > { %v1470_v8 = vadd.f32 %v1462_v27, %v1422_v24  ;;  %v1694_v24 = vpop.permute.xlu1 %1693  ;;  %v1502_v32 = vadd.f32 %v1494_v5, %v1486_v39 }
 0x4e7   : > { %v1458_v2 = vpop.permute.xlu0 %1457  ;;  %v1738_v29 = vmul.f32 %v1694_v24, %v4120_v63  ;;  %v1706_v55 = vmul.f32 %v1694_v24, %v4125_v1 }
 0x4e8   : > { %v1478_v57 = vmax.f32 %v1398_v41, %v1470_v8  ;;  %v1566_v41 = vmul.f32 %v1438_v19, %v4123_v0  ;;  %v1704_v19 = vmul.f32 %v5010_v59, %v4125_v1  ;;  %v1467_v50 = vmul.f32 %v1458_v2, %v4125_v1 }
 0x4e9   : > { %v1499_v35 = vmul.f32 %v1458_v2, %v4120_v63 }
 0x4ea   : > { %v1698_v16 = vpop.permute.xlu1 %1697  ;;  %v1712_v5 = vadd.f32 %v1704_v19, %v1664_v18 }
 0x4eb   : > { %v1707_v51 = vmul.f32 %v1698_v16, %v4125_v1 }
 0x4ec   : > { %v1518_v34 = vpop.permute.xlu0 %1517 }
 0x4ed   : > { %v1542_v44 = vmul.f32 %v1518_v34, %v4125_v1  ;;  %v1574_v52 = vmul.f32 %v1518_v34, %v4120_v63  ;;  %v1646_v13 = vmul.f32 %v1518_v34, %v4123_v0  ;;  %v1746_v34 = vadd.f32 %v1738_v29, %v1730_v10 }
 0x4ee   : > { %v1720_v10 = vmax.f32 %v5078_v33, %v1712_v5  ;;  %v5500_v5 = vmov 0  }
 0x4ef   : > { %v1550_v39 = vadd.f32 %v1542_v44, %v1502_v32  ;;  %v1582_v27 = vadd.f32 %v1574_v52, %v1566_v41  ;;  %v1662_v26 = vadd.f32 %v5020_v36, %v1646_v13  ;;  %v1744_v41 = vadd.f32 %v1736_v21, %v1728_v28 }
 0x4f0   : > { %v1534_v4 = vpop.permute.xlu0 %1533  ;;  %v1475_v32 = vadd.f32 %v1467_v50, %v1427_v12  ;;  %v1571_v44 = vmul.f32 %v1458_v2, %v4123_v0  ;;  %v1507_v13 = vadd.f32 %v1499_v35, %v1491_v47 }
 0x4f1   : > { %v1558_v59 = vmax.f32 %v1478_v57, %v1550_v39  ;;  %v1630_v61 = vadd.f32 %v5016_v22, %v1582_v27  ;;  %v1546_v8 = vmul.f32 %v1534_v4, %v4125_v1  ;;  %v1578_v36 = vmul.f32 %v1534_v4, %v4120_v63  ;;  %v1778_v39 = vpop.permute.xlu1 %1777 }
 0x4f2   : > { %v1710_v14 = vadd.f32 %v1702_v56, %v1662_v26  ;;  %v1650_v24 = vmul.f32 %v1534_v4, %v4123_v0  ;;  %v1739_v22 = vmul.f32 %v1698_v16, %v4120_v63  ;;  %v1790_v57 = vadd.f32 %v5033_v53, %v1742_v42 }
 0x4f3   : > { %v1638_v52 = vmax.f32 %v1558_v59, %v1630_v61  ;;  %v1554_v18 = vadd.f32 %v1546_v8, %v1506_v46  ;;  %v1586_v28 = vadd.f32 %v1578_v36, %v1570_v43  ;;  %v1792_v12 = vadd.f32 %v1784_v30, %v1744_v41 }
 0x4f4   : > { %v1483_v47 = vmax.f32 %v1403_v17, %v1475_v32  ;;  %v1587_v21 = vadd.f32 %v1579_v23, %v1571_v44  ;;  %v1555_v27 = vadd.f32 %v1547_v9, %v1507_v13  ;;  %v1666_v26 = vadd.f32 %v1658_v48, %v1650_v24 }
 0x4f5   : > { %v1718_v15 = vmax.f32 %v1638_v52, %v1710_v14  ;;  %v1610_v19 = vpop.permute.xlu0 %1609  ;;  %v1562_v43 = vmax.f32 %v5096_v7, %v1554_v18  ;;  %v1634_v33 = vadd.f32 %v1626_v31, %v1586_v28  ;;  %v1800_v48 = vmax.f32 %v1720_v10, %v1792_v12  ;;  %v5188_v18 = vld [vmem:[#allocation7 + $0x34] ss:$8 sps:$4 sm:$0xff]   ;;  %v5191_v28 = vld [vmem:[#allocation7 + $0x30] ss:$8 sps:$4 sm:$0xff]  }
 0x4f6   : > { %v1625_v2 = vmul.f32 %v1610_v19, %v4125_v1  ;;  %v1657_v56 = vmul.f32 %v1610_v19, %v4120_v63  ;;  %v1729_v29 = vmul.f32 %v1610_v19, %v4123_v0  ;;  %v1563_v42 = vmax.f32 %v1483_v47, %v1555_v27  ;;  %v3565_v19 = vld [vmem:[#allocation7 + $0x4] ss:$8 sps:$4 sm:$0xff]  }
 0x4f7   : > { %v1798_v50 = vmax.f32 %v1718_v15, %v1790_v57  ;;  %v1642_v60 = vmax.f32 %v1562_v43, %v1634_v33  ;;  %v1714_v54 = vadd.f32 %v1706_v55, %v1666_v26  ;;  %v1815_v41 = vadd.f32 %v5048_v62, %v1800_v48  ;;  %v5182_v57 = vld [vmem:[#allocation7 + $0x24] ss:$8 sps:$4 sm:$0xff]   ;;  %v5185_v15 = vld [vmem:[#allocation7 + $0x20] ss:$8 sps:$4 sm:$0xff]  }
 0x4f8   : > { %v1633_v53 = vadd.f32 %v1625_v2, %v5067_v58  ;;  %v1665_v46 = vadd.f32 %v1657_v56, %v5071_v6  ;;  %v1745_v30 = vadd.f32 %v5094_v45, %v1729_v29  ;;  %v1787_v58 = vmul.f32 %v1778_v39, %v4125_v1 }
 0x4f9   : > { %v1618_v35 = vpop.permute.xlu0 %1617  ;;  %v1813_v4 = vadd.f32 %v5048_v62, %v1798_v50  ;;  %v1722_v32 = vmax.f32 %v1642_v60, %v1714_v54 }
 0x4fa   : > { %v1641_v17 = vmax.f32 %v1561_v20, %v1633_v53  ;;  %v1713_v23 = vadd.f32 %v5089_v49, %v1665_v46  ;;  %v1627_v9 = vmul.f32 %v1618_v35, %v4125_v1  ;;  %v1793_v6 = vadd.f32 %v5105_v25, %v1745_v30 }
 0x4fb   : > { %v1659_v7 = vmul.f32 %v1618_v35, %v4120_v63  ;;  %v1731_v31 = vmul.f32 %v1618_v35, %v4123_v0  ;;  %v1820_v45 = vpack.c.bf16 %v5052_v37, %v1813_v4 }
 0x4fc   : > { %v1721_v59 = vmax.f32 %v1641_v17, %v1713_v23  ;;  %v1635_v61 = vadd.f32 %v1627_v9, %v1587_v21 }
 0x4fd   : > { %v1667_v20 = vadd.f32 %v1659_v7, %v5112_v40  ;;  %v1747_v49 = vadd.f32 %v1739_v22, %v1731_v31  ;;  %3120 = vmatmul.mubr.msk.bf16.gmra.mrb[4].mxu0 %vm1883_vm0, %v1820_v45  ;;  %v5176_v22 = vld [vmem:[#allocation7 + $0x14] ss:$8 sps:$4 sm:$0xff]  }
 0x4fe   : > { %v1801_v8 = vmax.f32 %v1721_v59, %v1793_v6  ;;  %v1643_v16 = vmax.f32 %v1563_v42, %v1635_v61  ;;  %v1774_v25 = vpop.permute.xlu0 %1773  ;;  %1948 = vmatprep.mubr.bf16.mxu0 %v5500_v5 }
 0x4ff   : > { %v1715_v63 = vadd.f32 %v1707_v51, %v1667_v20  ;;  %v1795_v0 = vadd.f32 %v1787_v58, %v1747_v49  ;;  %v1786_v37 = vmul.f32 %v1774_v25, %v4125_v1 }
 0x500   : > { %v1816_v36 = vadd.f32 %v5048_v62, %v1801_v8 }
 0x501   : > { %v1723_v55 = vmax.f32 %v1643_v16, %v1715_v63  ;;  %v1794_v44 = vadd.f32 %v1786_v37, %v1746_v34  ;;  %v5172_v34 = vld [vmem:[#allocation7] ss:$8 sps:$4 sm:$0xff]  }
 0x502   : > { %v1821_v40 = vpack.c.bf16 %v1816_v36, %v1815_v41 }
 0x503   : > { %v1803_v52 = vmax.f32 %v1723_v55, %v1795_v0  ;;  %v1802_v14 = vmax.f32 %v1722_v32, %v1794_v44 }
 0x505   : > { %v1818_v13 = vadd.f32 %v5048_v62, %v1803_v52  ;;  %v1817_v24 = vadd.f32 %v5048_v62, %v1802_v14  ;;  %3121 = vmatmul.mubr.msk.bf16.gmra.mrb[8].mxu0 %vm1883_vm0, %v1821_v40  ;;  %v5179_v62 = vld [vmem:[#allocation7 + $0x10] ss:$8 sps:$4 sm:$0xff]  }
 0x506   : > { %1958 = vmatprep.mubr.bf16.mxu0 %v5500_v5 }
 0x507   : > { %v1822_v51 = vpack.c.bf16 %v1818_v13, %v1817_v24 }
 0x50d   : > { %3122 = vmatmul.mubr.msk.bf16.gmra.mrb[12].mxu0 %vm1883_vm0, %v1822_v51 }
 0x50e   : > { %2220 = vmatprep.mubr.bf16.mxu0 %v5500_v5 }
 0x54d   : > { %v2184_v1 = vpop.permute.xlu1 %2183 }
 0x54e   : > { %3138 = vmatmul.mubr.msk.bf16.vlgmr.msra.gmra.mrb[16].mxu0 %vm1883_vm0, %v2184_v1 }
 0x54f   : > { %2339 = vmatpush1.bf16.msra.mxu0 %v5172_v34  ;;  %2370 = vmatprep.mubr.bf16.mxu0 %v5500_v5 }
 0x550   : > { %2340 = vmatprep.subr.bf16.mxu0 %v5176_v22 }
 0x553   : > { %2341 = vmatpush1.bf16.msra.mxu0 %v5179_v62 }
 0x554   : > { %2342 = vmatprep.subr.bf16.mxu0 %v5182_v57 }
 0x557   : > { %2343 = vmatpush1.bf16.msra.mxu0 %v5185_v15 }
 0x558   : > { %2344 = vmatprep.subr.bf16.mxu0 %v5188_v18 }
 0x55b   : > { %2345 = vmatpush1.bf16.msra.mxu0 %v5191_v28 }
 0x55c   : > { %2488 = vmatprep.subr.bf16.mxu0 %v3565_v19 }
 0x5d0   : > { %v1940_v10 = vpop.f32.mrb[4].mxu0 }
 0x5d1   : > { %v1942_v12 = vpop.f32.mrb[5].mxu0  ;;  %v1941_v46 = vadd.f32 %v1940_v10, %v4280_v38 }
 0x5d2   : > { %v1944_v2 = vpop.f32.mrb[6].mxu0  ;;  %v1943_v43 = vadd.f32 %v1942_v12, %v5493_v11 }
 0x5d3   : > { %v1946_v56 = vpop.f32.mrb[7].mxu0 }
 0x5d4   : > { %v1947_v0 = vadd.f32 %v1946_v56, %v5493_v11 }
 0x5d8   : > { %v5194_v47 = vpop.f32.mrb[8].mxu0 }
 0x5d9   : > { %v5196_v21 = vpop.f32.mrb[9].mxu0 }
 0x5da   : > { %v5198_v29 = vpop.f32.mrb[10].mxu0 }
 0x5db   : > { %v5200_v50 = vpop.f32.mrb[11].mxu0 }
 0x5e0   : > { %v5202_v39 = vpop.f32.mrb[12].mxu0 }
 0x5e1   : > { %v5204_v27 = vpop.f32.mrb[13].mxu0 }
 0x5e2   : > { %v5206_v26 = vpop.f32.mrb[14].mxu0 }
 0x5e3   : > { %v5208_v53 = vpop.f32.mrb[15].mxu0 }
 0x621   : > { %v2222_v33 = vpop.f32.mrb[16].mxu0 }
 0x622   : > { %v2229_v30 = vadd.f32 %v2222_v33, %v1941_v46  ;;  %v2224_v35 = vpop.f32.mrb[17].mxu0 }
 0x623   : > { %v2230_v4 = vadd.f32 %v2224_v35, %v1943_v43  ;;  %v2226_v17 = vpop.f32.mrb[18].mxu0 }
 0x624   : > { %v3139_v23 = vmul.f32 -1.442695, %v2229_v30  ;;  %v2227_v9 = vpop.f32.mrb[19].mxu0  ;;  %v1951_v17 = vadd.f32 %v5194_v47, %v4280_v38 }
 0x625   : > { %v3140_v58 = vmul.f32 -1.442695, %v2230_v4 }
 0x626   : > { %3492 = vpow2.f32 %v3139_v23  ;;  %v1953_v23 = vadd.f32 %v5196_v21, %v5493_v11 }
 0x627   : > { %3494 = vpow2.f32 %v3140_v58 }
 0x630   : > { %v3493_v6 = vpop.eup %3492 }
 0x631   : > { %v3495_v7 = vpop.eup %3494  ;;  %v2237_v45 = vadd.f32 1.0, %v3493_v6 }
 0x632   : > { %v2238_v31 = vadd.f32 1.0, %v3495_v7 }
 0x634   : > { %3496 = vrcp.f32 %v2238_v31 }
 0x635   : > { %3498 = vrcp.f32 %v2237_v45 }
 0x63e   : > { %v3497_v48 = vpop.eup %3496 }
 0x63f   : > { %v2243_v42 = vmul.f32 2.0, %v3497_v48  ;;  %v3499_v61 = vpop.eup %3498 }
 0x640   : > { %v2245_v54 = vmul.f32 %v3499_v61, %v4975_v3  ;;  %v1945_v3 = vadd.f32 %v1944_v2, %v4280_v38 }
 0x641   : > { %v3141_v59 = vadd.f32 -1.0, %v2243_v42 }
 0x643   : > { %v2246_v60 = vmul.f32 %v3499_v61, %v3141_v59 }
 0x645   : > { %2248 = vrot.lane.b32.xlu0 %v2246_v60, %s3744_s26 }
 0x6b7   : > { %v2249_v20 = vpop.permute.xlu0 %2248 }
 0x6b8   : > { %v2251_v49 = vadd.f32 %v2249_v20, %v2245_v54 }
 0x6ba   : > { %3500 = vtanh.f32 %v2251_v49 }
 0x6c4   : > { %v3501_v8 = vpop.eup %3500 }
 0x6c5   : > { %v2253_v16 = vmul.f32 %v3501_v8, %v3497_v48 }
 0x6c7   : > { %v2256_v25 = vpack.c.bf16 %v2253_v16, %v2253_v16 }
 0x6c9   : > { %2258 = vrot.lane.b32.xlu1 %v2256_v25, %s3744_s26 }
 0x73b   : > { %v2259_v63 = vpop.permute.xlu1 %2258 }
 0x73c   : > { %3142 = vmatmul.mubr.msk.bf16.vlgmr.msra.gmra.mrb[8].mxu1 %vm1883_vm0, %v2259_v63 }
 0x73d   : > { %2414 = vmatpush1.bf16.msra.mxu1 %v5172_v34  ;;  %2445 = vmatprep.mubr.bf16.mxu1 %v5500_v5 }
 0x73e   : > { %2415 = vmatprep.subr.bf16.mxu1 %v5176_v22 }
 0x741   : > { %2416 = vmatpush1.bf16.msra.mxu1 %v5179_v62 }
 0x742   : > { %2417 = vmatprep.subr.bf16.mxu1 %v5182_v57 }
 0x745   : > { %2418 = vmatpush1.bf16.msra.mxu1 %v5185_v15 }
 0x746   : > { %2419 = vmatprep.subr.bf16.mxu1 %v5188_v18 }
 0x749   : > { %2420 = vmatpush1.bf16.msra.mxu1 %v5191_v28 }
 0x74a   : > { %2563 = vmatprep.subr.bf16.mxu1 %v3565_v19 }
 0x80f   : > { %v2297_v37 = vpop.f32.mrb[8].mxu1 }
 0x810   : > { %v2304_v41 = vadd.f32 %v2297_v37, %v1945_v3  ;;  %v2299_v36 = vpop.f32.mrb[9].mxu1 }
 0x811   : > { %v2305_v32 = vadd.f32 %v2299_v36, %v1947_v0  ;;  %v2301_v55 = vpop.f32.mrb[10].mxu1  ;;  %v1955_v36 = vadd.f32 %v5198_v29, %v4280_v38 }
 0x812   : > { %v3143_v44 = vmul.f32 -1.442695, %v2304_v41  ;;  %v2302_v40 = vpop.f32.mrb[11].mxu1 }
 0x813   : > { %v3144_v52 = vmul.f32 -1.442695, %v2305_v32 }
 0x814   : > { %3502 = vpow2.f32 %v3143_v44 }
 0x815   : > { %3504 = vpow2.f32 %v3144_v52 }
 0x81e   : > { %v3503_v14 = vpop.eup %3502 }
 0x81f   : > { %v3505_v13 = vpop.eup %3504  ;;  %v2312_v51 = vadd.f32 1.0, %v3503_v14 }
 0x820   : > { %v2313_v24 = vadd.f32 1.0, %v3505_v13 }
 0x822   : > { %3506 = vrcp.f32 %v2313_v24 }
 0x823   : > { %3508 = vrcp.f32 %v2312_v51 }
 0x82c   : > { %v3507_v1 = vpop.eup %3506 }
 0x82d   : > { %v2318_v19 = vmul.f32 2.0, %v3507_v1  ;;  %v3509_v12 = vpop.eup %3508 }
 0x82e   : > { %v2320_v56 = vmul.f32 %v3509_v12, %v2251_v49 }
 0x82f   : > { %v3145_v10 = vadd.f32 -1.0, %v2318_v19 }
 0x831   : > { %v2321_v2 = vmul.f32 %v3509_v12, %v3145_v10 }
 0x833   : > { %2323 = vrot.lane.b32.xlu0 %v2321_v2, %s3744_s26 }
 0x8a5   : > { %v2324_v46 = vpop.permute.xlu0 %2323 }
 0x8a6   : > { %v2326_v43 = vadd.f32 %v2324_v46, %v2320_v56 }
 0x8a8   : > { %3510 = vtanh.f32 %v2326_v43 }
 0x8b2   : > { %v3511_v33 = vpop.eup %3510 }
 0x8b3   : > { %v2328_v30 = vmul.f32 %v3511_v33, %v3507_v1  ;;  %v1963_v33 = vadd.f32 %v5204_v27, %v5493_v11 }
 0x8b5   : > { %v2331_v35 = vpack.c.bf16 %v2328_v30, %v2328_v30 }
 0x8b7   : > { %2333 = vrot.lane.b32.xlu1 %v2331_v35, %s3744_s26 }
 0x929   : > { %v2334_v4 = vpop.permute.xlu1 %2333 }
 0x92a   : > { %3146 = vmatmul.mubr.msk.bf16.vlgmr.msra.gmra.mrb[20].mxu0 %vm1883_vm0, %v2334_v4 }
 0x92b   : > { %2489 = vmatpush1.bf16.msra.mxu0 %v5172_v34  ;;  %2520 = vmatprep.mubr.bf16.mxu0 %v5500_v5 }
 0x92c   : > { %2490 = vmatprep.subr.bf16.mxu0 %v5176_v22 }
 0x92f   : > { %2491 = vmatpush1.bf16.msra.mxu0 %v5179_v62 }
 0x930   : > { %2492 = vmatprep.subr.bf16.mxu0 %v5182_v57 }
 0x933   : > { %2493 = vmatpush1.bf16.msra.mxu0 %v5185_v15 }
 0x934   : > { %2494 = vmatprep.subr.bf16.mxu0 %v5188_v18 }
 0x937   : > { %2495 = vmatpush1.bf16.msra.mxu0 %v5191_v28 }
 0x9fd   : > { %v2372_v9 = vpop.f32.mrb[20].mxu0 }
 0x9fe   : > { %v2379_v58 = vadd.f32 %v2372_v9, %v1951_v17  ;;  %v2374_v6 = vpop.f32.mrb[21].mxu0 }
 0x9ff   : > { %v2380_v7 = vadd.f32 %v2374_v6, %v1953_v23  ;;  %v2376_v31 = vpop.f32.mrb[22].mxu0 }
 0xa00   : > { %v3147_v45 = vmul.f32 -1.442695, %v2379_v58  ;;  %v2377_v48 = vpop.f32.mrb[23].mxu0 }
 0xa01   : > { %v3148_v42 = vmul.f32 -1.442695, %v2380_v7 }
 0xa02   : > { %3512 = vpow2.f32 %v3147_v45 }
 0xa03   : > { %3514 = vpow2.f32 %v3148_v42 }
 0xa0c   : > { %v3513_v59 = vpop.eup %3512 }
 0xa0d   : > { %v3515_v61 = vpop.eup %3514  ;;  %v2387_v54 = vadd.f32 1.0, %v3513_v59 }
 0xa0e   : > { %v2388_v60 = vadd.f32 1.0, %v3515_v61 }
 0xa10   : > { %3516 = vrcp.f32 %v2388_v60 }
 0xa11   : > { %3518 = vrcp.f32 %v2387_v54 }
 0xa1a   : > { %v3517_v47 = vpop.eup %3516 }
 0xa1b   : > { %v2393_v20 = vmul.f32 2.0, %v3517_v47  ;;  %v3519_v21 = vpop.eup %3518 }
 0xa1c   : > { %v2395_v16 = vmul.f32 %v3519_v21, %v2326_v43  ;;  %v1961_v43 = vadd.f32 %v5202_v39, %v4280_v38 }
 0xa1d   : > { %v3149_v49 = vadd.f32 -1.0, %v2393_v20 }
 0xa1f   : > { %v2396_v8 = vmul.f32 %v3519_v21, %v3149_v49 }
 0xa21   : > { %2398 = vrot.lane.b32.xlu0 %v2396_v8, %s3744_s26  ;;  %v1965_v8 = vadd.f32 %v5206_v26, %v4280_v38 }
 0xa93   : > { %v2399_v25 = vpop.permute.xlu0 %2398 }
 0xa94   : > { %v2401_v63 = vadd.f32 %v2399_v25, %v2395_v16  ;;  %v1967_v16 = vadd.f32 %v5208_v53, %v5493_v11 }
 0xa96   : > { %3520 = vtanh.f32 %v2401_v63 }
 0xaa0   : > { %v3521_v3 = vpop.eup %3520 }
 0xaa1   : > { %v2403_v0 = vmul.f32 %v3521_v3, %v3517_v47 }
 0xaa3   : > { %v2406_v37 = vpack.c.bf16 %v2403_v0, %v2403_v0 }
 0xaa5   : > { %2408 = vrot.lane.b32.xlu1 %v2406_v37, %s3744_s26 }
 0xb17   : > { %v2409_v41 = vpop.permute.xlu1 %2408 }
 0xb18   : > { %3150 = vmatmul.mubr.msk.bf16.vlgmr.msra.gmra.mrb[12].mxu1 %vm1883_vm0, %v2409_v41 }
 0xb19   : > { %2564 = vmatpush1.bf16.msra.mxu1 %v5172_v34  ;;  %2595 = vmatprep.mubr.bf16.mxu1 %v5500_v5  ;;  %v1957_v34 = vadd.f32 %v5200_v50, %v5493_v11 }
 0xb1a   : > { %2565 = vmatprep.subr.bf16.mxu1 %v5176_v22 }
 0xb1d   : > { %2566 = vmatpush1.bf16.msra.mxu1 %v5179_v62 }
 0xb1e   : > { %2567 = vmatprep.subr.bf16.mxu1 %v5182_v57 }
 0xb21   : > { %2568 = vmatpush1.bf16.msra.mxu1 %v5185_v15 }
 0xb22   : > { %2569 = vmatprep.subr.bf16.mxu1 %v5188_v18 }
 0xb25   : > { %2570 = vmatpush1.bf16.msra.mxu1 %v5191_v28 }
 0xbeb   : > { %v2447_v32 = vpop.f32.mrb[12].mxu1 }
 0xbec   : > { %v2454_v55 = vadd.f32 %v2447_v32, %v1955_v36  ;;  %v2449_v44 = vpop.f32.mrb[13].mxu1 }
 0xbed   : > { %v2455_v22 = vadd.f32 %v2449_v44, %v1957_v34  ;;  %v2451_v40 = vpop.f32.mrb[14].mxu1 }
 0xbee   : > { %v3151_v62 = vmul.f32 -1.442695, %v2454_v55  ;;  %v2452_v52 = vpop.f32.mrb[15].mxu1 }
 0xbef   : > { %v3152_v57 = vmul.f32 -1.442695, %v2455_v22  ;;  %v3444_v52 = vld [vmem:[#allocation9 + $0x4] ss:$8 sps:$4 sm:$0xff]  }
 0xbf0   : > { %3522 = vpow2.f32 %v3151_v62  ;;  %v3442_v62 = vld [vmem:[#allocation9] ss:$8 sps:$4 sm:$0xff]   ;;  %2696 = vmatprep.subr.bf16.mxu0 %v3444_v52 }
 0xbf1   : > { %3524 = vpow2.f32 %v3152_v57  ;;  %v3447_v57 = vld [vmem:[#allocation9 + $0x14] ss:$8 sps:$4 sm:$0xff]  }
 0xbfa   : > { %v3523_v15 = vpop.eup %3522 }
 0xbfb   : > { %v3525_v18 = vpop.eup %3524  ;;  %v2462_v28 = vadd.f32 1.0, %v3523_v15  ;;  %v3445_v15 = vld [vmem:[#allocation9 + $0x10] ss:$8 sps:$4 sm:$0xff]  }
 0xbfc   : > { %v2463_v14 = vadd.f32 1.0, %v3525_v18  ;;  %v3450_v18 = vld [vmem:[#allocation9 + $0x24] ss:$8 sps:$4 sm:$0xff]  }
 0xbfe   : > { %3526 = vrcp.f32 %v2463_v14  ;;  %v3448_v14 = vld [vmem:[#allocation9 + $0x20] ss:$8 sps:$4 sm:$0xff]  }
 0xbff   : > { %3528 = vrcp.f32 %v2462_v28  ;;  %v3453_v28 = vld [vmem:[#allocation9 + $0x34] ss:$8 sps:$4 sm:$0xff]  }
 0xc08   : > { %v3527_v29 = vpop.eup %3526 }
 0xc09   : > { %v2468_v13 = vmul.f32 2.0, %v3527_v29  ;;  %v3529_v50 = vpop.eup %3528 }
 0xc0a   : > { %v2470_v1 = vmul.f32 %v3529_v50, %v2401_v63 }
 0xc0b   : > { %v3153_v24 = vadd.f32 -1.0, %v2468_v13 }
 0xc0d   : > { %v2471_v51 = vmul.f32 %v3529_v50, %v3153_v24 }
 0xc0f   : > { %2473 = vrot.lane.b32.xlu0 %v2471_v51, %s3744_s26  ;;  %v3454_v51 = vld [vmem:[%s5396_s8 + $0x40] sm:$0xff]  }
 0xc10   : > { %3196 = vmatprep.subr.bf16.mxu1 %v3454_v51 }
 0xc81   : > { %v2474_v19 = vpop.permute.xlu0 %2473 }
 0xc82   : > { %v2476_v10 = vadd.f32 %v2474_v19, %v2470_v1  ;;  %v3455_v1 = vld [vmem:[%s5396_s8] sm:$0xff]   ;;  %v3456_v19 = vld [vmem:[%s5396_s8 + $0x48] sm:$0xff]  }
 0xc84   : > { %3530 = vtanh.f32 %v2476_v10 }
 0xc8e   : > { %v3531_v12 = vpop.eup %3530 }
 0xc8f   : > { %v2478_v2 = vmul.f32 %v3531_v12, %v3527_v29  ;;  %v3451_v29 = vld [vmem:[#allocation9 + $0x30] ss:$8 sps:$4 sm:$0xff]  }
 0xc90   : > { %v3458_v12 = vld [vmem:[%s5396_s8 + $0x50] sm:$0xff]  }
 0xc91   : > { %v2481_v56 = vpack.c.bf16 %v2478_v2, %v2478_v2  ;;  %v3459_v2 = vld [vmem:[%s5396_s8 + $0x10] sm:$0xff]  }
 0xc93   : > { %2483 = vrot.lane.b32.xlu1 %v2481_v56, %s3744_s26 }
 0xd05   : > { %v2484_v46 = vpop.permute.xlu1 %2483 }
 0xd06   : > { %3154 = vmatmul.mubr.msk.bf16.vlgmr.msra.gmra.mrb[24].mxu0 %vm1883_vm0, %v2484_v46  ;;  %v3460_v46 = vld [vmem:[%s5396_s8 + $0x58] sm:$0xff]  }
 0xd07   : > { %2728 = vmatprep.mubr.bf16.mxu0 %v5500_v5  ;;  %2697 = vmatpush1.bf16.msra.mxu0 %v3442_v62 }
 0xd08   : > { %2698 = vmatprep.subr.bf16.mxu0 %v3447_v57 }
 0xd0b   : > { %2699 = vmatpush1.bf16.msra.mxu0 %v3445_v15 }
 0xd0c   : > { %2700 = vmatprep.subr.bf16.mxu0 %v3450_v18 }
 0xd0f   : > { %2701 = vmatpush1.bf16.msra.mxu0 %v3448_v14 }
 0xd10   : > { %2702 = vmatprep.subr.bf16.mxu0 %v3453_v28 }
 0xd13   : > { %2703 = vmatpush1.bf16.msra.mxu0 %v3451_v29 }
 0xdd9   : > { %v2522_v30 = vpop.f32.mrb[24].mxu0 }
 0xdda   : > { %v2529_v35 = vadd.f32 %v2522_v30, %v1961_v43  ;;  %v2524_v4 = vpop.f32.mrb[25].mxu0  ;;  %v3461_v30 = vld [vmem:[%s5396_s8 + $0x18] sm:$0xff]  }
 0xddb   : > { %v2530_v17 = vadd.f32 %v2524_v4, %v1963_v33  ;;  %v2526_v23 = vpop.f32.mrb[26].mxu0  ;;  %v3463_v4 = vld [vmem:[%s5396_s8 + $0x20] sm:$0xff]  }
 0xddc   : > { %v3155_v9 = vmul.f32 -1.442695, %v2529_v35  ;;  %v2527_v58 = vpop.f32.mrb[27].mxu0  ;;  %v3462_v35 = vld [vmem:[%s5396_s8 + $0x60] sm:$0xff]   ;;  %v3465_v23 = vld [vmem:[%s5396_s8 + $0x28] sm:$0xff]  }
 0xddd   : > { %v3156_v6 = vmul.f32 -1.442695, %v2530_v17  ;;  %v3464_v17 = vld [vmem:[%s5396_s8 + $0x68] sm:$0xff]   ;;  %v3466_v58 = vld [vmem:[%s5396_s8 + $0x70] sm:$0xff]  }
 0xdde   : > { %3532 = vpow2.f32 %v3155_v9 }
 0xddf   : > { %3534 = vpow2.f32 %v3156_v6  ;;  %v3467_v6 = vld [vmem:[%s5396_s8 + $0x30] sm:$0xff]  }
 0xde8   : > { %v3533_v7 = vpop.eup %3532 }
 0xde9   : > { %v3535_v31 = vpop.eup %3534  ;;  %v2537_v5 = vadd.f32 1.0, %v3533_v7  ;;  %v3468_v7 = vld [vmem:[%s5396_s8 + $0x78] sm:$0xff]  }
 0xdea   : > { %v2538_v45 = vadd.f32 1.0, %v3535_v31  ;;  %v3469_v31 = vld [vmem:[%s5396_s8 + $0x38] sm:$0xff]  }
 0xdec   : > { %3536 = vrcp.f32 %v2538_v45  ;;  %v2638_v45 = vld [vmem:[%s5395_s7] sm:$0x3] }
 0xded   : > { %3538 = vrcp.f32 %v2537_v5  ;;  %v5501_v5 = vld [vmem:[#allocation20_spill] sm:$0xff] }
 0xdf6   : > { %v3537_v39 = vpop.eup %3536 }
 0xdf7   : > { %v2543_v48 = vmul.f32 2.0, %v3537_v39  ;;  %v3539_v27 = vpop.eup %3538 }
 0xdf8   : > { %v2545_v61 = vmul.f32 %v3539_v27, %v2476_v10  ;;  %v3457_v10 = vld [vmem:[%s5396_s8 + $0x8] sm:$0xff]  }
 0xdf9   : > { %v3157_v42 = vadd.f32 -1.0, %v2543_v48  ;;  %v5502_v48 = vld [vmem:[#allocation19_spill] sm:$0xff] }
 0xdfb   : > { %v2546_v59 = vmul.f32 %v3539_v27, %v3157_v42  ;;  %v2647_v42 = vrot.slane %v2638_v45, %v5502_v48 }
 0xdfd   : > { %2548 = vrot.lane.b32.xlu0 %v2546_v59, %s3744_s26 }
 0xe6f   : > { %v2549_v60 = vpop.permute.xlu0 %2548 }
 0xe70   : > { %v2551_v54 = vadd.f32 %v2549_v60, %v2545_v61 }
 0xe72   : > { %3540 = vtanh.f32 %v2551_v54 }
 0xe7c   : > { %v3541_v47 = vpop.eup %3540 }
 0xe7d   : > { %v2553_v20 = vmul.f32 %v3541_v47, %v3537_v39  ;;  %v2643_v39 = vrot.slane %v2638_v45, %v5501_v5 }
 0xe7f   : > { %v2556_v49 = vpack.c.bf16 %v2553_v20, %v2553_v20 }
 0xe81   : > { %2558 = vrot.lane.b32.xlu1 %v2556_v49, %s3744_s26 }
 0xef3   : > { %v2559_v21 = vpop.permute.xlu1 %2558 }
 0xef4   : > { %3158 = vmatmul.mubr.msk.bf16.vlgmr.msra.gmra.mrb[16].mxu1 %vm1883_vm0, %v2559_v21 }
 0xef5   : > { %3197 = vmatpush3.bf16.msra.mxu1 %v3455_v1 }
 0xef6   : > { %3198 = vmatprep.subr.bf16.mxu1 %v3456_v19 }
 0xef9   : > { %3199 = vmatpush3.bf16.msra.mxu1 %v3457_v10 }
 0xefa   : > { %3200 = vmatprep.subr.bf16.mxu1 %v3458_v12 }
 0xefd   : > { %3201 = vmatpush3.bf16.msra.mxu1 %v3459_v2 }
 0xefe   : > { %3202 = vmatprep.subr.bf16.mxu1 %v3460_v46 }
 0xf01   : > { %3203 = vmatpush3.bf16.msra.mxu1 %v3461_v30 }
 0xf02   : > { %3204 = vmatprep.subr.bf16.mxu1 %v3462_v35 }
 0xf05   : > { %3205 = vmatpush3.bf16.msra.mxu1 %v3463_v4 }
 0xf06   : > { %3206 = vmatprep.subr.bf16.mxu1 %v3464_v17 }
 0xf09   : > { %3207 = vmatpush3.bf16.msra.mxu1 %v3465_v23 }
 0xf0a   : > { %3208 = vmatprep.subr.bf16.mxu1 %v3466_v58 }
 0xf0d   : > { %3209 = vmatpush3.bf16.msra.mxu1 %v3467_v6 }
 0xf0e   : > { %3210 = vmatprep.subr.bf16.mxu1 %v3468_v7 }
 0xf11   : > { %3211 = vmatpush3.bf16.msra.mxu1 %v3469_v31 }
 0xfc7   : > { %v2597_v25 = vpop.f32.mrb[16].mxu1 }
 0xfc8   : > { %v2604_v63 = vadd.f32 %v2597_v25, %v1965_v8  ;;  %v2599_v3 = vpop.f32.mrb[17].mxu1  ;;  %v3745_v25 = vmov 0.0  }
 0xfc9   : > { %v2605_v0 = vadd.f32 %v2599_v3, %v1967_v16  ;;  %v2601_v37 = vpop.f32.mrb[18].mxu1  ;;  %v3470_v16 = vld [vmem:[%s5503_s14] sm:$0xff]   ;;  %3221 = vmatprep.subr.bf16.mxu0 %v3745_v25 }
 0xfca   : > { %v3159_v41 = vmul.f32 -1.442695, %v2604_v63  ;;  %v2602_v36 = vpop.f32.mrb[19].mxu1  ;;  %v3471_v63 = vld [vmem:[%s5503_s14 + $0x8] sm:$0xff]  }
 0xfcb   : > { %v3160_v34 = vmul.f32 -1.442695, %v2605_v0 }
 0xfcc   : > { %3542 = vpow2.f32 %v3159_v41 }
 0xfcd   : > { %3544 = vpow2.f32 %v3160_v34 }
 0xfd6   : > { %v3543_v32 = vpop.eup %3542 }
 0xfd7   : > { %v3545_v55 = vpop.eup %3544  ;;  %v2612_v22 = vadd.f32 1.0, %v3543_v32 }
 0xfd8   : > { %v2613_v44 = vadd.f32 1.0, %v3545_v55 }
 0xfda   : > { %3546 = vrcp.f32 %v2613_v44 }
 0xfdb   : > { %3548 = vrcp.f32 %v2612_v22  ;;  %v3188_v22 = vld [vmem:[%s5505_s28] ss:$0 sm:$0xff] }
 0xfe4   : > { %v3547_v38 = vpop.eup %3546 }
 0xfe5   : > { %v2618_v26 = vmul.f32 2.0, %v3547_v38  ;;  %v3549_v11 = vpop.eup %3548 }
 0xfe6   : > { %v2620_v13 = vmul.f32 %v3549_v11, %v2551_v54 }
 0xfe7   : > { %v3161_v40 = vadd.f32 -1.0, %v2618_v26 }
 0xfe9   : > { %v2621_v53 = vmul.f32 %v3549_v11, %v3161_v40 }
 0xfeb   : > { %2623 = vrot.lane.b32.xlu0 %v2621_v53, %s3744_s26 }
0x105d   : > { %v2624_v24 = vpop.permute.xlu0 %2623 }
0x105e   : > { %v2626_v50 = vadd.f32 %v2624_v24, %v2620_v13 }
0x1060   : > { %3550 = vtanh.f32 %v2626_v50 }
0x106a   : > { %v3551_v56 = vpop.eup %3550 }
0x106b   : > { %v2628_v43 = vmul.f32 %v3551_v56, %v3547_v38 }
0x106d   : > { %v2629_v33 = vpack.c.bf16 %v2628_v43, %v2628_v43 }
0x106f   : > { %2651 = vrot.lane.b32.xlu1 %v2629_v33, %s3744_s26  ;;  %s5504_s26 = sld [smem:[#allocation29_spill]] }
0x1075   : > { %v3171_v0 = vld [vmem:[%s5504_s26] ss:$0 sm:$0xff]  ;;  %s3656_s26 = scalar_lea.vmem %s3655_s30, 256 }
0x1076   : > { %p3658_p6 = scmp.lt.s32.totalorder %s3656_s26, %s3650_s25 }
0x1078   : > { %p3659_p10 = por %p3658_p6, %p3657_p3 }
0x107a   : > { %p3660_p2 = pnand %p3659_p10, %p3653_p1 }
0x10e1   : > { %v2652_v9 = vpop.permute.xlu1 %2651 }
0x10e2   : > { %3170 = vmatmul.mubr.msk.bf16.vlgmr.msra.gmra.mrb[28].mxu0 %vm1883_vm0, %v2652_v9 }
0x10e3   : > { %3222 = vmatpush3.bf16.msra.mxu0 %v3470_v16  ;;  %3225 = vmatprep.mubr.msk.bf16.mxu0 %vm3746_vm1, %v3745_v25 }
0x10e4   : > { %3223 = vmatprep.subr.bf16.mxu0 %v3745_v25 }
0x10e7   : > { %3224 = vmatpush3.bf16.msra.mxu0 %v3471_v63 }
0x11b5   : > { %v2730_v27 = vpop.f32.mrb[28].mxu0 }
0x11b6   : > { %v2731_v59 = vadd.f32 %v2730_v27, %v2643_v39  ;;  %v2732_v61 = vpop.f32.mrb[29].mxu0 }
0x11b7   : > { %v2733_v60 = vadd.f32 %v2732_v61, %v2647_v42  ;;  %v2734_v54 = vpop.f32.mrb[30].mxu0 }
0x11b8   : > { %v2737_v47 = vmax.f32 %v2731_v59, 0.0  ;;  %v2735_v20 = vpop.f32.mrb[31].mxu0 }
0x11b9   : > { %v2738_v49 = vmax.f32 %v2733_v60, 0.0 }
0x11ba   : > { %v2739_v8 = vpack.c.bf16 %v2737_v47, %v2737_v47 }
0x11bb   : > { %v2740_v21 = vpack.c.bf16 %v2738_v49, %v2738_v49 }
0x11bd   : > { %2908 = vmatprep.mubr.bf16.mxu1 %v2740_v21 }
0x11be   : > { %2909 = vmatmul.mubr.bf16.vlgmr.msra.gmra.mrb[20].mxu1 %v2739_v8 }
0x1291   : > { %v3212_v3 = vpop.f32.mrb[20].mxu1 }
0x1292   : > { %v3213_v37 = vpop.f32.mrb[21].mxu1 }
0x1293   : > { %v3214_v41 = vadd.f32 %v3213_v37, %v3212_v3  ;;  %v3215_v36 = vpop.f32.mrb[22].mxu1 }
0x1294   : > { %v3216_v34 = vpop.f32.mrb[23].mxu1 }
0x1295   : > { %v2911_v32 = vadd.f32 %v3214_v41, %v3171_v0 }
0x1297   : > { %v2916_v55 = vmax.f32 %v2911_v32, 0.0 }
0x1299   : > { %v2917_v44 = vpack.c.bf16 %v2916_v55, %v2916_v55 }
0x129b   : > { %3226 = vmatmul.mubr.msk.bf16.vlgmr.msra.gmra.mrb[32].mxu0 %vm2941_vm2, %v2917_v44 }
0x136e   : > { %v2979_v38 = vpop.f32.mrb[32].mxu0 }
0x136f   : > { %v2980_v26 = vadd.f32 %v3188_v22, %v2979_v38  ;;  %v3227_v40 = vpop.f32.mrb[33].mxu0 }
0x1370   : > { %v2982_v11 = vpop.f32.mrb[34].mxu0 }
0x1371   : > { %2985 = vst [vmem:[%s517_s9] sm:$0xff] %v2980_v26  ;;  %v3228_v53 = vpop.f32.mrb[35].mxu0 }
0x1372   : > { %3663 = shalt.err (!%p3660_p2)
}
0x1373   : > { %s3664_s13 = scalar_lea.hbm %s5344_s15, 128  ;;  %s3668_s20 = scalar_lea.hbm %s5507_s11, 256 }
0x1374   : > { %p3665_p5 = scmp.ne.s32.totalorder %s5344_s15, %s3664_s13  ;;  %p3669_p4 = scmp.lt.u32.totalorder %s5344_s15, %s5507_s11 }
0x1375   : > { %p3670_p7 = scmp.lt.u32.totalorder %s3668_s20, %s3664_s13  ;;  %p3672_p13 = scmp.lt.u32.totalorder %s3664_s13, %s5344_s15 }
0x1376   : > { %p3666_p12 = pnand %p3665_p5, %p5508_p9 }
0x1377   : > { %p3671_p8 = por %p3670_p7, %p3669_p4 }
0x1378   : > { %p3667_p0 = pneg %p3666_p12 }
0x1379   : > { %p3673_p1 = por %p3672_p13, %p3671_p8 }
0x137b   : > { %p3674_p3 = pnand %p3673_p1, %p3667_p0 }
0x137d   : > { %3677 = shalt.err (!%p3674_p3)
}
0x137e   : > { %3241 = dma.vmem_to_hbm [thread:$0]  (%p5508_p9), %s5346_s12, 128, %s5344_s15, %s2987_s29  }
0x137f PF: > { %s5509_s9 = sld [smem:[#allocation14_spill]]  ;;  %s5510_s10 = sld [smem:[#allocation18_spill]] }
0x1385   : > { %s3012_s19 = sand.u32 1, %s5509_s9   ;;  %p5511_p6 = scmp.ne.s32.totalorder %s5510_s10, 0 }
0x1386   : > { %s3013_s25 = scalar_lea.sflag [#allocation6], %s3012_s19 }
0x1387   : > { %p3254_p10 = pnand %p3101_p11, %p5511_p6 }
0x1389   : > { %3703 = dma.done.wait (!%p3254_p10), %s3013_s25, 128  }
0x138a   : > { %3705 = vsyncadd (!%p3254_p10), %s3013_s25, 4294967168  ;;  %s5512_s24 = sld [smem:[#allocation15_spill]]  ;;  %s5513_s27 = sld [smem:[#allocation16_spill]] }
0x138b   : > { %s5514_s21 = smov %s3712_s22  ;;  %s5515_s22 = smov %s3716_s23 }
0x1390   : > { %p24_p2 = scmp.ge.s32.totalorder %s5512_s24, 4   ;;  %s5516_s23 = smov %s5513_s27 }
0x1392   :  { %26 = sbr.rel (!%p24_p2) target bundleno = 10 (0xa), region = 159 }
0x1399   :  { %3018 = vsyncpa [#allocation5], 1 }
0x139a   :  { %3020 = vsyncpa [#allocation5 + $0x1], 1 }
0x139b   :  { %3021 = vsyncpa [#allocation8], 1 }
0x139c   :  { %3022 = vsyncpa [#allocation6], 1 }
0x139d   :  { %3024 = vsyncpa [#allocation6 + $0x1], 1 }

</bundles_post_ra>
